<compile_context>
chip_gen: v6e
topology: v6e:2x2x1
jax: 0.10.0
libtpu: 0.0.40
codegen_flags: <defaults>
</compile_context>

<pallas_src>
import math
import jax
import jax.numpy as jnp
from jax.experimental import pallas as pl
from jax.experimental.pallas import tpu as pltpu


# ----------------------------------------------------------------------------
# Fused Pallas kernel: full bidirectional LSTM stack + MLP head (inference)
# ----------------------------------------------------------------------------
def make_scenedet_kernel(T, Bp, H, L):
    n_in = 4 + 3 * L + 4   # x2d, h0, c0, mask, per-layer (wih, whh, b), head (w1, b1, w2, b2)

    def kernel(*refs):
        x_ref, h0_ref, c0_ref, mask_ref = refs[0:4]
        w_refs = refs[4:4 + 3 * L]
        w1_ref, b1_ref, w2_ref, b2_ref = refs[4 + 3 * L:n_in]
        scores_ref, hn_ref, cn_ref = refs[n_in:n_in + 3]
        xp_ref, act_a, act_b = refs[n_in + 3:n_in + 6]

        # Lane mask selecting the forward-direction gate columns of the interleaved
        # [i_f|i_b|f_f|f_b|g_f|g_b|o_f|o_b] layout.  Hoisted once for the whole kernel.
        fwd_mask = mask_ref[...] > 0.5

        def row(t):
            # Row-block start for time step t; always a multiple of Bp (= multiple of 8).
            if isinstance(t, int):
                return t * Bp
            return pl.multiple_of(t * Bp, Bp)

        def run_layer(l, in_ref, out_ref):
            wih_ref, whh_ref, b_ref = w_refs[3 * l:3 * l + 3]

            # Hoisted input projection for BOTH directions + combined (b_ih + b_hh) bias:
            # one MXU matmul, entirely off the serial recurrence chain.
            xp_ref[...] = (
                jnp.dot(in_ref[...], wih_ref[...], preferred_element_type=jnp.float32)
                + b_ref[...])

            whh = whh_ref[...]        # (2H, 8H) block-diagonal, gate-interleaved
            h = h0_ref[l]             # (Bp, 2H): cols [0:H]=fwd state, [H:2H]=bwd state
            c = c0_ref[l]

            def step(t, h, c):
                rb = T - 1 - t
                # fwd gate columns come from time t, bwd gate columns from time T-1-t.
                xp_t = xp_ref[pl.ds(row(t), Bp), :]
                xp_r = xp_ref[pl.ds(row(rb), Bp), :]
                xg = jnp.where(fwd_mask, xp_t, xp_r)
                # Single fused recurrence matmul for both directions.
                g = xg + jnp.dot(h, whh, preferred_element_type=jnp.float32)
                i_g = jax.nn.sigmoid(g[:, 0:2 * H])
                f_g = jax.nn.sigmoid(g[:, 2 * H:4 * H])
                g_g = jnp.tanh(g[:, 4 * H:6 * H])
                o_g = jax.nn.sigmoid(g[:, 6 * H:8 * H])
                c_new = f_g * c + i_g * g_g
                h_new = o_g * jnp.tanh(c_new)
                # fwd output -> time row t (cols 0:H); bwd output -> time row T-1-t (cols H:2H).
                out_ref[pl.ds(row(t), Bp), 0:H] = h_new[:, 0:H]
                out_ref[pl.ds(row(rb), Bp), H:2 * H] = h_new[:, H:2 * H]
                return h_new, c_new

            if T <= 64:
                # Fully unrolled: static, tile-aligned slices; h/c stay in vregs.
                for t in range(T):
                    h, c = step(t, h, c)
            else:
                # Long sequences: register-carried h/c through a fori_loop.
                def body(t, carry):
                    hh, cc = carry
                    return step(t, hh, cc)
                h, c = jax.lax.fori_loop(0, T, body, (h, c))

            # Final state written exactly once per layer.
            hn_ref[l] = h
            cn_ref[l] = c

        cur = x_ref
        bufs = (act_a, act_b)
        for l in range(L):
            out_buf = bufs[l % 2]
            run_layer(l, cur, out_buf)
            cur = out_buf
            # inter-layer dropout: inference no-op

        # ---- MLP head: relu -> Linear(2H,1024) -> relu -> Linear(1024,1) -> sigmoid ----
        feat = jnp.maximum(cur[...], 0.0)
        hid = jnp.dot(feat, w1_ref[...], preferred_element_type=jnp.float32) + b1_ref[...]
        hid = jnp.maximum(hid, 0.0)
        z = jnp.dot(hid, w2_ref[...], preferred_element_type=jnp.float32) + b2_ref[...]
        scores_ref[...] = jax.nn.sigmoid(z)

    return kernel


# ----------------------------------------------------------------------------
# Host-side parameter packing (PyTorch layout -> fused kernel layout)
# ----------------------------------------------------------------------------
def _interleave_gates(wf, wb, H):
    """Interleave per-gate column blocks -> [i_f|i_b|f_f|f_b|g_f|g_b|o_f|o_b]."""
    blocks = []
    for k in range(4):
        blocks.append(wf[..., k * H:(k + 1) * H])
        blocks.append(wb[..., k * H:(k + 1) * H])
    return jnp.concatenate(blocks, axis=-1)


def _pack_kernel_params(params):
    L, H = params["num_layers"], params["hidden"]
    packed = []
    for l in range(L):
        wih_f = params[f"w_ih_l{l}_f"].T                     # (in, 4H)
        wih_b = params[f"w_ih_l{l}_b"].T
        whh_f = params[f"w_hh_l{l}_f"].T                     # (H, 4H)
        whh_b = params[f"w_hh_l{l}_b"].T
        bf = (params[f"b_ih_l{l}_f"] + params[f"b_hh_l{l}_f"])[None, :]   # (1, 4H)
        bb = (params[f"b_ih_l{l}_b"] + params[f"b_hh_l{l}_b"])[None, :]

        wih_full = _interleave_gates(wih_f, wih_b, H)        # (in, 8H)
        zeros = jnp.zeros_like(whh_f)
        whh_packed = jnp.concatenate(
            [_interleave_gates(whh_f, zeros, H),             # fwd h rows -> fwd gate columns
             _interleave_gates(zeros, whh_b, H)],            # bwd h rows -> bwd gate columns
            axis=0)                                          # (2H, 8H) block-diagonal
        b_full = _interleave_gates(bf, bb, H)                # (1, 8H)
        packed += [wih_full, whh_packed, b_full]

    packed += [params["dense_w"].T, params["dense_b"].reshape(1, 1024),
               params["final_w"].T, params["final_b"].reshape(1, 1)]
    return packed


# ----------------------------------------------------------------------------
# Wrapper mirroring LSTM_sceneDet.forward (inference)
# ----------------------------------------------------------------------------
def lstm_scenedet_forward(params, x, h=None, c=None):
    """x: (B, T, nbFeat) batch-first. Returns (scores (B, T), (h_n (2L,B,H), c_n (2L,B,H)))."""
    B, T, F = x.shape
    L, H = params["num_layers"], params["hidden"]
    Bp = ((B + 7) // 8) * 8      # pad batch to a full sublane tile -> aligned per-step slices

    if h is None:
        h = jnp.zeros((2 * L, B, H), jnp.float32)
        c = jnp.zeros((2 * L, B, H), jnp.float32)

    # Time-major, batch padded to Bp, flattened rows (row = t*Bp + b).
    xt = jnp.pad(jnp.transpose(x, (1, 0, 2)).astype(jnp.float32),
                 ((0, 0), (0, Bp - B), (0, 0)))
    x2d = xt.reshape(T * Bp, F)

    # Initial state packed per layer as (Bp, 2H): cols [0:H]=fwd, [H:2H]=bwd.
    h3 = h.astype(jnp.float32).reshape(L, 2, B, H)
    c3 = c.astype(jnp.float32).reshape(L, 2, B, H)
    h0 = jnp.zeros((L, Bp, 2 * H), jnp.float32)
    h0 = h0.at[:, :B, 0:H].set(h3[:, 0]).at[:, :B, H:].set(h3[:, 1])
    c0 = jnp.zeros((L, Bp, 2 * H), jnp.float32)
    c0 = c0.at[:, :B, 0:H].set(c3[:, 0]).at[:, :B, H:].set(c3[:, 1])

    # Lane mask: 1.0 on forward-direction gate columns of the interleaved 8H layout.
    gate_pat = jnp.concatenate([jnp.ones((H,), jnp.float32), jnp.zeros((H,), jnp.float32)])
    fwd_mask = jnp.tile(gate_pat, (Bp, 4))                   # (Bp, 8H)

    inputs = [x2d, h0, c0, fwd_mask] + _pack_kernel_params(params)

    vm = pl.BlockSpec(memory_space=pltpu.MemorySpace.VMEM)
    scores2d, hn_p, cn_p = pl.pallas_call(
        make_scenedet_kernel(T, Bp, H, L),
        out_shape=(
            jax.ShapeDtypeStruct((T * Bp, 1), jnp.float32),
            jax.ShapeDtypeStruct((L, Bp, 2 * H), jnp.float32),
            jax.ShapeDtypeStruct((L, Bp, 2 * H), jnp.float32),
        ),
        in_specs=[vm] * len(inputs),
        out_specs=(vm, vm, vm),
        scratch_shapes=[
            pltpu.VMEM((T * Bp, 8 * H), jnp.float32),   # fused fwd+bwd input projection
            pltpu.VMEM((T * Bp, 2 * H), jnp.float32),   # layer activations (ping)
            pltpu.VMEM((T * Bp, 2 * H), jnp.float32),   # layer activations (pong)
        ],
        compiler_params=pltpu.CompilerParams(vmem_limit_bytes=32 * 1024 * 1024),
    )(*inputs)

    scores = scores2d.reshape(T, Bp)[:, :B].T                                  # (B, T)
    h_n = jnp.stack([hn_p[:, :B, 0:H], hn_p[:, :B, H:]], axis=1).reshape(2 * L, B, H)
    c_n = jnp.stack([cn_p[:, :B, 0:H], cn_p[:, :B, H:]], axis=1).reshape(2 * L, B, H)
    return scores, (h_n, c_n)


# ----------------------------------------------------------------------------
# Pure-JAX reference (raw PyTorch-layout params), used only for validation
# ----------------------------------------------------------------------------
def reference_forward(params, x, h=None, c=None):
    B, T, F = x.shape
    L, H = params["num_layers"], params["hidden"]
    if h is None:
        h = jnp.zeros((2 * L, B, H), jnp.float32)
        c = jnp.zeros((2 * L, B, H), jnp.float32)

    def cell(x_t, h_prev, c_prev, w_ih, w_hh, b_ih, b_hh):
        g = x_t @ w_ih.T + h_prev @ w_hh.T + b_ih + b_hh
        i = jax.nn.sigmoid(g[:, 0:H]); f = jax.nn.sigmoid(g[:, H:2 * H])
        gg = jnp.tanh(g[:, 2 * H:3 * H]); o = jax.nn.sigmoid(g[:, 3 * H:4 * H])
        c_new = f * c_prev + i * gg
        return o * jnp.tanh(c_new), c_new

    inp = jnp.transpose(x, (1, 0, 2)).astype(jnp.float32)    # (T, B, F)
    hs, cs = [], []
    for l in range(L):
        hf, cf = h[2 * l], c[2 * l]
        hb, cb = h[2 * l + 1], c[2 * l + 1]
        yf = []
        for t in range(T):
            hf, cf = cell(inp[t], hf, cf, params[f"w_ih_l{l}_f"], params[f"w_hh_l{l}_f"],
                          params[f"b_ih_l{l}_f"], params[f"b_hh_l{l}_f"])
            yf.append(hf)
        yb = [None] * T
        for t in reversed(range(T)):
            hb, cb = cell(inp[t], hb, cb, params[f"w_ih_l{l}_b"], params[f"w_hh_l{l}_b"],
                          params[f"b_ih_l{l}_b"], params[f"b_hh_l{l}_b"])
            yb[t] = hb
        inp = jnp.concatenate([jnp.stack(yf), jnp.stack(yb)], axis=-1)
        hs += [hf, hb]; cs += [cf, cb]
    h_n, c_n = jnp.stack(hs), jnp.stack(cs)

    feat = jnp.maximum(inp, 0.0)
    hd = jnp.maximum(jnp.einsum("tbd,kd->tbk", feat, params["dense_w"]) + params["dense_b"], 0.0)
    z = jnp.einsum("tbk,ok->tbo", hd, params["final_w"]) + params["final_b"]
    scores = jax.nn.sigmoid(z)[..., 0].T                     # (B, T)
    return scores, (h_n, c_n)


# ----------------------------------------------------------------------------
# Deterministic parameter init (shapes per nn.LSTM / nn.Linear defaults)
# ----------------------------------------------------------------------------
def init_params(key, nb_feat, hidden, layers):
    params = {"num_layers": layers, "hidden": hidden}
    k_lstm = 1.0 / math.sqrt(hidden)

    def unif(key, shape, bound):
        return jax.random.uniform(key, shape, jnp.float32, -bound, bound)

    keys = iter(jax.random.split(key, 8 * layers + 4))
    for l in range(layers):
        in_sz = nb_feat if l == 0 else 2 * hidden
        for d in ("f", "b"):
            params[f"w_ih_l{l}_{d}"] = unif(next(keys), (4 * hidden, in_sz), k_lstm)
            params[f"w_hh_l{l}_{d}"] = unif(next(keys), (4 * hidden, hidden), k_lstm)
            params[f"b_ih_l{l}_{d}"] = unif(next(keys), (4 * hidden,), k_lstm)
            params[f"b_hh_l{l}_{d}"] = unif(next(keys), (4 * hidden,), k_lstm)

    k_d = 1.0 / math.sqrt(2 * hidden)
    params["dense_w"] = unif(next(keys), (1024, 2 * hidden), k_d)   # nn.Linear(2H, 1024)
    params["dense_b"] = unif(next(keys), (1024,), k_d)
    k_f = 1.0 / math.sqrt(1024)
    params["final_w"] = unif(next(keys), (1, 1024), k_f)            # nn.Linear(1024, 1)
    params["final_b"] = unif(next(keys), (1,), k_f)
    return params


# ----------------------------------------------------------------------------
if __name__ == "__main__":
    B, T = 2, 8          # batch, sequence length (shots)
    NB_FEAT = 16         # nbFeat
    HIDDEN = 32          # hiddenSize
    LAYERS = 2           # layerNb
    # dropout = 0.0 (inference; no-op)

    key = jax.random.PRNGKey(0)
    k_x, k_p, k_h, k_c = jax.random.split(key, 4)
    x = jax.random.normal(k_x, (B, T, NB_FEAT), jnp.float32)
    params = init_params(k_p, NB_FEAT, HIDDEN, LAYERS)

    # Case 1: default zero initial state (h=None, c=None).
    fwd0 = jax.jit(lambda xx: lstm_scenedet_forward(params, xx))
    scores, (h_n, c_n) = fwd0(x)
    jax.block_until_ready((scores, h_n, c_n))

    assert scores.shape == (B, T)
    assert h_n.shape == (2 * LAYERS, B, HIDDEN)
    assert c_n.shape == (2 * LAYERS, B, HIDDEN)
    assert bool(jnp.all(jnp.isfinite(scores)))
    assert bool(jnp.all((scores >= 0.0) & (scores <= 1.0)))

    ref_scores, (ref_h, ref_c) = reference_forward(params, x)
    assert bool(jnp.allclose(scores, ref_scores, atol=5e-3, rtol=5e-3))
    assert bool(jnp.allclose(h_n, ref_h, atol=5e-3, rtol=5e-3))
    assert bool(jnp.allclose(c_n, ref_c, atol=5e-3, rtol=5e-3))

    # Case 2: explicit non-zero initial state (exercises the h/c packing path).
    h0 = 0.1 * jax.random.normal(k_h, (2 * LAYERS, B, HIDDEN), jnp.float32)
    c0 = 0.1 * jax.random.normal(k_c, (2 * LAYERS, B, HIDDEN), jnp.float32)
    fwd1 = jax.jit(lambda xx, hh, cc: lstm_scenedet_forward(params, xx, hh, cc))
    scores1, (h_n1, c_n1) = fwd1(x, h0, c0)
    jax.block_until_ready((scores1, h_n1, c_n1))

    ref_scores1, (ref_h1, ref_c1) = reference_forward(params, x, h0, c0)
    assert bool(jnp.allclose(scores1, ref_scores1, atol=5e-3, rtol=5e-3))
    assert bool(jnp.allclose(h_n1, ref_h1, atol=5e-3, rtol=5e-3))
    assert bool(jnp.allclose(c_n1, ref_c1, atol=5e-3, rtol=5e-3))

    print("KERNEL_OK")
</pallas_src>

<mosaic_0001>
module attributes {stable_mosaic.version = 11 : i64} {
  func.func @kernel(%arg0: memref<64x16xf32, #tpu.memory_space<vmem>>, %arg1: memref<2x8x64xf32, #tpu.memory_space<vmem>>, %arg2: memref<2x8x64xf32, #tpu.memory_space<vmem>>, %arg3: memref<8x256xf32, #tpu.memory_space<vmem>>, %arg4: memref<16x256xf32, #tpu.memory_space<vmem>>, %arg5: memref<64x256xf32, #tpu.memory_space<vmem>>, %arg6: memref<1x256xf32, #tpu.memory_space<vmem>>, %arg7: memref<64x256xf32, #tpu.memory_space<vmem>>, %arg8: memref<64x256xf32, #tpu.memory_space<vmem>>, %arg9: memref<1x256xf32, #tpu.memory_space<vmem>>, %arg10: memref<64x1024xf32, #tpu.memory_space<vmem>>, %arg11: memref<1x1024xf32, #tpu.memory_space<vmem>>, %arg12: memref<1024x1xf32, #tpu.memory_space<vmem>>, %arg13: memref<1x1xf32, #tpu.memory_space<vmem>>, %arg14: memref<64x1xf32, #tpu.memory_space<vmem>>, %arg15: memref<2x8x64xf32, #tpu.memory_space<vmem>>, %arg16: memref<2x8x64xf32, #tpu.memory_space<vmem>>, %arg17: memref<64x256xf32, #tpu.memory_space<vmem>>, %arg18: memref<64x64xf32, #tpu.memory_space<vmem>>, %arg19: memref<64x64xf32, #tpu.memory_space<vmem>>) attributes {dimension_semantics = [], scalar_prefetch = 0 : i64, scratch_operands = 3 : i64, tpu.core_type = #tpu.core_type<tc>} {
    %c0 = arith.constant 0 : index
    %c0_0 = arith.constant 0 : index
    %0 = vector.load %arg3[%c0, %c0_0] : memref<8x256xf32, #tpu.memory_space<vmem>>, vector<8x256xf32>
    %cst = arith.constant 5.000000e-01 : f32
    %1 = vector.broadcast %cst : f32 to vector<8x256xf32>
    %2 = arith.cmpf ogt, %0, %1 : vector<8x256xf32>
    %c0_1 = arith.constant 0 : index
    %c0_2 = arith.constant 0 : index
    %3 = vector.load %arg0[%c0_1, %c0_2] : memref<64x16xf32, #tpu.memory_space<vmem>>, vector<64x16xf32>
    %c0_3 = arith.constant 0 : index
    %c0_4 = arith.constant 0 : index
    %4 = vector.load %arg4[%c0_3, %c0_4] : memref<16x256xf32, #tpu.memory_space<vmem>>, vector<16x256xf32>
    %cst_5 = arith.constant dense<0.000000e+00> : vector<64x256xf32>
    %5 = tpu.matmul %3, %4, %cst_5 {dimension_numbers = #tpu.dot_dimension_numbers<[1], [0], [0], [1], [0, 0, 1, 1], [], []>} : vector<64x16xf32>, vector<16x256xf32>, vector<64x256xf32> -> vector<64x256xf32>
    %c0_6 = arith.constant 0 : index
    %c0_7 = arith.constant 0 : index
    %6 = vector.load %arg6[%c0_6, %c0_7] : memref<1x256xf32, #tpu.memory_space<vmem>>, vector<1x256xf32>
    %7 = vector.broadcast %6 : vector<1x256xf32> to vector<64x256xf32>
    %8 = arith.addf %5, %7 : vector<64x256xf32>
    %c0_8 = arith.constant 0 : index
    %c0_9 = arith.constant 0 : index
    %9 = vector.load %arg17[%c0_8, %c0_9] : memref<64x256xf32, #tpu.memory_space<vmem>>, vector<64x256xf32>
    tpu.vector_store %arg17[%c0_8, %c0_9], %8 {strides = array<i32>} : memref<64x256xf32, #tpu.memory_space<vmem>>, vector<64x256xf32>,
    %c0_10 = arith.constant 0 : index
    %c0_11 = arith.constant 0 : index
    %10 = vector.load %arg5[%c0_10, %c0_11] : memref<64x256xf32, #tpu.memory_space<vmem>>, vector<64x256xf32>
    %c0_12 = arith.constant 0 : index
    %c0_13 = arith.constant 0 : index
    %c0_14 = arith.constant 0 : index
    %11 = vector.load %arg1[%c0_12, %c0_13, %c0_14] : memref<2x8x64xf32, #tpu.memory_space<vmem>>, vector<1x8x64xf32>
    %12 = vector.shape_cast %11 : vector<1x8x64xf32> to vector<8x64xf32>
    %c0_15 = arith.constant 0 : index
    %c0_16 = arith.constant 0 : index
    %c0_17 = arith.constant 0 : index
    %13 = vector.load %arg2[%c0_15, %c0_16, %c0_17] : memref<2x8x64xf32, #tpu.memory_space<vmem>>, vector<1x8x64xf32>
    %14 = vector.shape_cast %13 : vector<1x8x64xf32> to vector<8x64xf32>
    %c0_18 = arith.constant 0 : index
    %c0_19 = arith.constant 0 : index
    %15 = vector.load %arg17[%c0_18, %c0_19] : memref<64x256xf32, #tpu.memory_space<vmem>>, vector<8x256xf32>
    %c56 = arith.constant 56 : index
    %c0_20 = arith.constant 0 : index
    %16 = vector.load %arg17[%c56, %c0_20] : memref<64x256xf32, #tpu.memory_space<vmem>>, vector<8x256xf32>
    %17 = arith.select %2, %15, %16 : vector<8x256xi1>, vector<8x256xf32>
    %cst_21 = arith.constant dense<0.000000e+00> : vector<8x256xf32>
    %18 = tpu.matmul %12, %10, %cst_21 {dimension_numbers = #tpu.dot_dimension_numbers<[1], [0], [0], [1], [0, 0, 1, 1], [], []>} : vector<8x64xf32>, vector<64x256xf32>, vector<8x256xf32> -> vector<8x256xf32>
    %19 = arith.addf %17, %18 : vector<8x256xf32>
    %20 = vector.extract_strided_slice %19 {offsets = [0, 0], sizes = [8, 64], strides = [1, 1]} : vector<8x256xf32> to vector<8x64xf32>
    %21 = arith.negf %20 : vector<8x64xf32>
    %22 = math.exp %21 : vector<8x64xf32>
    %cst_22 = arith.constant 1.000000e+00 : f32
    %23 = vector.broadcast %cst_22 : f32 to vector<8x64xf32>
    %24 = arith.addf %23, %22 : vector<8x64xf32>
    %25 = arith.divf %23, %24 : vector<8x64xf32>
    %26 = vector.extract_strided_slice %19 {offsets = [0, 64], sizes = [8, 64], strides = [1, 1]} : vector<8x256xf32> to vector<8x64xf32>
    %27 = arith.negf %26 : vector<8x64xf32>
    %28 = math.exp %27 : vector<8x64xf32>
    %cst_23 = arith.constant 1.000000e+00 : f32
    %29 = vector.broadcast %cst_23 : f32 to vector<8x64xf32>
    %30 = arith.addf %29, %28 : vector<8x64xf32>
    %31 = arith.divf %29, %30 : vector<8x64xf32>
    %32 = vector.extract_strided_slice %19 {offsets = [0, 128], sizes = [8, 64], strides = [1, 1]} : vector<8x256xf32> to vector<8x64xf32>
    %33 = math.tanh %32 : vector<8x64xf32>
    %34 = vector.extract_strided_slice %19 {offsets = [0, 192], sizes = [8, 64], strides = [1, 1]} : vector<8x256xf32> to vector<8x64xf32>
    %35 = arith.negf %34 : vector<8x64xf32>
    %36 = math.exp %35 : vector<8x64xf32>
    %cst_24 = arith.constant 1.000000e+00 : f32
    %37 = vector.broadcast %cst_24 : f32 to vector<8x64xf32>
    %38 = arith.addf %37, %36 : vector<8x64xf32>
    %39 = arith.divf %37, %38 : vector<8x64xf32>
    %40 = arith.mulf %31, %14 : vector<8x64xf32>
    %41 = arith.mulf %25, %33 : vector<8x64xf32>
    %42 = arith.addf %40, %41 : vector<8x64xf32>
    %43 = math.tanh %42 : vector<8x64xf32>
    %44 = arith.mulf %39, %43 : vector<8x64xf32>
    %45 = vector.extract_strided_slice %44 {offsets = [0, 0], sizes = [8, 32], strides = [1, 1]} : vector<8x64xf32> to vector<8x32xf32>
    %c0_25 = arith.constant 0 : index
    %c0_26 = arith.constant 0 : index
    %46 = vector.load %arg18[%c0_25, %c0_26] : memref<64x64xf32, #tpu.memory_space<vmem>>, vector<8x32xf32>
    tpu.vector_store %arg18[%c0_25, %c0_26], %45 {strides = array<i32>} : memref<64x64xf32, #tpu.memory_space<vmem>>, vector<8x32xf32>,
    %47 = vector.extract_strided_slice %44 {offsets = [0, 32], sizes = [8, 32], strides = [1, 1]} : vector<8x64xf32> to vector<8x32xf32>
    %c56_27 = arith.constant 56 : index
    %c32 = arith.constant 32 : index
    %48 = vector.load %arg18[%c56_27, %c32] : memref<64x64xf32, #tpu.memory_space<vmem>>, vector<8x32xf32>
    tpu.vector_store %arg18[%c56_27, %c32], %47 {strides = array<i32>} : memref<64x64xf32, #tpu.memory_space<vmem>>, vector<8x32xf32>,
    %c8 = arith.constant 8 : index
    %c0_28 = arith.constant 0 : index
    %49 = vector.load %arg17[%c8, %c0_28] : memref<64x256xf32, #tpu.memory_space<vmem>>, vector<8x256xf32>
    %c48 = arith.constant 48 : index
    %c0_29 = arith.constant 0 : index
    %50 = vector.load %arg17[%c48, %c0_29] : memref<64x256xf32, #tpu.memory_space<vmem>>, vector<8x256xf32>
    %51 = arith.select %2, %49, %50 : vector<8x256xi1>, vector<8x256xf32>
    %cst_30 = arith.constant dense<0.000000e+00> : vector<8x256xf32>
    %52 = tpu.matmul %44, %10, %cst_30 {dimension_numbers = #tpu.dot_dimension_numbers<[1], [0], [0], [1], [0, 0, 1, 1], [], []>} : vector<8x64xf32>, vector<64x256xf32>, vector<8x256xf32> -> vector<8x256xf32>
    %53 = arith.addf %51, %52 : vector<8x256xf32>
    %54 = vector.extract_strided_slice %53 {offsets = [0, 0], sizes = [8, 64], strides = [1, 1]} : vector<8x256xf32> to vector<8x64xf32>
    %55 = arith.negf %54 : vector<8x64xf32>
    %56 = math.exp %55 : vector<8x64xf32>
    %cst_31 = arith.constant 1.000000e+00 : f32
    %57 = vector.broadcast %cst_31 : f32 to vector<8x64xf32>
    %58 = arith.addf %57, %56 : vector<8x64xf32>
    %59 = arith.divf %57, %58 : vector<8x64xf32>
    %60 = vector.extract_strided_slice %53 {offsets = [0, 64], sizes = [8, 64], strides = [1, 1]} : vector<8x256xf32> to vector<8x64xf32>
    %61 = arith.negf %60 : vector<8x64xf32>
    %62 = math.exp %61 : vector<8x64xf32>
    %cst_32 = arith.constant 1.000000e+00 : f32
    %63 = vector.broadcast %cst_32 : f32 to vector<8x64xf32>
    %64 = arith.addf %63, %62 : vector<8x64xf32>
    %65 = arith.divf %63, %64 : vector<8x64xf32>
    %66 = vector.extract_strided_slice %53 {offsets = [0, 128], sizes = [8, 64], strides = [1, 1]} : vector<8x256xf32> to vector<8x64xf32>
    %67 = math.tanh %66 : vector<8x64xf32>
    %68 = vector.extract_strided_slice %53 {offsets = [0, 192], sizes = [8, 64], strides = [1, 1]} : vector<8x256xf32> to vector<8x64xf32>
    %69 = arith.negf %68 : vector<8x64xf32>
    %70 = math.exp %69 : vector<8x64xf32>
    %cst_33 = arith.constant 1.000000e+00 : f32
    %71 = vector.broadcast %cst_33 : f32 to vector<8x64xf32>
    %72 = arith.addf %71, %70 : vector<8x64xf32>
    %73 = arith.divf %71, %72 : vector<8x64xf32>
    %74 = arith.mulf %65, %42 : vector<8x64xf32>
    %75 = arith.mulf %59, %67 : vector<8x64xf32>
    %76 = arith.addf %74, %75 : vector<8x64xf32>
    %77 = math.tanh %76 : vector<8x64xf32>
    %78 = arith.mulf %73, %77 : vector<8x64xf32>
    %79 = vector.extract_strided_slice %78 {offsets = [0, 0], sizes = [8, 32], strides = [1, 1]} : vector<8x64xf32> to vector<8x32xf32>
    %c8_34 = arith.constant 8 : index
    %c0_35 = arith.constant 0 : index
    %80 = vector.load %arg18[%c8_34, %c0_35] : memref<64x64xf32, #tpu.memory_space<vmem>>, vector<8x32xf32>
    tpu.vector_store %arg18[%c8_34, %c0_35], %79 {strides = array<i32>} : memref<64x64xf32, #tpu.memory_space<vmem>>, vector<8x32xf32>,
    %81 = vector.extract_strided_slice %78 {offsets = [0, 32], sizes = [8, 32], strides = [1, 1]} : vector<8x64xf32> to vector<8x32xf32>
    %c48_36 = arith.constant 48 : index
    %c32_37 = arith.constant 32 : index
    %82 = vector.load %arg18[%c48_36, %c32_37] : memref<64x64xf32, #tpu.memory_space<vmem>>, vector<8x32xf32>
    tpu.vector_store %arg18[%c48_36, %c32_37], %81 {strides = array<i32>} : memref<64x64xf32, #tpu.memory_space<vmem>>, vector<8x32xf32>,
    %c16 = arith.constant 16 : index
    %c0_38 = arith.constant 0 : index
    %83 = vector.load %arg17[%c16, %c0_38] : memref<64x256xf32, #tpu.memory_space<vmem>>, vector<8x256xf32>
    %c40 = arith.constant 40 : index
    %c0_39 = arith.constant 0 : index
    %84 = vector.load %arg17[%c40, %c0_39] : memref<64x256xf32, #tpu.memory_space<vmem>>, vector<8x256xf32>
    %85 = arith.select %2, %83, %84 : vector<8x256xi1>, vector<8x256xf32>
    %cst_40 = arith.constant dense<0.000000e+00> : vector<8x256xf32>
    %86 = tpu.matmul %78, %10, %cst_40 {dimension_numbers = #tpu.dot_dimension_numbers<[1], [0], [0], [1], [0, 0, 1, 1], [], []>} : vector<8x64xf32>, vector<64x256xf32>, vector<8x256xf32> -> vector<8x256xf32>
    %87 = arith.addf %85, %86 : vector<8x256xf32>
    %88 = vector.extract_strided_slice %87 {offsets = [0, 0], sizes = [8, 64], strides = [1, 1]} : vector<8x256xf32> to vector<8x64xf32>
    %89 = arith.negf %88 : vector<8x64xf32>
    %90 = math.exp %89 : vector<8x64xf32>
    %cst_41 = arith.constant 1.000000e+00 : f32
    %91 = vector.broadcast %cst_41 : f32 to vector<8x64xf32>
    %92 = arith.addf %91, %90 : vector<8x64xf32>
    %93 = arith.divf %91, %92 : vector<8x64xf32>
    %94 = vector.extract_strided_slice %87 {offsets = [0, 64], sizes = [8, 64], strides = [1, 1]} : vector<8x256xf32> to vector<8x64xf32>
    %95 = arith.negf %94 : vector<8x64xf32>
    %96 = math.exp %95 : vector<8x64xf32>
    %cst_42 = arith.constant 1.000000e+00 : f32
    %97 = vector.broadcast %cst_42 : f32 to vector<8x64xf32>
    %98 = arith.addf %97, %96 : vector<8x64xf32>
    %99 = arith.divf %97, %98 : vector<8x64xf32>
    %100 = vector.extract_strided_slice %87 {offsets = [0, 128], sizes = [8, 64], strides = [1, 1]} : vector<8x256xf32> to vector<8x64xf32>
    %101 = math.tanh %100 : vector<8x64xf32>
    %102 = vector.extract_strided_slice %87 {offsets = [0, 192], sizes = [8, 64], strides = [1, 1]} : vector<8x256xf32> to vector<8x64xf32>
    %103 = arith.negf %102 : vector<8x64xf32>
    %104 = math.exp %103 : vector<8x64xf32>
    %cst_43 = arith.constant 1.000000e+00 : f32
    %105 = vector.broadcast %cst_43 : f32 to vector<8x64xf32>
    %106 = arith.addf %105, %104 : vector<8x64xf32>
    %107 = arith.divf %105, %106 : vector<8x64xf32>
    %108 = arith.mulf %99, %76 : vector<8x64xf32>
    %109 = arith.mulf %93, %101 : vector<8x64xf32>
    %110 = arith.addf %108, %109 : vector<8x64xf32>
    %111 = math.tanh %110 : vector<8x64xf32>
    %112 = arith.mulf %107, %111 : vector<8x64xf32>
    %113 = vector.extract_strided_slice %112 {offsets = [0, 0], sizes = [8, 32], strides = [1, 1]} : vector<8x64xf32> to vector<8x32xf32>
    %c16_44 = arith.constant 16 : index
    %c0_45 = arith.constant 0 : index
    %114 = vector.load %arg18[%c16_44, %c0_45] : memref<64x64xf32, #tpu.memory_space<vmem>>, vector<8x32xf32>
    tpu.vector_store %arg18[%c16_44, %c0_45], %113 {strides = array<i32>} : memref<64x64xf32, #tpu.memory_space<vmem>>, vector<8x32xf32>,
    %115 = vector.extract_strided_slice %112 {offsets = [0, 32], sizes = [8, 32], strides = [1, 1]} : vector<8x64xf32> to vector<8x32xf32>
    %c40_46 = arith.constant 40 : index
    %c32_47 = arith.constant 32 : index
    %116 = vector.load %arg18[%c40_46, %c32_47] : memref<64x64xf32, #tpu.memory_space<vmem>>, vector<8x32xf32>
    tpu.vector_store %arg18[%c40_46, %c32_47], %115 {strides = array<i32>} : memref<64x64xf32, #tpu.memory_space<vmem>>, vector<8x32xf32>,
    %c24 = arith.constant 24 : index
    %c0_48 = arith.constant 0 : index
    %117 = vector.load %arg17[%c24, %c0_48] : memref<64x256xf32, #tpu.memory_space<vmem>>, vector<8x256xf32>
    %c32_49 = arith.constant 32 : index
    %c0_50 = arith.constant 0 : index
    %118 = vector.load %arg17[%c32_49, %c0_50] : memref<64x256xf32, #tpu.memory_space<vmem>>, vector<8x256xf32>
    %119 = arith.select %2, %117, %118 : vector<8x256xi1>, vector<8x256xf32>
    %cst_51 = arith.constant dense<0.000000e+00> : vector<8x256xf32>
    %120 = tpu.matmul %112, %10, %cst_51 {dimension_numbers = #tpu.dot_dimension_numbers<[1], [0], [0], [1], [0, 0, 1, 1], [], []>} : vector<8x64xf32>, vector<64x256xf32>, vector<8x256xf32> -> vector<8x256xf32>
    %121 = arith.addf %119, %120 : vector<8x256xf32>
    %122 = vector.extract_strided_slice %121 {offsets = [0, 0], sizes = [8, 64], strides = [1, 1]} : vector<8x256xf32> to vector<8x64xf32>
    %123 = arith.negf %122 : vector<8x64xf32>
    %124 = math.exp %123 : vector<8x64xf32>
    %cst_52 = arith.constant 1.000000e+00 : f32
    %125 = vector.broadcast %cst_52 : f32 to vector<8x64xf32>
    %126 = arith.addf %125, %124 : vector<8x64xf32>
    %127 = arith.divf %125, %126 : vector<8x64xf32>
    %128 = vector.extract_strided_slice %121 {offsets = [0, 64], sizes = [8, 64], strides = [1, 1]} : vector<8x256xf32> to vector<8x64xf32>
    %129 = arith.negf %128 : vector<8x64xf32>
    %130 = math.exp %129 : vector<8x64xf32>
    %cst_53 = arith.constant 1.000000e+00 : f32
    %131 = vector.broadcast %cst_53 : f32 to vector<8x64xf32>
    %132 = arith.addf %131, %130 : vector<8x64xf32>
    %133 = arith.divf %131, %132 : vector<8x64xf32>
    %134 = vector.extract_strided_slice %121 {offsets = [0, 128], sizes = [8, 64], strides = [1, 1]} : vector<8x256xf32> to vector<8x64xf32>
    %135 = math.tanh %134 : vector<8x64xf32>
    %136 = vector.extract_strided_slice %121 {offsets = [0, 192], sizes = [8, 64], strides = [1, 1]} : vector<8x256xf32> to vector<8x64xf32>
    %137 = arith.negf %136 : vector<8x64xf32>
    %138 = math.exp %137 : vector<8x64xf32>
    %cst_54 = arith.constant 1.000000e+00 : f32
    %139 = vector.broadcast %cst_54 : f32 to vector<8x64xf32>
    %140 = arith.addf %139, %138 : vector<8x64xf32>
    %141 = arith.divf %139, %140 : vector<8x64xf32>
    %142 = arith.mulf %133, %110 : vector<8x64xf32>
    %143 = arith.mulf %127, %135 : vector<8x64xf32>
    %144 = arith.addf %142, %143 : vector<8x64xf32>
    %145 = math.tanh %144 : vector<8x64xf32>
    %146 = arith.mulf %141, %145 : vector<8x64xf32>
    %147 = vector.extract_strided_slice %146 {offsets = [0, 0], sizes = [8, 32], strides = [1, 1]} : vector<8x64xf32> to vector<8x32xf32>
    %c24_55 = arith.constant 24 : index
    %c0_56 = arith.constant 0 : index
    %148 = vector.load %arg18[%c24_55, %c0_56] : memref<64x64xf32, #tpu.memory_space<vmem>>, vector<8x32xf32>
    tpu.vector_store %arg18[%c24_55, %c0_56], %147 {strides = array<i32>} : memref<64x64xf32, #tpu.memory_space<vmem>>, vector<8x32xf32>,
    %149 = vector.extract_strided_slice %146 {offsets = [0, 32], sizes = [8, 32], strides = [1, 1]} : vector<8x64xf32> to vector<8x32xf32>
    %c32_57 = arith.constant 32 : index
    %c32_58 = arith.constant 32 : index
    %150 = vector.load %arg18[%c32_57, %c32_58] : memref<64x64xf32, #tpu.memory_space<vmem>>, vector<8x32xf32>
    tpu.vector_store %arg18[%c32_57, %c32_58], %149 {strides = array<i32>} : memref<64x64xf32, #tpu.memory_space<vmem>>, vector<8x32xf32>,
    %c32_59 = arith.constant 32 : index
    %c0_60 = arith.constant 0 : index
    %151 = vector.load %arg17[%c32_59, %c0_60] : memref<64x256xf32, #tpu.memory_space<vmem>>, vector<8x256xf32>
    %c24_61 = arith.constant 24 : index
    %c0_62 = arith.constant 0 : index
    %152 = vector.load %arg17[%c24_61, %c0_62] : memref<64x256xf32, #tpu.memory_space<vmem>>, vector<8x256xf32>
    %153 = arith.select %2, %151, %152 : vector<8x256xi1>, vector<8x256xf32>
    %cst_63 = arith.constant dense<0.000000e+00> : vector<8x256xf32>
    %154 = tpu.matmul %146, %10, %cst_63 {dimension_numbers = #tpu.dot_dimension_numbers<[1], [0], [0], [1], [0, 0, 1, 1], [], []>} : vector<8x64xf32>, vector<64x256xf32>, vector<8x256xf32> -> vector<8x256xf32>
    %155 = arith.addf %153, %154 : vector<8x256xf32>
    %156 = vector.extract_strided_slice %155 {offsets = [0, 0], sizes = [8, 64], strides = [1, 1]} : vector<8x256xf32> to vector<8x64xf32>
    %157 = arith.negf %156 : vector<8x64xf32>
    %158 = math.exp %157 : vector<8x64xf32>
    %cst_64 = arith.constant 1.000000e+00 : f32
    %159 = vector.broadcast %cst_64 : f32 to vector<8x64xf32>
    %160 = arith.addf %159, %158 : vector<8x64xf32>
    %161 = arith.divf %159, %160 : vector<8x64xf32>
    %162 = vector.extract_strided_slice %155 {offsets = [0, 64], sizes = [8, 64], strides = [1, 1]} : vector<8x256xf32> to vector<8x64xf32>
    %163 = arith.negf %162 : vector<8x64xf32>
    %164 = math.exp %163 : vector<8x64xf32>
    %cst_65 = arith.constant 1.000000e+00 : f32
    %165 = vector.broadcast %cst_65 : f32 to vector<8x64xf32>
    %166 = arith.addf %165, %164 : vector<8x64xf32>
    %167 = arith.divf %165, %166 : vector<8x64xf32>
    %168 = vector.extract_strided_slice %155 {offsets = [0, 128], sizes = [8, 64], strides = [1, 1]} : vector<8x256xf32> to vector<8x64xf32>
    %169 = math.tanh %168 : vector<8x64xf32>
    %170 = vector.extract_strided_slice %155 {offsets = [0, 192], sizes = [8, 64], strides = [1, 1]} : vector<8x256xf32> to vector<8x64xf32>
    %171 = arith.negf %170 : vector<8x64xf32>
    %172 = math.exp %171 : vector<8x64xf32>
    %cst_66 = arith.constant 1.000000e+00 : f32
    %173 = vector.broadcast %cst_66 : f32 to vector<8x64xf32>
    %174 = arith.addf %173, %172 : vector<8x64xf32>
    %175 = arith.divf %173, %174 : vector<8x64xf32>
    %176 = arith.mulf %167, %144 : vector<8x64xf32>
    %177 = arith.mulf %161, %169 : vector<8x64xf32>
    %178 = arith.addf %176, %177 : vector<8x64xf32>
    %179 = math.tanh %178 : vector<8x64xf32>
    %180 = arith.mulf %175, %179 : vector<8x64xf32>
    %181 = vector.extract_strided_slice %180 {offsets = [0, 0], sizes = [8, 32], strides = [1, 1]} : vector<8x64xf32> to vector<8x32xf32>
    %c32_67 = arith.constant 32 : index
    %c0_68 = arith.constant 0 : index
    %182 = vector.load %arg18[%c32_67, %c0_68] : memref<64x64xf32, #tpu.memory_space<vmem>>, vector<8x32xf32>
    tpu.vector_store %arg18[%c32_67, %c0_68], %181 {strides = array<i32>} : memref<64x64xf32, #tpu.memory_space<vmem>>, vector<8x32xf32>,
    %183 = vector.extract_strided_slice %180 {offsets = [0, 32], sizes = [8, 32], strides = [1, 1]} : vector<8x64xf32> to vector<8x32xf32>
    %c24_69 = arith.constant 24 : index
    %c32_70 = arith.constant 32 : index
    %184 = vector.load %arg18[%c24_69, %c32_70] : memref<64x64xf32, #tpu.memory_space<vmem>>, vector<8x32xf32>
    tpu.vector_store %arg18[%c24_69, %c32_70], %183 {strides = array<i32>} : memref<64x64xf32, #tpu.memory_space<vmem>>, vector<8x32xf32>,
    %c40_71 = arith.constant 40 : index
    %c0_72 = arith.constant 0 : index
    %185 = vector.load %arg17[%c40_71, %c0_72] : memref<64x256xf32, #tpu.memory_space<vmem>>, vector<8x256xf32>
    %c16_73 = arith.constant 16 : index
    %c0_74 = arith.constant 0 : index
    %186 = vector.load %arg17[%c16_73, %c0_74] : memref<64x256xf32, #tpu.memory_space<vmem>>, vector<8x256xf32>
    %187 = arith.select %2, %185, %186 : vector<8x256xi1>, vector<8x256xf32>
    %cst_75 = arith.constant dense<0.000000e+00> : vector<8x256xf32>
    %188 = tpu.matmul %180, %10, %cst_75 {dimension_numbers = #tpu.dot_dimension_numbers<[1], [0], [0], [1], [0, 0, 1, 1], [], []>} : vector<8x64xf32>, vector<64x256xf32>, vector<8x256xf32> -> vector<8x256xf32>
    %189 = arith.addf %187, %188 : vector<8x256xf32>
    %190 = vector.extract_strided_slice %189 {offsets = [0, 0], sizes = [8, 64], strides = [1, 1]} : vector<8x256xf32> to vector<8x64xf32>
    %191 = arith.negf %190 : vector<8x64xf32>
    %192 = math.exp %191 : vector<8x64xf32>
    %cst_76 = arith.constant 1.000000e+00 : f32
    %193 = vector.broadcast %cst_76 : f32 to vector<8x64xf32>
    %194 = arith.addf %193, %192 : vector<8x64xf32>
    %195 = arith.divf %193, %194 : vector<8x64xf32>
    %196 = vector.extract_strided_slice %189 {offsets = [0, 64], sizes = [8, 64], strides = [1, 1]} : vector<8x256xf32> to vector<8x64xf32>
    %197 = arith.negf %196 : vector<8x64xf32>
    %198 = math.exp %197 : vector<8x64xf32>
    %cst_77 = arith.constant 1.000000e+00 : f32
    %199 = vector.broadcast %cst_77 : f32 to vector<8x64xf32>
    %200 = arith.addf %199, %198 : vector<8x64xf32>
    %201 = arith.divf %199, %200 : vector<8x64xf32>
    %202 = vector.extract_strided_slice %189 {offsets = [0, 128], sizes = [8, 64], strides = [1, 1]} : vector<8x256xf32> to vector<8x64xf32>
    %203 = math.tanh %202 : vector<8x64xf32>
    %204 = vector.extract_strided_slice %189 {offsets = [0, 192], sizes = [8, 64], strides = [1, 1]} : vector<8x256xf32> to vector<8x64xf32>
    %205 = arith.negf %204 : vector<8x64xf32>
    %206 = math.exp %205 : vector<8x64xf32>
    %cst_78 = arith.constant 1.000000e+00 : f32
    %207 = vector.broadcast %cst_78 : f32 to vector<8x64xf32>
    %208 = arith.addf %207, %206 : vector<8x64xf32>
    %209 = arith.divf %207, %208 : vector<8x64xf32>
    %210 = arith.mulf %201, %178 : vector<8x64xf32>
    %211 = arith.mulf %195, %203 : vector<8x64xf32>
    %212 = arith.addf %210, %211 : vector<8x64xf32>
    %213 = math.tanh %212 : vector<8x64xf32>
    %214 = arith.mulf %209, %213 : vector<8x64xf32>
    %215 = vector.extract_strided_slice %214 {offsets = [0, 0], sizes = [8, 32], strides = [1, 1]} : vector<8x64xf32> to vector<8x32xf32>
    %c40_79 = arith.constant 40 : index
    %c0_80 = arith.constant 0 : index
    %216 = vector.load %arg18[%c40_79, %c0_80] : memref<64x64xf32, #tpu.memory_space<vmem>>, vector<8x32xf32>
    tpu.vector_store %arg18[%c40_79, %c0_80], %215 {strides = array<i32>} : memref<64x64xf32, #tpu.memory_space<vmem>>, vector<8x32xf32>,
    %217 = vector.extract_strided_slice %214 {offsets = [0, 32], sizes = [8, 32], strides = [1, 1]} : vector<8x64xf32> to vector<8x32xf32>
    %c16_81 = arith.constant 16 : index
    %c32_82 = arith.constant 32 : index
    %218 = vector.load %arg18[%c16_81, %c32_82] : memref<64x64xf32, #tpu.memory_space<vmem>>, vector<8x32xf32>
    tpu.vector_store %arg18[%c16_81, %c32_82], %217 {strides = array<i32>} : memref<64x64xf32, #tpu.memory_space<vmem>>, vector<8x32xf32>,
    %c48_83 = arith.constant 48 : index
    %c0_84 = arith.constant 0 : index
    %219 = vector.load %arg17[%c48_83, %c0_84] : memref<64x256xf32, #tpu.memory_space<vmem>>, vector<8x256xf32>
    %c8_85 = arith.constant 8 : index
    %c0_86 = arith.constant 0 : index
    %220 = vector.load %arg17[%c8_85, %c0_86] : memref<64x256xf32, #tpu.memory_space<vmem>>, vector<8x256xf32>
    %221 = arith.select %2, %219, %220 : vector<8x256xi1>, vector<8x256xf32>
    %cst_87 = arith.constant dense<0.000000e+00> : vector<8x256xf32>
    %222 = tpu.matmul %214, %10, %cst_87 {dimension_numbers = #tpu.dot_dimension_numbers<[1], [0], [0], [1], [0, 0, 1, 1], [], []>} : vector<8x64xf32>, vector<64x256xf32>, vector<8x256xf32> -> vector<8x256xf32>
    %223 = arith.addf %221, %222 : vector<8x256xf32>
    %224 = vector.extract_strided_slice %223 {offsets = [0, 0], sizes = [8, 64], strides = [1, 1]} : vector<8x256xf32> to vector<8x64xf32>
    %225 = arith.negf %224 : vector<8x64xf32>
    %226 = math.exp %225 : vector<8x64xf32>
    %cst_88 = arith.constant 1.000000e+00 : f32
    %227 = vector.broadcast %cst_88 : f32 to vector<8x64xf32>
    %228 = arith.addf %227, %226 : vector<8x64xf32>
    %229 = arith.divf %227, %228 : vector<8x64xf32>
    %230 = vector.extract_strided_slice %223 {offsets = [0, 64], sizes = [8, 64], strides = [1, 1]} : vector<8x256xf32> to vector<8x64xf32>
    %231 = arith.negf %230 : vector<8x64xf32>
    %232 = math.exp %231 : vector<8x64xf32>
    %cst_89 = arith.constant 1.000000e+00 : f32
    %233 = vector.broadcast %cst_89 : f32 to vector<8x64xf32>
    %234 = arith.addf %233, %232 : vector<8x64xf32>
    %235 = arith.divf %233, %234 : vector<8x64xf32>
    %236 = vector.extract_strided_slice %223 {offsets = [0, 128], sizes = [8, 64], strides = [1, 1]} : vector<8x256xf32> to vector<8x64xf32>
    %237 = math.tanh %236 : vector<8x64xf32>
    %238 = vector.extract_strided_slice %223 {offsets = [0, 192], sizes = [8, 64], strides = [1, 1]} : vector<8x256xf32> to vector<8x64xf32>
    %239 = arith.negf %238 : vector<8x64xf32>
    %240 = math.exp %239 : vector<8x64xf32>
    %cst_90 = arith.constant 1.000000e+00 : f32
    %241 = vector.broadcast %cst_90 : f32 to vector<8x64xf32>
    %242 = arith.addf %241, %240 : vector<8x64xf32>
    %243 = arith.divf %241, %242 : vector<8x64xf32>
    %244 = arith.mulf %235, %212 : vector<8x64xf32>
    %245 = arith.mulf %229, %237 : vector<8x64xf32>
    %246 = arith.addf %244, %245 : vector<8x64xf32>
    %247 = math.tanh %246 : vector<8x64xf32>
    %248 = arith.mulf %243, %247 : vector<8x64xf32>
    %249 = vector.extract_strided_slice %248 {offsets = [0, 0], sizes = [8, 32], strides = [1, 1]} : vector<8x64xf32> to vector<8x32xf32>
    %c48_91 = arith.constant 48 : index
    %c0_92 = arith.constant 0 : index
    %250 = vector.load %arg18[%c48_91, %c0_92] : memref<64x64xf32, #tpu.memory_space<vmem>>, vector<8x32xf32>
    tpu.vector_store %arg18[%c48_91, %c0_92], %249 {strides = array<i32>} : memref<64x64xf32, #tpu.memory_space<vmem>>, vector<8x32xf32>,
    %251 = vector.extract_strided_slice %248 {offsets = [0, 32], sizes = [8, 32], strides = [1, 1]} : vector<8x64xf32> to vector<8x32xf32>
    %c8_93 = arith.constant 8 : index
    %c32_94 = arith.constant 32 : index
    %252 = vector.load %arg18[%c8_93, %c32_94] : memref<64x64xf32, #tpu.memory_space<vmem>>, vector<8x32xf32>
    tpu.vector_store %arg18[%c8_93, %c32_94], %251 {strides = array<i32>} : memref<64x64xf32, #tpu.memory_space<vmem>>, vector<8x32xf32>,
    %c56_95 = arith.constant 56 : index
    %c0_96 = arith.constant 0 : index
    %253 = vector.load %arg17[%c56_95, %c0_96] : memref<64x256xf32, #tpu.memory_space<vmem>>, vector<8x256xf32>
    %c0_97 = arith.constant 0 : index
    %c0_98 = arith.constant 0 : index
    %254 = vector.load %arg17[%c0_97, %c0_98] : memref<64x256xf32, #tpu.memory_space<vmem>>, vector<8x256xf32>
    %255 = arith.select %2, %253, %254 : vector<8x256xi1>, vector<8x256xf32>
    %cst_99 = arith.constant dense<0.000000e+00> : vector<8x256xf32>
    %256 = tpu.matmul %248, %10, %cst_99 {dimension_numbers = #tpu.dot_dimension_numbers<[1], [0], [0], [1], [0, 0, 1, 1], [], []>} : vector<8x64xf32>, vector<64x256xf32>, vector<8x256xf32> -> vector<8x256xf32>
    %257 = arith.addf %255, %256 : vector<8x256xf32>
    %258 = vector.extract_strided_slice %257 {offsets = [0, 0], sizes = [8, 64], strides = [1, 1]} : vector<8x256xf32> to vector<8x64xf32>
    %259 = arith.negf %258 : vector<8x64xf32>
    %260 = math.exp %259 : vector<8x64xf32>
    %cst_100 = arith.constant 1.000000e+00 : f32
    %261 = vector.broadcast %cst_100 : f32 to vector<8x64xf32>
    %262 = arith.addf %261, %260 : vector<8x64xf32>
    %263 = arith.divf %261, %262 : vector<8x64xf32>
    %264 = vector.extract_strided_slice %257 {offsets = [0, 64], sizes = [8, 64], strides = [1, 1]} : vector<8x256xf32> to vector<8x64xf32>
    %265 = arith.negf %264 : vector<8x64xf32>
    %266 = math.exp %265 : vector<8x64xf32>
    %cst_101 = arith.constant 1.000000e+00 : f32
    %267 = vector.broadcast %cst_101 : f32 to vector<8x64xf32>
    %268 = arith.addf %267, %266 : vector<8x64xf32>
    %269 = arith.divf %267, %268 : vector<8x64xf32>
    %270 = vector.extract_strided_slice %257 {offsets = [0, 128], sizes = [8, 64], strides = [1, 1]} : vector<8x256xf32> to vector<8x64xf32>
    %271 = math.tanh %270 : vector<8x64xf32>
    %272 = vector.extract_strided_slice %257 {offsets = [0, 192], sizes = [8, 64], strides = [1, 1]} : vector<8x256xf32> to vector<8x64xf32>
    %273 = arith.negf %272 : vector<8x64xf32>
    %274 = math.exp %273 : vector<8x64xf32>
    %cst_102 = arith.constant 1.000000e+00 : f32
    %275 = vector.broadcast %cst_102 : f32 to vector<8x64xf32>
    %276 = arith.addf %275, %274 : vector<8x64xf32>
    %277 = arith.divf %275, %276 : vector<8x64xf32>
    %278 = arith.mulf %269, %246 : vector<8x64xf32>
    %279 = arith.mulf %263, %271 : vector<8x64xf32>
    %280 = arith.addf %278, %279 : vector<8x64xf32>
    %281 = math.tanh %280 : vector<8x64xf32>
    %282 = arith.mulf %277, %281 : vector<8x64xf32>
    %283 = vector.extract_strided_slice %282 {offsets = [0, 0], sizes = [8, 32], strides = [1, 1]} : vector<8x64xf32> to vector<8x32xf32>
    %c56_103 = arith.constant 56 : index
    %c0_104 = arith.constant 0 : index
    %284 = vector.load %arg18[%c56_103, %c0_104] : memref<64x64xf32, #tpu.memory_space<vmem>>, vector<8x32xf32>
    tpu.vector_store %arg18[%c56_103, %c0_104], %283 {strides = array<i32>} : memref<64x64xf32, #tpu.memory_space<vmem>>, vector<8x32xf32>,
    %285 = vector.extract_strided_slice %282 {offsets = [0, 32], sizes = [8, 32], strides = [1, 1]} : vector<8x64xf32> to vector<8x32xf32>
    %c0_105 = arith.constant 0 : index
    %c32_106 = arith.constant 32 : index
    %286 = vector.load %arg18[%c0_105, %c32_106] : memref<64x64xf32, #tpu.memory_space<vmem>>, vector<8x32xf32>
    tpu.vector_store %arg18[%c0_105, %c32_106], %285 {strides = array<i32>} : memref<64x64xf32, #tpu.memory_space<vmem>>, vector<8x32xf32>,
    %c0_107 = arith.constant 0 : index
    %c0_108 = arith.constant 0 : index
    %c0_109 = arith.constant 0 : index
    %287 = vector.load %arg15[%c0_107, %c0_108, %c0_109] : memref<2x8x64xf32, #tpu.memory_space<vmem>>, vector<1x8x64xf32>
    %288 = vector.shape_cast %287 : vector<1x8x64xf32> to vector<8x64xf32>
    %289 = vector.shape_cast %282 : vector<8x64xf32> to vector<1x8x64xf32>
    tpu.vector_store %arg15[%c0_107, %c0_108, %c0_109], %289 {strides = array<i32>} : memref<2x8x64xf32, #tpu.memory_space<vmem>>, vector<1x8x64xf32>,
    %c0_110 = arith.constant 0 : index
    %c0_111 = arith.constant 0 : index
    %c0_112 = arith.constant 0 : index
    %290 = vector.load %arg16[%c0_110, %c0_111, %c0_112] : memref<2x8x64xf32, #tpu.memory_space<vmem>>, vector<1x8x64xf32>
    %291 = vector.shape_cast %290 : vector<1x8x64xf32> to vector<8x64xf32>
    %292 = vector.shape_cast %280 : vector<8x64xf32> to vector<1x8x64xf32>
    tpu.vector_store %arg16[%c0_110, %c0_111, %c0_112], %292 {strides = array<i32>} : memref<2x8x64xf32, #tpu.memory_space<vmem>>, vector<1x8x64xf32>,
    %c0_113 = arith.constant 0 : index
    %c0_114 = arith.constant 0 : index
    %293 = vector.load %arg18[%c0_113, %c0_114] : memref<64x64xf32, #tpu.memory_space<vmem>>, vector<64x64xf32>
    %c0_115 = arith.constant 0 : index
    %c0_116 = arith.constant 0 : index
    %294 = vector.load %arg7[%c0_115, %c0_116] : memref<64x256xf32, #tpu.memory_space<vmem>>, vector<64x256xf32>
    %cst_117 = arith.constant dense<0.000000e+00> : vector<64x256xf32>
    %295 = tpu.matmul %293, %294, %cst_117 {dimension_numbers = #tpu.dot_dimension_numbers<[1], [0], [0], [1], [0, 0, 1, 1], [], []>} : vector<64x64xf32>, vector<64x256xf32>, vector<64x256xf32> -> vector<64x256xf32>
    %c0_118 = arith.constant 0 : index
    %c0_119 = arith.constant 0 : index
    %296 = vector.load %arg9[%c0_118, %c0_119] : memref<1x256xf32, #tpu.memory_space<vmem>>, vector<1x256xf32>
    %297 = vector.broadcast %296 : vector<1x256xf32> to vector<64x256xf32>
    %298 = arith.addf %295, %297 : vector<64x256xf32>
    %c0_120 = arith.constant 0 : index
    %c0_121 = arith.constant 0 : index
    %299 = vector.load %arg17[%c0_120, %c0_121] : memref<64x256xf32, #tpu.memory_space<vmem>>, vector<64x256xf32>
    tpu.vector_store %arg17[%c0_120, %c0_121], %298 {strides = array<i32>} : memref<64x256xf32, #tpu.memory_space<vmem>>, vector<64x256xf32>,
    %c0_122 = arith.constant 0 : index
    %c0_123 = arith.constant 0 : index
    %300 = vector.load %arg8[%c0_122, %c0_123] : memref<64x256xf32, #tpu.memory_space<vmem>>, vector<64x256xf32>
    %c1 = arith.constant 1 : index
    %c0_124 = arith.constant 0 : index
    %c0_125 = arith.constant 0 : index
    %301 = vector.load %arg1[%c1, %c0_124, %c0_125] : memref<2x8x64xf32, #tpu.memory_space<vmem>>, vector<1x8x64xf32>
    %302 = vector.shape_cast %301 : vector<1x8x64xf32> to vector<8x64xf32>
    %c1_126 = arith.constant 1 : index
    %c0_127 = arith.constant 0 : index
    %c0_128 = arith.constant 0 : index
    %303 = vector.load %arg2[%c1_126, %c0_127, %c0_128] : memref<2x8x64xf32, #tpu.memory_space<vmem>>, vector<1x8x64xf32>
    %304 = vector.shape_cast %303 : vector<1x8x64xf32> to vector<8x64xf32>
    %c0_129 = arith.constant 0 : index
    %c0_130 = arith.constant 0 : index
    %305 = vector.load %arg17[%c0_129, %c0_130] : memref<64x256xf32, #tpu.memory_space<vmem>>, vector<8x256xf32>
    %c56_131 = arith.constant 56 : index
    %c0_132 = arith.constant 0 : index
    %306 = vector.load %arg17[%c56_131, %c0_132] : memref<64x256xf32, #tpu.memory_space<vmem>>, vector<8x256xf32>
    %307 = arith.select %2, %305, %306 : vector<8x256xi1>, vector<8x256xf32>
    %cst_133 = arith.constant dense<0.000000e+00> : vector<8x256xf32>
    %308 = tpu.matmul %302, %300, %cst_133 {dimension_numbers = #tpu.dot_dimension_numbers<[1], [0], [0], [1], [0, 0, 1, 1], [], []>} : vector<8x64xf32>, vector<64x256xf32>, vector<8x256xf32> -> vector<8x256xf32>
    %309 = arith.addf %307, %308 : vector<8x256xf32>
    %310 = vector.extract_strided_slice %309 {offsets = [0, 0], sizes = [8, 64], strides = [1, 1]} : vector<8x256xf32> to vector<8x64xf32>
    %311 = arith.negf %310 : vector<8x64xf32>
    %312 = math.exp %311 : vector<8x64xf32>
    %cst_134 = arith.constant 1.000000e+00 : f32
    %313 = vector.broadcast %cst_134 : f32 to vector<8x64xf32>
    %314 = arith.addf %313, %312 : vector<8x64xf32>
    %315 = arith.divf %313, %314 : vector<8x64xf32>
    %316 = vector.extract_strided_slice %309 {offsets = [0, 64], sizes = [8, 64], strides = [1, 1]} : vector<8x256xf32> to vector<8x64xf32>
    %317 = arith.negf %316 : vector<8x64xf32>
    %318 = math.exp %317 : vector<8x64xf32>
    %cst_135 = arith.constant 1.000000e+00 : f32
    %319 = vector.broadcast %cst_135 : f32 to vector<8x64xf32>
    %320 = arith.addf %319, %318 : vector<8x64xf32>
    %321 = arith.divf %319, %320 : vector<8x64xf32>
    %322 = vector.extract_strided_slice %309 {offsets = [0, 128], sizes = [8, 64], strides = [1, 1]} : vector<8x256xf32> to vector<8x64xf32>
    %323 = math.tanh %322 : vector<8x64xf32>
    %324 = vector.extract_strided_slice %309 {offsets = [0, 192], sizes = [8, 64], strides = [1, 1]} : vector<8x256xf32> to vector<8x64xf32>
    %325 = arith.negf %324 : vector<8x64xf32>
    %326 = math.exp %325 : vector<8x64xf32>
    %cst_136 = arith.constant 1.000000e+00 : f32
    %327 = vector.broadcast %cst_136 : f32 to vector<8x64xf32>
    %328 = arith.addf %327, %326 : vector<8x64xf32>
    %329 = arith.divf %327, %328 : vector<8x64xf32>
    %330 = arith.mulf %321, %304 : vector<8x64xf32>
    %331 = arith.mulf %315, %323 : vector<8x64xf32>
    %332 = arith.addf %330, %331 : vector<8x64xf32>
    %333 = math.tanh %332 : vector<8x64xf32>
    %334 = arith.mulf %329, %333 : vector<8x64xf32>
    %335 = vector.extract_strided_slice %334 {offsets = [0, 0], sizes = [8, 32], strides = [1, 1]} : vector<8x64xf32> to vector<8x32xf32>
    %c0_137 = arith.constant 0 : index
    %c0_138 = arith.constant 0 : index
    %336 = vector.load %arg19[%c0_137, %c0_138] : memref<64x64xf32, #tpu.memory_space<vmem>>, vector<8x32xf32>
    tpu.vector_store %arg19[%c0_137, %c0_138], %335 {strides = array<i32>} : memref<64x64xf32, #tpu.memory_space<vmem>>, vector<8x32xf32>,
    %337 = vector.extract_strided_slice %334 {offsets = [0, 32], sizes = [8, 32], strides = [1, 1]} : vector<8x64xf32> to vector<8x32xf32>
    %c56_139 = arith.constant 56 : index
    %c32_140 = arith.constant 32 : index
    %338 = vector.load %arg19[%c56_139, %c32_140] : memref<64x64xf32, #tpu.memory_space<vmem>>, vector<8x32xf32>
    tpu.vector_store %arg19[%c56_139, %c32_140], %337 {strides = array<i32>} : memref<64x64xf32, #tpu.memory_space<vmem>>, vector<8x32xf32>,
    %c8_141 = arith.constant 8 : index
    %c0_142 = arith.constant 0 : index
    %339 = vector.load %arg17[%c8_141, %c0_142] : memref<64x256xf32, #tpu.memory_space<vmem>>, vector<8x256xf32>
    %c48_143 = arith.constant 48 : index
    %c0_144 = arith.constant 0 : index
    %340 = vector.load %arg17[%c48_143, %c0_144] : memref<64x256xf32, #tpu.memory_space<vmem>>, vector<8x256xf32>
    %341 = arith.select %2, %339, %340 : vector<8x256xi1>, vector<8x256xf32>
    %cst_145 = arith.constant dense<0.000000e+00> : vector<8x256xf32>
    %342 = tpu.matmul %334, %300, %cst_145 {dimension_numbers = #tpu.dot_dimension_numbers<[1], [0], [0], [1], [0, 0, 1, 1], [], []>} : vector<8x64xf32>, vector<64x256xf32>, vector<8x256xf32> -> vector<8x256xf32>
    %343 = arith.addf %341, %342 : vector<8x256xf32>
    %344 = vector.extract_strided_slice %343 {offsets = [0, 0], sizes = [8, 64], strides = [1, 1]} : vector<8x256xf32> to vector<8x64xf32>
    %345 = arith.negf %344 : vector<8x64xf32>
    %346 = math.exp %345 : vector<8x64xf32>
    %cst_146 = arith.constant 1.000000e+00 : f32
    %347 = vector.broadcast %cst_146 : f32 to vector<8x64xf32>
    %348 = arith.addf %347, %346 : vector<8x64xf32>
    %349 = arith.divf %347, %348 : vector<8x64xf32>
    %350 = vector.extract_strided_slice %343 {offsets = [0, 64], sizes = [8, 64], strides = [1, 1]} : vector<8x256xf32> to vector<8x64xf32>
    %351 = arith.negf %350 : vector<8x64xf32>
    %352 = math.exp %351 : vector<8x64xf32>
    %cst_147 = arith.constant 1.000000e+00 : f32
    %353 = vector.broadcast %cst_147 : f32 to vector<8x64xf32>
    %354 = arith.addf %353, %352 : vector<8x64xf32>
    %355 = arith.divf %353, %354 : vector<8x64xf32>
    %356 = vector.extract_strided_slice %343 {offsets = [0, 128], sizes = [8, 64], strides = [1, 1]} : vector<8x256xf32> to vector<8x64xf32>
    %357 = math.tanh %356 : vector<8x64xf32>
    %358 = vector.extract_strided_slice %343 {offsets = [0, 192], sizes = [8, 64], strides = [1, 1]} : vector<8x256xf32> to vector<8x64xf32>
    %359 = arith.negf %358 : vector<8x64xf32>
    %360 = math.exp %359 : vector<8x64xf32>
    %cst_148 = arith.constant 1.000000e+00 : f32
    %361 = vector.broadcast %cst_148 : f32 to vector<8x64xf32>
    %362 = arith.addf %361, %360 : vector<8x64xf32>
    %363 = arith.divf %361, %362 : vector<8x64xf32>
    %364 = arith.mulf %355, %332 : vector<8x64xf32>
    %365 = arith.mulf %349, %357 : vector<8x64xf32>
    %366 = arith.addf %364, %365 : vector<8x64xf32>
    %367 = math.tanh %366 : vector<8x64xf32>
    %368 = arith.mulf %363, %367 : vector<8x64xf32>
    %369 = vector.extract_strided_slice %368 {offsets = [0, 0], sizes = [8, 32], strides = [1, 1]} : vector<8x64xf32> to vector<8x32xf32>
    %c8_149 = arith.constant 8 : index
    %c0_150 = arith.constant 0 : index
    %370 = vector.load %arg19[%c8_149, %c0_150] : memref<64x64xf32, #tpu.memory_space<vmem>>, vector<8x32xf32>
    tpu.vector_store %arg19[%c8_149, %c0_150], %369 {strides = array<i32>} : memref<64x64xf32, #tpu.memory_space<vmem>>, vector<8x32xf32>,
    %371 = vector.extract_strided_slice %368 {offsets = [0, 32], sizes = [8, 32], strides = [1, 1]} : vector<8x64xf32> to vector<8x32xf32>
    %c48_151 = arith.constant 48 : index
    %c32_152 = arith.constant 32 : index
    %372 = vector.load %arg19[%c48_151, %c32_152] : memref<64x64xf32, #tpu.memory_space<vmem>>, vector<8x32xf32>
    tpu.vector_store %arg19[%c48_151, %c32_152], %371 {strides = array<i32>} : memref<64x64xf32, #tpu.memory_space<vmem>>, vector<8x32xf32>,
    %c16_153 = arith.constant 16 : index
    %c0_154 = arith.constant 0 : index
    %373 = vector.load %arg17[%c16_153, %c0_154] : memref<64x256xf32, #tpu.memory_space<vmem>>, vector<8x256xf32>
    %c40_155 = arith.constant 40 : index
    %c0_156 = arith.constant 0 : index
    %374 = vector.load %arg17[%c40_155, %c0_156] : memref<64x256xf32, #tpu.memory_space<vmem>>, vector<8x256xf32>
    %375 = arith.select %2, %373, %374 : vector<8x256xi1>, vector<8x256xf32>
    %cst_157 = arith.constant dense<0.000000e+00> : vector<8x256xf32>
    %376 = tpu.matmul %368, %300, %cst_157 {dimension_numbers = #tpu.dot_dimension_numbers<[1], [0], [0], [1], [0, 0, 1, 1], [], []>} : vector<8x64xf32>, vector<64x256xf32>, vector<8x256xf32> -> vector<8x256xf32>
    %377 = arith.addf %375, %376 : vector<8x256xf32>
    %378 = vector.extract_strided_slice %377 {offsets = [0, 0], sizes = [8, 64], strides = [1, 1]} : vector<8x256xf32> to vector<8x64xf32>
    %379 = arith.negf %378 : vector<8x64xf32>
    %380 = math.exp %379 : vector<8x64xf32>
    %cst_158 = arith.constant 1.000000e+00 : f32
    %381 = vector.broadcast %cst_158 : f32 to vector<8x64xf32>
    %382 = arith.addf %381, %380 : vector<8x64xf32>
    %383 = arith.divf %381, %382 : vector<8x64xf32>
    %384 = vector.extract_strided_slice %377 {offsets = [0, 64], sizes = [8, 64], strides = [1, 1]} : vector<8x256xf32> to vector<8x64xf32>
    %385 = arith.negf %384 : vector<8x64xf32>
    %386 = math.exp %385 : vector<8x64xf32>
    %cst_159 = arith.constant 1.000000e+00 : f32
    %387 = vector.broadcast %cst_159 : f32 to vector<8x64xf32>
    %388 = arith.addf %387, %386 : vector<8x64xf32>
    %389 = arith.divf %387, %388 : vector<8x64xf32>
    %390 = vector.extract_strided_slice %377 {offsets = [0, 128], sizes = [8, 64], strides = [1, 1]} : vector<8x256xf32> to vector<8x64xf32>
    %391 = math.tanh %390 : vector<8x64xf32>
    %392 = vector.extract_strided_slice %377 {offsets = [0, 192], sizes = [8, 64], strides = [1, 1]} : vector<8x256xf32> to vector<8x64xf32>
    %393 = arith.negf %392 : vector<8x64xf32>
    %394 = math.exp %393 : vector<8x64xf32>
    %cst_160 = arith.constant 1.000000e+00 : f32
    %395 = vector.broadcast %cst_160 : f32 to vector<8x64xf32>
    %396 = arith.addf %395, %394 : vector<8x64xf32>
    %397 = arith.divf %395, %396 : vector<8x64xf32>
    %398 = arith.mulf %389, %366 : vector<8x64xf32>
    %399 = arith.mulf %383, %391 : vector<8x64xf32>
    %400 = arith.addf %398, %399 : vector<8x64xf32>
    %401 = math.tanh %400 : vector<8x64xf32>
    %402 = arith.mulf %397, %401 : vector<8x64xf32>
    %403 = vector.extract_strided_slice %402 {offsets = [0, 0], sizes = [8, 32], strides = [1, 1]} : vector<8x64xf32> to vector<8x32xf32>
    %c16_161 = arith.constant 16 : index
    %c0_162 = arith.constant 0 : index
    %404 = vector.load %arg19[%c16_161, %c0_162] : memref<64x64xf32, #tpu.memory_space<vmem>>, vector<8x32xf32>
    tpu.vector_store %arg19[%c16_161, %c0_162], %403 {strides = array<i32>} : memref<64x64xf32, #tpu.memory_space<vmem>>, vector<8x32xf32>,
    %405 = vector.extract_strided_slice %402 {offsets = [0, 32], sizes = [8, 32], strides = [1, 1]} : vector<8x64xf32> to vector<8x32xf32>
    %c40_163 = arith.constant 40 : index
    %c32_164 = arith.constant 32 : index
    %406 = vector.load %arg19[%c40_163, %c32_164] : memref<64x64xf32, #tpu.memory_space<vmem>>, vector<8x32xf32>
    tpu.vector_store %arg19[%c40_163, %c32_164], %405 {strides = array<i32>} : memref<64x64xf32, #tpu.memory_space<vmem>>, vector<8x32xf32>,
    %c24_165 = arith.constant 24 : index
    %c0_166 = arith.constant 0 : index
    %407 = vector.load %arg17[%c24_165, %c0_166] : memref<64x256xf32, #tpu.memory_space<vmem>>, vector<8x256xf32>
    %c32_167 = arith.constant 32 : index
    %c0_168 = arith.constant 0 : index
    %408 = vector.load %arg17[%c32_167, %c0_168] : memref<64x256xf32, #tpu.memory_space<vmem>>, vector<8x256xf32>
    %409 = arith.select %2, %407, %408 : vector<8x256xi1>, vector<8x256xf32>
    %cst_169 = arith.constant dense<0.000000e+00> : vector<8x256xf32>
    %410 = tpu.matmul %402, %300, %cst_169 {dimension_numbers = #tpu.dot_dimension_numbers<[1], [0], [0], [1], [0, 0, 1, 1], [], []>} : vector<8x64xf32>, vector<64x256xf32>, vector<8x256xf32> -> vector<8x256xf32>
    %411 = arith.addf %409, %410 : vector<8x256xf32>
    %412 = vector.extract_strided_slice %411 {offsets = [0, 0], sizes = [8, 64], strides = [1, 1]} : vector<8x256xf32> to vector<8x64xf32>
    %413 = arith.negf %412 : vector<8x64xf32>
    %414 = math.exp %413 : vector<8x64xf32>
    %cst_170 = arith.constant 1.000000e+00 : f32
    %415 = vector.broadcast %cst_170 : f32 to vector<8x64xf32>
    %416 = arith.addf %415, %414 : vector<8x64xf32>
    %417 = arith.divf %415, %416 : vector<8x64xf32>
    %418 = vector.extract_strided_slice %411 {offsets = [0, 64], sizes = [8, 64], strides = [1, 1]} : vector<8x256xf32> to vector<8x64xf32>
    %419 = arith.negf %418 : vector<8x64xf32>
    %420 = math.exp %419 : vector<8x64xf32>
    %cst_171 = arith.constant 1.000000e+00 : f32
    %421 = vector.broadcast %cst_171 : f32 to vector<8x64xf32>
    %422 = arith.addf %421, %420 : vector<8x64xf32>
    %423 = arith.divf %421, %422 : vector<8x64xf32>
    %424 = vector.extract_strided_slice %411 {offsets = [0, 128], sizes = [8, 64], strides = [1, 1]} : vector<8x256xf32> to vector<8x64xf32>
    %425 = math.tanh %424 : vector<8x64xf32>
    %426 = vector.extract_strided_slice %411 {offsets = [0, 192], sizes = [8, 64], strides = [1, 1]} : vector<8x256xf32> to vector<8x64xf32>
    %427 = arith.negf %426 : vector<8x64xf32>
    %428 = math.exp %427 : vector<8x64xf32>
    %cst_172 = arith.constant 1.000000e+00 : f32
    %429 = vector.broadcast %cst_172 : f32 to vector<8x64xf32>
    %430 = arith.addf %429, %428 : vector<8x64xf32>
    %431 = arith.divf %429, %430 : vector<8x64xf32>
    %432 = arith.mulf %423, %400 : vector<8x64xf32>
    %433 = arith.mulf %417, %425 : vector<8x64xf32>
    %434 = arith.addf %432, %433 : vector<8x64xf32>
    %435 = math.tanh %434 : vector<8x64xf32>
    %436 = arith.mulf %431, %435 : vector<8x64xf32>
    %437 = vector.extract_strided_slice %436 {offsets = [0, 0], sizes = [8, 32], strides = [1, 1]} : vector<8x64xf32> to vector<8x32xf32>
    %c24_173 = arith.constant 24 : index
    %c0_174 = arith.constant 0 : index
    %438 = vector.load %arg19[%c24_173, %c0_174] : memref<64x64xf32, #tpu.memory_space<vmem>>, vector<8x32xf32>
    tpu.vector_store %arg19[%c24_173, %c0_174], %437 {strides = array<i32>} : memref<64x64xf32, #tpu.memory_space<vmem>>, vector<8x32xf32>,
    %439 = vector.extract_strided_slice %436 {offsets = [0, 32], sizes = [8, 32], strides = [1, 1]} : vector<8x64xf32> to vector<8x32xf32>
    %c32_175 = arith.constant 32 : index
    %c32_176 = arith.constant 32 : index
    %440 = vector.load %arg19[%c32_175, %c32_176] : memref<64x64xf32, #tpu.memory_space<vmem>>, vector<8x32xf32>
    tpu.vector_store %arg19[%c32_175, %c32_176], %439 {strides = array<i32>} : memref<64x64xf32, #tpu.memory_space<vmem>>, vector<8x32xf32>,
    %c32_177 = arith.constant 32 : index
    %c0_178 = arith.constant 0 : index
    %441 = vector.load %arg17[%c32_177, %c0_178] : memref<64x256xf32, #tpu.memory_space<vmem>>, vector<8x256xf32>
    %c24_179 = arith.constant 24 : index
    %c0_180 = arith.constant 0 : index
    %442 = vector.load %arg17[%c24_179, %c0_180] : memref<64x256xf32, #tpu.memory_space<vmem>>, vector<8x256xf32>
    %443 = arith.select %2, %441, %442 : vector<8x256xi1>, vector<8x256xf32>
    %cst_181 = arith.constant dense<0.000000e+00> : vector<8x256xf32>
    %444 = tpu.matmul %436, %300, %cst_181 {dimension_numbers = #tpu.dot_dimension_numbers<[1], [0], [0], [1], [0, 0, 1, 1], [], []>} : vector<8x64xf32>, vector<64x256xf32>, vector<8x256xf32> -> vector<8x256xf32>
    %445 = arith.addf %443, %444 : vector<8x256xf32>
    %446 = vector.extract_strided_slice %445 {offsets = [0, 0], sizes = [8, 64], strides = [1, 1]} : vector<8x256xf32> to vector<8x64xf32>
    %447 = arith.negf %446 : vector<8x64xf32>
    %448 = math.exp %447 : vector<8x64xf32>
    %cst_182 = arith.constant 1.000000e+00 : f32
    %449 = vector.broadcast %cst_182 : f32 to vector<8x64xf32>
    %450 = arith.addf %449, %448 : vector<8x64xf32>
    %451 = arith.divf %449, %450 : vector<8x64xf32>
    %452 = vector.extract_strided_slice %445 {offsets = [0, 64], sizes = [8, 64], strides = [1, 1]} : vector<8x256xf32> to vector<8x64xf32>
    %453 = arith.negf %452 : vector<8x64xf32>
    %454 = math.exp %453 : vector<8x64xf32>
    %cst_183 = arith.constant 1.000000e+00 : f32
    %455 = vector.broadcast %cst_183 : f32 to vector<8x64xf32>
    %456 = arith.addf %455, %454 : vector<8x64xf32>
    %457 = arith.divf %455, %456 : vector<8x64xf32>
    %458 = vector.extract_strided_slice %445 {offsets = [0, 128], sizes = [8, 64], strides = [1, 1]} : vector<8x256xf32> to vector<8x64xf32>
    %459 = math.tanh %458 : vector<8x64xf32>
    %460 = vector.extract_strided_slice %445 {offsets = [0, 192], sizes = [8, 64], strides = [1, 1]} : vector<8x256xf32> to vector<8x64xf32>
    %461 = arith.negf %460 : vector<8x64xf32>
    %462 = math.exp %461 : vector<8x64xf32>
    %cst_184 = arith.constant 1.000000e+00 : f32
    %463 = vector.broadcast %cst_184 : f32 to vector<8x64xf32>
    %464 = arith.addf %463, %462 : vector<8x64xf32>
    %465 = arith.divf %463, %464 : vector<8x64xf32>
    %466 = arith.mulf %457, %434 : vector<8x64xf32>
    %467 = arith.mulf %451, %459 : vector<8x64xf32>
    %468 = arith.addf %466, %467 : vector<8x64xf32>
    %469 = math.tanh %468 : vector<8x64xf32>
    %470 = arith.mulf %465, %469 : vector<8x64xf32>
    %471 = vector.extract_strided_slice %470 {offsets = [0, 0], sizes = [8, 32], strides = [1, 1]} : vector<8x64xf32> to vector<8x32xf32>
    %c32_185 = arith.constant 32 : index
    %c0_186 = arith.constant 0 : index
    %472 = vector.load %arg19[%c32_185, %c0_186] : memref<64x64xf32, #tpu.memory_space<vmem>>, vector<8x32xf32>
    tpu.vector_store %arg19[%c32_185, %c0_186], %471 {strides = array<i32>} : memref<64x64xf32, #tpu.memory_space<vmem>>, vector<8x32xf32>,
    %473 = vector.extract_strided_slice %470 {offsets = [0, 32], sizes = [8, 32], strides = [1, 1]} : vector<8x64xf32> to vector<8x32xf32>
    %c24_187 = arith.constant 24 : index
    %c32_188 = arith.constant 32 : index
    %474 = vector.load %arg19[%c24_187, %c32_188] : memref<64x64xf32, #tpu.memory_space<vmem>>, vector<8x32xf32>
    tpu.vector_store %arg19[%c24_187, %c32_188], %473 {strides = array<i32>} : memref<64x64xf32, #tpu.memory_space<vmem>>, vector<8x32xf32>,
    %c40_189 = arith.constant 40 : index
    %c0_190 = arith.constant 0 : index
    %475 = vector.load %arg17[%c40_189, %c0_190] : memref<64x256xf32, #tpu.memory_space<vmem>>, vector<8x256xf32>
    %c16_191 = arith.constant 16 : index
    %c0_192 = arith.constant 0 : index
    %476 = vector.load %arg17[%c16_191, %c0_192] : memref<64x256xf32, #tpu.memory_space<vmem>>, vector<8x256xf32>
    %477 = arith.select %2, %475, %476 : vector<8x256xi1>, vector<8x256xf32>
    %cst_193 = arith.constant dense<0.000000e+00> : vector<8x256xf32>
    %478 = tpu.matmul %470, %300, %cst_193 {dimension_numbers = #tpu.dot_dimension_numbers<[1], [0], [0], [1], [0, 0, 1, 1], [], []>} : vector<8x64xf32>, vector<64x256xf32>, vector<8x256xf32> -> vector<8x256xf32>
    %479 = arith.addf %477, %478 : vector<8x256xf32>
    %480 = vector.extract_strided_slice %479 {offsets = [0, 0], sizes = [8, 64], strides = [1, 1]} : vector<8x256xf32> to vector<8x64xf32>
    %481 = arith.negf %480 : vector<8x64xf32>
    %482 = math.exp %481 : vector<8x64xf32>
    %cst_194 = arith.constant 1.000000e+00 : f32
    %483 = vector.broadcast %cst_194 : f32 to vector<8x64xf32>
    %484 = arith.addf %483, %482 : vector<8x64xf32>
    %485 = arith.divf %483, %484 : vector<8x64xf32>
    %486 = vector.extract_strided_slice %479 {offsets = [0, 64], sizes = [8, 64], strides = [1, 1]} : vector<8x256xf32> to vector<8x64xf32>
    %487 = arith.negf %486 : vector<8x64xf32>
    %488 = math.exp %487 : vector<8x64xf32>
    %cst_195 = arith.constant 1.000000e+00 : f32
    %489 = vector.broadcast %cst_195 : f32 to vector<8x64xf32>
    %490 = arith.addf %489, %488 : vector<8x64xf32>
    %491 = arith.divf %489, %490 : vector<8x64xf32>
    %492 = vector.extract_strided_slice %479 {offsets = [0, 128], sizes = [8, 64], strides = [1, 1]} : vector<8x256xf32> to vector<8x64xf32>
    %493 = math.tanh %492 : vector<8x64xf32>
    %494 = vector.extract_strided_slice %479 {offsets = [0, 192], sizes = [8, 64], strides = [1, 1]} : vector<8x256xf32> to vector<8x64xf32>
    %495 = arith.negf %494 : vector<8x64xf32>
    %496 = math.exp %495 : vector<8x64xf32>
    %cst_196 = arith.constant 1.000000e+00 : f32
    %497 = vector.broadcast %cst_196 : f32 to vector<8x64xf32>
    %498 = arith.addf %497, %496 : vector<8x64xf32>
    %499 = arith.divf %497, %498 : vector<8x64xf32>
    %500 = arith.mulf %491, %468 : vector<8x64xf32>
    %501 = arith.mulf %485, %493 : vector<8x64xf32>
    %502 = arith.addf %500, %501 : vector<8x64xf32>
    %503 = math.tanh %502 : vector<8x64xf32>
    %504 = arith.mulf %499, %503 : vector<8x64xf32>
    %505 = vector.extract_strided_slice %504 {offsets = [0, 0], sizes = [8, 32], strides = [1, 1]} : vector<8x64xf32> to vector<8x32xf32>
    %c40_197 = arith.constant 40 : index
    %c0_198 = arith.constant 0 : index
    %506 = vector.load %arg19[%c40_197, %c0_198] : memref<64x64xf32, #tpu.memory_space<vmem>>, vector<8x32xf32>
    tpu.vector_store %arg19[%c40_197, %c0_198], %505 {strides = array<i32>} : memref<64x64xf32, #tpu.memory_space<vmem>>, vector<8x32xf32>,
    %507 = vector.extract_strided_slice %504 {offsets = [0, 32], sizes = [8, 32], strides = [1, 1]} : vector<8x64xf32> to vector<8x32xf32>
    %c16_199 = arith.constant 16 : index
    %c32_200 = arith.constant 32 : index
    %508 = vector.load %arg19[%c16_199, %c32_200] : memref<64x64xf32, #tpu.memory_space<vmem>>, vector<8x32xf32>
    tpu.vector_store %arg19[%c16_199, %c32_200], %507 {strides = array<i32>} : memref<64x64xf32, #tpu.memory_space<vmem>>, vector<8x32xf32>,
    %c48_201 = arith.constant 48 : index
    %c0_202 = arith.constant 0 : index
    %509 = vector.load %arg17[%c48_201, %c0_202] : memref<64x256xf32, #tpu.memory_space<vmem>>, vector<8x256xf32>
    %c8_203 = arith.constant 8 : index
    %c0_204 = arith.constant 0 : index
    %510 = vector.load %arg17[%c8_203, %c0_204] : memref<64x256xf32, #tpu.memory_space<vmem>>, vector<8x256xf32>
    %511 = arith.select %2, %509, %510 : vector<8x256xi1>, vector<8x256xf32>
    %cst_205 = arith.constant dense<0.000000e+00> : vector<8x256xf32>
    %512 = tpu.matmul %504, %300, %cst_205 {dimension_numbers = #tpu.dot_dimension_numbers<[1], [0], [0], [1], [0, 0, 1, 1], [], []>} : vector<8x64xf32>, vector<64x256xf32>, vector<8x256xf32> -> vector<8x256xf32>
    %513 = arith.addf %511, %512 : vector<8x256xf32>
    %514 = vector.extract_strided_slice %513 {offsets = [0, 0], sizes = [8, 64], strides = [1, 1]} : vector<8x256xf32> to vector<8x64xf32>
    %515 = arith.negf %514 : vector<8x64xf32>
    %516 = math.exp %515 : vector<8x64xf32>
    %cst_206 = arith.constant 1.000000e+00 : f32
    %517 = vector.broadcast %cst_206 : f32 to vector<8x64xf32>
    %518 = arith.addf %517, %516 : vector<8x64xf32>
    %519 = arith.divf %517, %518 : vector<8x64xf32>
    %520 = vector.extract_strided_slice %513 {offsets = [0, 64], sizes = [8, 64], strides = [1, 1]} : vector<8x256xf32> to vector<8x64xf32>
    %521 = arith.negf %520 : vector<8x64xf32>
    %522 = math.exp %521 : vector<8x64xf32>
    %cst_207 = arith.constant 1.000000e+00 : f32
    %523 = vector.broadcast %cst_207 : f32 to vector<8x64xf32>
    %524 = arith.addf %523, %522 : vector<8x64xf32>
    %525 = arith.divf %523, %524 : vector<8x64xf32>
    %526 = vector.extract_strided_slice %513 {offsets = [0, 128], sizes = [8, 64], strides = [1, 1]} : vector<8x256xf32> to vector<8x64xf32>
    %527 = math.tanh %526 : vector<8x64xf32>
    %528 = vector.extract_strided_slice %513 {offsets = [0, 192], sizes = [8, 64], strides = [1, 1]} : vector<8x256xf32> to vector<8x64xf32>
    %529 = arith.negf %528 : vector<8x64xf32>
    %530 = math.exp %529 : vector<8x64xf32>
    %cst_208 = arith.constant 1.000000e+00 : f32
    %531 = vector.broadcast %cst_208 : f32 to vector<8x64xf32>
    %532 = arith.addf %531, %530 : vector<8x64xf32>
    %533 = arith.divf %531, %532 : vector<8x64xf32>
    %534 = arith.mulf %525, %502 : vector<8x64xf32>
    %535 = arith.mulf %519, %527 : vector<8x64xf32>
    %536 = arith.addf %534, %535 : vector<8x64xf32>
    %537 = math.tanh %536 : vector<8x64xf32>
    %538 = arith.mulf %533, %537 : vector<8x64xf32>
    %539 = vector.extract_strided_slice %538 {offsets = [0, 0], sizes = [8, 32], strides = [1, 1]} : vector<8x64xf32> to vector<8x32xf32>
    %c48_209 = arith.constant 48 : index
    %c0_210 = arith.constant 0 : index
    %540 = vector.load %arg19[%c48_209, %c0_210] : memref<64x64xf32, #tpu.memory_space<vmem>>, vector<8x32xf32>
    tpu.vector_store %arg19[%c48_209, %c0_210], %539 {strides = array<i32>} : memref<64x64xf32, #tpu.memory_space<vmem>>, vector<8x32xf32>,
    %541 = vector.extract_strided_slice %538 {offsets = [0, 32], sizes = [8, 32], strides = [1, 1]} : vector<8x64xf32> to vector<8x32xf32>
    %c8_211 = arith.constant 8 : index
    %c32_212 = arith.constant 32 : index
    %542 = vector.load %arg19[%c8_211, %c32_212] : memref<64x64xf32, #tpu.memory_space<vmem>>, vector<8x32xf32>
    tpu.vector_store %arg19[%c8_211, %c32_212], %541 {strides = array<i32>} : memref<64x64xf32, #tpu.memory_space<vmem>>, vector<8x32xf32>,
    %c56_213 = arith.constant 56 : index
    %c0_214 = arith.constant 0 : index
    %543 = vector.load %arg17[%c56_213, %c0_214] : memref<64x256xf32, #tpu.memory_space<vmem>>, vector<8x256xf32>
    %c0_215 = arith.constant 0 : index
    %c0_216 = arith.constant 0 : index
    %544 = vector.load %arg17[%c0_215, %c0_216] : memref<64x256xf32, #tpu.memory_space<vmem>>, vector<8x256xf32>
    %545 = arith.select %2, %543, %544 : vector<8x256xi1>, vector<8x256xf32>
    %cst_217 = arith.constant dense<0.000000e+00> : vector<8x256xf32>
    %546 = tpu.matmul %538, %300, %cst_217 {dimension_numbers = #tpu.dot_dimension_numbers<[1], [0], [0], [1], [0, 0, 1, 1], [], []>} : vector<8x64xf32>, vector<64x256xf32>, vector<8x256xf32> -> vector<8x256xf32>
    %547 = arith.addf %545, %546 : vector<8x256xf32>
    %548 = vector.extract_strided_slice %547 {offsets = [0, 0], sizes = [8, 64], strides = [1, 1]} : vector<8x256xf32> to vector<8x64xf32>
    %549 = arith.negf %548 : vector<8x64xf32>
    %550 = math.exp %549 : vector<8x64xf32>
    %cst_218 = arith.constant 1.000000e+00 : f32
    %551 = vector.broadcast %cst_218 : f32 to vector<8x64xf32>
    %552 = arith.addf %551, %550 : vector<8x64xf32>
    %553 = arith.divf %551, %552 : vector<8x64xf32>
    %554 = vector.extract_strided_slice %547 {offsets = [0, 64], sizes = [8, 64], strides = [1, 1]} : vector<8x256xf32> to vector<8x64xf32>
    %555 = arith.negf %554 : vector<8x64xf32>
    %556 = math.exp %555 : vector<8x64xf32>
    %cst_219 = arith.constant 1.000000e+00 : f32
    %557 = vector.broadcast %cst_219 : f32 to vector<8x64xf32>
    %558 = arith.addf %557, %556 : vector<8x64xf32>
    %559 = arith.divf %557, %558 : vector<8x64xf32>
    %560 = vector.extract_strided_slice %547 {offsets = [0, 128], sizes = [8, 64], strides = [1, 1]} : vector<8x256xf32> to vector<8x64xf32>
    %561 = math.tanh %560 : vector<8x64xf32>
    %562 = vector.extract_strided_slice %547 {offsets = [0, 192], sizes = [8, 64], strides = [1, 1]} : vector<8x256xf32> to vector<8x64xf32>
    %563 = arith.negf %562 : vector<8x64xf32>
    %564 = math.exp %563 : vector<8x64xf32>
    %cst_220 = arith.constant 1.000000e+00 : f32
    %565 = vector.broadcast %cst_220 : f32 to vector<8x64xf32>
    %566 = arith.addf %565, %564 : vector<8x64xf32>
    %567 = arith.divf %565, %566 : vector<8x64xf32>
    %568 = arith.mulf %559, %536 : vector<8x64xf32>
    %569 = arith.mulf %553, %561 : vector<8x64xf32>
    %570 = arith.addf %568, %569 : vector<8x64xf32>
    %571 = math.tanh %570 : vector<8x64xf32>
    %572 = arith.mulf %567, %571 : vector<8x64xf32>
    %573 = vector.extract_strided_slice %572 {offsets = [0, 0], sizes = [8, 32], strides = [1, 1]} : vector<8x64xf32> to vector<8x32xf32>
    %c56_221 = arith.constant 56 : index
    %c0_222 = arith.constant 0 : index
    %574 = vector.load %arg19[%c56_221, %c0_222] : memref<64x64xf32, #tpu.memory_space<vmem>>, vector<8x32xf32>
    tpu.vector_store %arg19[%c56_221, %c0_222], %573 {strides = array<i32>} : memref<64x64xf32, #tpu.memory_space<vmem>>, vector<8x32xf32>,
    %575 = vector.extract_strided_slice %572 {offsets = [0, 32], sizes = [8, 32], strides = [1, 1]} : vector<8x64xf32> to vector<8x32xf32>
    %c0_223 = arith.constant 0 : index
    %c32_224 = arith.constant 32 : index
    %576 = vector.load %arg19[%c0_223, %c32_224] : memref<64x64xf32, #tpu.memory_space<vmem>>, vector<8x32xf32>
    tpu.vector_store %arg19[%c0_223, %c32_224], %575 {strides = array<i32>} : memref<64x64xf32, #tpu.memory_space<vmem>>, vector<8x32xf32>,
    %c1_225 = arith.constant 1 : index
    %c0_226 = arith.constant 0 : index
    %c0_227 = arith.constant 0 : index
    %577 = vector.load %arg15[%c1_225, %c0_226, %c0_227] : memref<2x8x64xf32, #tpu.memory_space<vmem>>, vector<1x8x64xf32>
    %578 = vector.shape_cast %577 : vector<1x8x64xf32> to vector<8x64xf32>
    %579 = vector.shape_cast %572 : vector<8x64xf32> to vector<1x8x64xf32>
    tpu.vector_store %arg15[%c1_225, %c0_226, %c0_227], %579 {strides = array<i32>} : memref<2x8x64xf32, #tpu.memory_space<vmem>>, vector<1x8x64xf32>,
    %c1_228 = arith.constant 1 : index
    %c0_229 = arith.constant 0 : index
    %c0_230 = arith.constant 0 : index
    %580 = vector.load %arg16[%c1_228, %c0_229, %c0_230] : memref<2x8x64xf32, #tpu.memory_space<vmem>>, vector<1x8x64xf32>
    %581 = vector.shape_cast %580 : vector<1x8x64xf32> to vector<8x64xf32>
    %582 = vector.shape_cast %570 : vector<8x64xf32> to vector<1x8x64xf32>
    tpu.vector_store %arg16[%c1_228, %c0_229, %c0_230], %582 {strides = array<i32>} : memref<2x8x64xf32, #tpu.memory_space<vmem>>, vector<1x8x64xf32>,
    %c0_231 = arith.constant 0 : index
    %c0_232 = arith.constant 0 : index
    %583 = vector.load %arg19[%c0_231, %c0_232] : memref<64x64xf32, #tpu.memory_space<vmem>>, vector<64x64xf32>
    %cst_233 = arith.constant 0.000000e+00 : f32
    %584 = vector.broadcast %cst_233 : f32 to vector<64x64xf32>
    %585 = arith.maximumf %583, %584 : vector<64x64xf32>
    %c0_234 = arith.constant 0 : index
    %c0_235 = arith.constant 0 : index
    %586 = vector.load %arg10[%c0_234, %c0_235] : memref<64x1024xf32, #tpu.memory_space<vmem>>, vector<64x1024xf32>
    %cst_236 = arith.constant dense<0.000000e+00> : vector<64x1024xf32>
    %587 = tpu.matmul %585, %586, %cst_236 {dimension_numbers = #tpu.dot_dimension_numbers<[1], [0], [0], [1], [0, 0, 1, 1], [], []>} : vector<64x64xf32>, vector<64x1024xf32>, vector<64x1024xf32> -> vector<64x1024xf32>
    %c0_237 = arith.constant 0 : index
    %c0_238 = arith.constant 0 : index
    %588 = vector.load %arg11[%c0_237, %c0_238] : memref<1x1024xf32, #tpu.memory_space<vmem>>, vector<1x1024xf32>
    %589 = vector.broadcast %588 : vector<1x1024xf32> to vector<64x1024xf32>
    %590 = arith.addf %587, %589 : vector<64x1024xf32>
    %cst_239 = arith.constant 0.000000e+00 : f32
    %591 = vector.broadcast %cst_239 : f32 to vector<64x1024xf32>
    %592 = arith.maximumf %590, %591 : vector<64x1024xf32>
    %c0_240 = arith.constant 0 : index
    %c0_241 = arith.constant 0 : index
    %593 = vector.load %arg12[%c0_240, %c0_241] : memref<1024x1xf32, #tpu.memory_space<vmem>>, vector<1024x1xf32>
    %cst_242 = arith.constant dense<0.000000e+00> : vector<64x1xf32>
    %594 = tpu.matmul %592, %593, %cst_242 {dimension_numbers = #tpu.dot_dimension_numbers<[1], [0], [0], [1], [0, 0, 1, 1], [], []>} : vector<64x1024xf32>, vector<1024x1xf32>, vector<64x1xf32> -> vector<64x1xf32>
    %c0_243 = arith.constant 0 : index
    %c0_244 = arith.constant 0 : index
    %595 = vector.load %arg13[%c0_243, %c0_244] : memref<1x1xf32, #tpu.memory_space<vmem>>, vector<1x1xf32>
    %596 = vector.broadcast %595 : vector<1x1xf32> to vector<64x1xf32>
    %597 = arith.addf %594, %596 : vector<64x1xf32>
    %598 = arith.negf %597 : vector<64x1xf32>
    %599 = math.exp %598 : vector<64x1xf32>
    %cst_245 = arith.constant 1.000000e+00 : f32
    %600 = vector.broadcast %cst_245 : f32 to vector<64x1xf32>
    %601 = arith.addf %600, %599 : vector<64x1xf32>
    %602 = arith.divf %600, %601 : vector<64x1xf32>
    %c0_246 = arith.constant 0 : index
    %c0_247 = arith.constant 0 : index
    %603 = vector.load %arg14[%c0_246, %c0_247] : memref<64x1xf32, #tpu.memory_space<vmem>>, vector<64x1xf32>
    tpu.vector_store %arg14[%c0_246, %c0_247], %602 {strides = array<i32>} : memref<64x1xf32, #tpu.memory_space<vmem>>, vector<64x1xf32>,
    return
  }
}

</mosaic_0001>

<bundles_post_ra>
// kernel: _lambda_.1
= control target key start
LH: loop header
LB: loop body
LE: loop exit
PB: predicated region body
PF: predicated region fallthrough
CT: control target
= control target key end

     0   :  { %s5599_s0 = inlined_call_operand.vmem [shape: f32[64,16], index: 0, kind: input, shape index: {}]   ;;  %s5600_s1 = inlined_call_operand.vmem [shape: f32[2,8,64], index: 1, kind: input, shape index: {}, may-alias: {1,2}]   ;;  %s5601_s2 = inlined_call_operand.vmem [shape: f32[2,8,64], index: 2, kind: input, shape index: {}, may-alias: {1,2}]   ;;  %s5602_s3 = inlined_call_operand.vmem [shape: f32[8,256], index: 3, kind: input, shape index: {}]   ;;  %s5603_s4 = inlined_call_operand.vmem [shape: f32[16,256], index: 4, kind: input, shape index: {}]   ;;  %s5604_s5 = inlined_call_operand.vmem [shape: f32[64,256], index: 5, kind: input, shape index: {}]   ;;  %s5605_s6 = inlined_call_operand.vmem [shape: f32[1,256], index: 6, kind: input, shape index: {}]   ;;  %s5606_s7 = inlined_call_operand.hbm [shape: f32[64,256], index: 7, kind: input, shape index: {}]   ;;  %s5607_s8 = inlined_call_operand.hbm [shape: f32[64,256], index: 8, kind: input, shape index: {}]   ;;  %s5608_s9 = inlined_call_operand.vmem [shape: f32[1,256], index: 9, kind: input, shape index: {}]   ;;  %s5609_s10 = inlined_call_operand.hbm [shape: f32[64,1024], index: 10, kind: input, shape index: {}]   ;;  %s5610_s11 = inlined_call_operand.vmem [shape: f32[1,1024], index: 11, kind: input, shape index: {}]   ;;  %s5611_s12 = inlined_call_operand.hbm [shape: f32[1024,1], index: 12, kind: input, shape index: {}]   ;;  %s5612_s13 = inlined_call_operand.<no memory space> [shape: f32[1,1], index: 13, kind: input, shape index: {}]   ;;  %s5613_s14 = inlined_call_operand.vmem [shape: f32[64,1], index: 14, kind: output, shape index: {0}]   ;;  %s5614_s15 = inlined_call_operand.vmem [shape: f32[2,8,64], index: 15, kind: output, shape index: {1}]   ;;  %s5615_s16 = inlined_call_operand.vmem [shape: f32[2,8,64], index: 16, kind: output, shape index: {2}]  }
   0x1   :  { %5617 = sst [smem:[#allocation16_spill]] %s5599_s0  ;;  %v22_v0 = vstv %s5612_s13 }
   0x2   :  { %23 = vst [vmem:[#allocation5] sm:$0x1] %v22_v0 }
   0x3   :  { %24 = vsyncpa [#allocation7], 0 }
   0x4   :  { %25 = vsyncpa [#allocation9], 0 }
   0x5   :  { %26 = vsyncpa [#allocation12], 0  ;;  %s4262_s23 = smov [#allocation8]   ;;  %s4263_s25 = smov [#allocation6]  }
   0x6   :  { %s58_s24 = sshll.u32 %s4262_s23, 4  ;;  %s46_s26 = sshll.u32 %s4263_s25, 4  ;;  %s59_s24 = int_to_ptr.vmem [resolvable:$true] %s58_s24  ;;  %s47_s26 = int_to_ptr.vmem [resolvable:$true] %s46_s26 }
   0x7   :  { %s4184_s27 = scalar_lea.vmem %s59_s24, 2048  ;;  %p4189_p1 = scmp.lt.s32.totalorder %s59_s24, %s59_s24 }
   0x8   :  { %p4185_p0 = scmp.ne.s32.totalorder %s59_s24, %s4184_s27  ;;  %p4190_p2 = scmp.lt.s32.totalorder %s4184_s27, %s4184_s27 }
   0xa   :  { %p4191_p3 = por %p4190_p2, %p4189_p1 }
   0xc   :  { %p4192_p4 = pnand %p4191_p3, %p4185_p0 }
   0xe   :  { %4195 = shalt.err (!%p4192_p4)
}
   0xf   :  { %s4264_s28 = smov 256   ;;  %s4265_s29 = smov 16  }
  0x10   :  { %64 = dma.hbm_to_vmem [thread:$0]  %s5607_s8, 2048, %s59_s24, [#allocation9], %s4264_s28, %s4264_s28, %s4265_s29  }
  0x11   :  { %s4204_s0 = scalar_lea.vmem %s47_s26, 2048  ;;  %p4209_p6 = scmp.lt.s32.totalorder %s47_s26, %s47_s26 }
  0x12   :  { %p4205_p5 = scmp.ne.s32.totalorder %s47_s26, %s4204_s0  ;;  %p4210_p7 = scmp.lt.s32.totalorder %s4204_s0, %s4204_s0 }
  0x14   :  { %p4211_p8 = por %p4210_p7, %p4209_p6 }
  0x16   :  { %p4212_p9 = pnand %p4211_p8, %p4205_p5 }
  0x18   :  { %4215 = shalt.err (!%p4212_p9)
}
  0x19   :  { %52 = dma.hbm_to_vmem [thread:$0]  %s5606_s7, 2048, %s47_s26, [#allocation7], %s4264_s28, %s4264_s28, %s4265_s29  }
  0x1a   :  { %s4266_s19 = smov [#allocation10]  }
  0x1b   :  { %s72_s20 = sshll.u32 %s4266_s19, 4  ;;  %s73_s20 = int_to_ptr.vmem [resolvable:$true] %s72_s20 }
  0x1c   :  { %s4224_s21 = scalar_lea.vmem %s73_s20, 8192  ;;  %p4229_p11 = scmp.lt.s32.totalorder %s73_s20, %s73_s20 }
  0x1d   :  { %p4225_p10 = scmp.ne.s32.totalorder %s73_s20, %s4224_s21  ;;  %p4230_p12 = scmp.lt.s32.totalorder %s4224_s21, %s4224_s21 }
  0x1f   :  { %p4231_p13 = por %p4230_p12, %p4229_p11 }
  0x21   :  { %p4232_p0 = pnand %p4231_p13, %p4225_p10 }
  0x23   :  { %4235 = shalt.err (!%p4232_p0)
}
  0x24   :  { %s4267_s8 = smov 1024   ;;  %s4268_s22 = smov 64  }
  0x25   :  { %78 = dma.hbm_to_vmem [thread:$0]  %s5609_s10, 8192, %s73_s20, [#allocation9], %s4267_s8, %s4267_s8, %s4268_s22  }
  0x26   :  { %s4269_s25 = smov [#allocation11]  }
  0x27   :  { %s86_s27 = sshll.u32 %s4269_s25, 4  ;;  %s87_s27 = int_to_ptr.vmem [resolvable:$true] %s86_s27 }
  0x28   :  { %s4244_s7 = scalar_lea.vmem %s87_s27, 16384  ;;  %p4249_p2 = scmp.lt.s32.totalorder %s87_s27, %s87_s27 }
  0x29   :  { %p4245_p1 = scmp.ne.s32.totalorder %s87_s27, %s4244_s7  ;;  %p4250_p3 = scmp.lt.s32.totalorder %s4244_s7, %s4244_s7 }
  0x2b   :  { %p4251_p4 = por %p4250_p3, %p4249_p2 }
  0x2d   :  { %p4252_p5 = pnand %p4251_p4, %p4245_p1 }
  0x2f   :  { %4255 = shalt.err (!%p4252_p5)
}
  0x30   :  { %s4270_s26 = smov 128   ;;  %s4271_s28 = smov 8  }
  0x31   :  { %92 = dma.hbm_to_vmem [thread:$0]  %s5611_s12, 16384, %s87_s27, [#allocation12], %s4270_s26, %s4270_s26, %s4271_s28  }
  0x32   :  { %4256 = dma.done.wait [#allocation7], 2048  }
  0x33   :  { %4257 = vsyncadd [#allocation7], 4294965248 }
  0x34   :  { %4258 = dma.done.wait [#allocation9], 10240  }
  0x35   :  { %4259 = vsyncadd [#allocation9], 4294957056 }
  0x36   :  { %4260 = dma.done.wait [#allocation12], 16384  }
  0x37   :  { %4261 = vsyncadd [#allocation12], 4294950912  ;;  %v4272_v1 = vmov 0.0   ;;  %v122_v2 = vld [vmem:[%s5603_s4 + $0x18] sm:$0xff]  ;;  %v121_v3 = vld [vmem:[%s5603_s4 + $0x10] sm:$0xff]  ;;  %s5618_s23 = sld [smem:[#allocation16_spill]]  ;;  %v125_v32 = vlaneseq }
  0x38   :  { %224 = vmatprep.mubr.f32.mxu0 %v4272_v1  ;;  %381 = vmatprep.mubr.f32.mxu1 %v4272_v1  ;;  %v120_v4 = vld [vmem:[%s5603_s4 + $0x8] sm:$0xff]  ;;  %v119_v5 = vld [vmem:[%s5603_s4] sm:$0xff]  ;;  %vm135_vm0 = vcmask 130048   ;;  %v4394_v7 = vld [vmem:[%s5604_s5 + $0x78] sm:$0xff]  ;;  %vm313_vm1 = vcmask 523264   ;;  %vm420_vm4 = vcmask 261120  }
  0x39   :  { %188 = vmatprep.subr.mxu0 %v122_v2  ;;  %333 = vmatprep.subr.mxu1 %v4394_v7  ;;  %v4400_v8 = vld [vmem:[%s5604_s5 + $0x70] sm:$0xff]  ;;  %v4405_v9 = vld [vmem:[%s5604_s5 + $0x68] sm:$0xff]  ;;  %v4411_v10 = vld [vmem:[%s5604_s5 + $0x60] sm:$0xff]  ;;  %v4567_v33 = vshrl.u32 %v125_v32, 7  ;;  %vm422_vm5 = vcmask 523520   ;;  %vm3552_vm6 = vcmask 7168  }
  0x3a   :  { %189 = vmatpush1.msra.mxu0 %v121_v3  ;;  %334 = vmatpush1.msra.mxu1 %v4400_v8  ;;  %v4416_v11 = vld [vmem:[%s5604_s5 + $0x58] sm:$0xff]  ;;  %v4423_v12 = vld [vmem:[%s5604_s5 + $0x50] sm:$0xff]  ;;  %v4433_v14 = vld [vmem:[%s5604_s5 + $0x48] sm:$0xff] }
  0x3b   :  { %190 = vmatprep.subr.mxu0 %v120_v4  ;;  %335 = vmatprep.subr.mxu1 %v4405_v9  ;;  %v4439_v15 = vld [vmem:[%s5604_s5 + $0x40] sm:$0xff]  ;;  %v4446_v16 = vld [vmem:[%s5604_s5 + $0x38] sm:$0xff]  ;;  %v4454_v17 = vld [vmem:[%s5604_s5 + $0x30] sm:$0xff]  ;;  %v4570_v34 = vsub.s32 0, %v4567_v33  ;;  %v4576_v37 = vsub.s32 1, %v4567_v33 }
  0x3c   :  { %191 = vmatpush1.msra.mxu0 %v119_v5  ;;  %336 = vmatpush1.msra.mxu1 %v4411_v10  ;;  %v306_v18 = vld [vmem:[%s5601_s2] sm:$0xff]  ;;  %v4467_v20 = vld [vmem:[%s5604_s5 + $0x28] sm:$0xff]  ;;  %v4480_v22 = vld [vmem:[%s5604_s5 + $0x18] sm:$0xff] }
  0x3d   :  { %v111_v6 = vld [vmem:[%s5618_s23] sm:$0xff]  ;;  %v112_v13 = vld [vmem:[%s5618_s23 + $0x8] sm:$0xff]  ;;  %337 = vmatprep.subr.mxu1 %v4416_v11  ;;  %557 = vmatprep.subr.mxu0 %v4394_v7  ;;  %v113_v19 = vld [vmem:[%s5618_s23 + $0x10] sm:$0xff] }
  0x3e   :  { %3576 = vmatmul.mubr.msk.f32.vlgmr.msra.gmra.mxu0 %vm135_vm0, %v111_v6  ;;  %338 = vmatpush1.msra.mxu1 %v4423_v12  ;;  %v4473_v21 = vld [vmem:[%s5604_s5 + $0x20] sm:$0xff]  ;;  %v4488_v23 = vld [vmem:[%s5604_s5 + $0x10] sm:$0xff]  ;;  %v114_v24 = vld [vmem:[%s5618_s23 + $0x18] sm:$0xff] }
  0x3f   :  { %230 = vmatprep.mubr.f32.mxu0 %v4272_v1  ;;  %558 = vmatpush1.msra.mxu0 %v4400_v8  ;;  %v4498_v25 = vld [vmem:[%s5604_s5 + $0x8] sm:$0xff]  ;;  %v4504_v26 = vld [vmem:[%s5604_s5] sm:$0xff]  ;;  %v117_v30 = vld [vmem:[%s5618_s23 + $0x30] sm:$0xff] }
  0x40   :  { %339 = vmatprep.subr.mxu1 %v4433_v14  ;;  %404 = vrot.lane.b32.xlu0 %v306_v18, %s4268_s22  ;;  %v305_v27 = vld [vmem:[%s5600_s1] sm:$0xff]  ;;  %v116_v29 = vld [vmem:[%s5618_s23 + $0x28] sm:$0xff]  ;;  %v118_v31 = vld [vmem:[%s5618_s23 + $0x38] sm:$0xff] }
  0x41   :  { %340 = vmatpush1.msra.mxu1 %v4439_v15  ;;  %559 = vmatprep.subr.mxu0 %v4405_v9  ;;  %v115_v28 = vld [vmem:[%s5618_s23 + $0x20] sm:$0xff]  ;;  %v4588_v54 = vld [vmem:[%s5602_s3 + $0x8] sm:$0xff] }
  0x42   :  { %3577 = vmatmul.mubr.msk.f32.gmra.mxu0 %vm135_vm0, %v112_v13  ;;  %341 = vmatprep.subr.mxu1 %v4446_v16  ;;  %v123_v35 = vld [vmem:[%s5605_s6] sm:$0x3]  ;;  %vm110_vm3 = vcmp.gt.f32.partialorder %v4588_v54, 0.5 }
  0x43   :  { %236 = vmatprep.mubr.f32.mxu0 %v4272_v1  ;;  %342 = vmatpush1.msra.mxu1 %v4454_v17  ;;  %v128_v39 = vrot.slane %v123_v35, %v4570_v34  ;;  %v132_v41 = vrot.slane %v123_v35, %v4576_v37  ;;  %v4583_v51 = vld [vmem:[%s5602_s3] sm:$0xff] }
  0x44   :  { %343 = vmatprep.subr.mxu1 %v4467_v20  ;;  %560 = vmatpush1.msra.mxu0 %v4411_v10  ;;  %vm109_vm2 = vcmp.gt.f32.partialorder %v4583_v51, 0.5 }
  0x45   :  { %344 = vmatpush1.msra.mxu1 %v4473_v21  ;;  %561 = vmatprep.subr.mxu0 %v4416_v11 }
  0x46   :  { %3578 = vmatmul.mubr.msk.f32.gmra.mxu0 %vm135_vm0, %v113_v19  ;;  %345 = vmatprep.subr.mxu1 %v4480_v22 }
  0x47   :  { %242 = vmatprep.mubr.f32.mxu0 %v4272_v1  ;;  %346 = vmatpush1.msra.mxu1 %v4488_v23 }
  0x48   :  { %347 = vmatprep.subr.mxu1 %v4498_v25  ;;  %562 = vmatpush1.msra.mxu0 %v4423_v12 }
  0x49   :  { %348 = vmatpush1.msra.mxu1 %v4504_v26  ;;  %563 = vmatprep.subr.mxu0 %v4433_v14 }
  0x4a   :  { %3579 = vmatmul.mubr.msk.f32.gmra.mxu0 %vm135_vm0, %v114_v24  ;;  %3584 = vmatmul.mubr.msk.f32.vlgmr.msra.gmra.mxu1 %vm313_vm1, %v305_v27 }
  0x4b   :  { %248 = vmatprep.mubr.f32.mxu0 %v4272_v1  ;;  %448 = vmatprep.subr.mxu1 %v4394_v7 }
  0x4c   :  { %449 = vmatpush1.msra.mxu1 %v4400_v8  ;;  %496 = vmatprep.mubr.f32.mxu1 %v4272_v1 }
  0x4d   :  { %450 = vmatprep.subr.mxu1 %v4405_v9  ;;  %564 = vmatpush1.msra.mxu0 %v4439_v15 }
  0x4e   :  { %3580 = vmatmul.mubr.msk.f32.gmra.mxu0 %vm135_vm0, %v115_v28  ;;  %451 = vmatpush1.msra.mxu1 %v4411_v10 }
  0x4f   :  { %254 = vmatprep.mubr.f32.mxu0 %v4272_v1  ;;  %452 = vmatprep.subr.mxu1 %v4416_v11 }
  0x50   :  { %453 = vmatpush1.msra.mxu1 %v4423_v12  ;;  %565 = vmatprep.subr.mxu0 %v4446_v16 }
  0x51   :  { %454 = vmatprep.subr.mxu1 %v4433_v14  ;;  %566 = vmatpush1.msra.mxu0 %v4454_v17 }
  0x52   :  { %3581 = vmatmul.mubr.msk.f32.gmra.mxu0 %vm135_vm0, %v116_v29  ;;  %455 = vmatpush1.msra.mxu1 %v4439_v15 }
  0x53   :  { %260 = vmatprep.mubr.f32.mxu0 %v4272_v1  ;;  %456 = vmatprep.subr.mxu1 %v4446_v16 }
  0x54   :  { %457 = vmatpush1.msra.mxu1 %v4454_v17  ;;  %567 = vmatprep.subr.mxu0 %v4467_v20 }
  0x55   :  { %458 = vmatprep.subr.mxu1 %v4467_v20  ;;  %568 = vmatpush1.msra.mxu0 %v4473_v21 }
  0x56   :  { %3582 = vmatmul.mubr.msk.f32.gmra.mxu0 %vm135_vm0, %v117_v30  ;;  %459 = vmatpush1.msra.mxu1 %v4473_v21 }
  0x57   :  { %266 = vmatprep.mubr.f32.mxu0 %v4272_v1  ;;  %460 = vmatprep.subr.mxu1 %v4480_v22 }
  0x58   :  { %461 = vmatpush1.msra.mxu1 %v4488_v23  ;;  %569 = vmatprep.subr.mxu0 %v4480_v22 }
  0x59   :  { %462 = vmatprep.subr.mxu1 %v4498_v25  ;;  %570 = vmatpush1.msra.mxu0 %v4488_v23 }
  0x5a   :  { %3583 = vmatmul.mubr.msk.f32.gmra.mxu0 %vm135_vm0, %v118_v31  ;;  %463 = vmatpush1.msra.mxu1 %v4504_v26 }
  0x5b   :  { %605 = vmatprep.mubr.f32.mxu0 %v4272_v1  ;;  %666 = vmatprep.subr.mxu1 %v4394_v7 }
  0x5c   :  { %571 = vmatprep.subr.mxu0 %v4498_v25 }
  0x5d   :  { %572 = vmatpush1.msra.mxu0 %v4504_v26 }
  0x5e   :  { %775 = vmatprep.subr.mxu0 %v4394_v7 }
  0xfe   :  { %v226_v36 = vpop.f32.mrf.mxu0 }
  0xff   :  { %v227_v31 = vadd.f32 %v226_v36, %v128_v39 }
 0x100   :  { %v228_v38 = vpop.f32.mrf.mxu0 }
 0x102   :  { %v232_v40 = vpop.f32.mrf.mxu0 }
 0x103   :  { %v233_v42 = vadd.f32 %v232_v40, %v128_v39 }
 0x104   :  { %v234_v43 = vpop.f32.mrf.mxu0 }
 0x105   :  { %v235_v44 = vadd.f32 %v234_v43, %v132_v41 }
 0x106   :  { %v238_v45 = vpop.f32.mrf.mxu0 }
 0x107   :  { %v239_v46 = vadd.f32 %v238_v45, %v128_v39  ;;  %v229_v45 = vadd.f32 %v228_v38, %v132_v41 }
 0x108   :  { %v240_v47 = vpop.f32.mrf.mxu0 }
 0x109   :  { %v241_v48 = vadd.f32 %v240_v47, %v132_v41 }
 0x10a   :  { %v244_v49 = vpop.f32.mrf.mxu0  ;;  %v383_v47 = vpop.f32.mrf.mxu1 }
 0x10b   :  { %v245_v50 = vadd.f32 %v244_v49, %v128_v39 }
 0x10c   :  { %v246_v52 = vpop.f32.mrf.mxu0  ;;  %v385_v38 = vpop.f32.mrf.mxu1 }
 0x10d   :  { %v247_v53 = vadd.f32 %v246_v52, %v132_v41 }
 0x10e   :  { %v250_v55 = vpop.f32.mrf.mxu0 }
 0x10f   :  { %v251_v56 = vadd.f32 %v250_v55, %v128_v39 }
 0x110   :  { %v252_v57 = vpop.f32.mrf.mxu0 }
 0x111   :  { %v253_v58 = vadd.f32 %v252_v57, %v132_v41  ;;  %v4594_v59 = vsel %vm109_vm2, %v245_v50, %v251_v56  ;;  %v4598_v60 = vsel %vm109_vm2, %v251_v56, %v245_v50 }
 0x112   :  { %v256_v61 = vpop.f32.mrf.mxu0 }
 0x113   :  { %v257_v62 = vadd.f32 %v256_v61, %v128_v39  ;;  %v4602_v63 = vsel %vm110_vm3, %v247_v53, %v253_v58  ;;  %v4606_v0 = vsel %vm110_vm3, %v253_v58, %v247_v53  ;;  %v405_v61 = vpop.permute.xlu0 %404 }
 0x114   :  { %v258_v2 = vpop.f32.mrf.mxu0 }
 0x115   :  { %v259_v3 = vadd.f32 %v258_v2, %v132_v41  ;;  %v4610_v4 = vsel %vm109_vm2, %v239_v46, %v257_v62  ;;  %v4614_v5 = vsel %vm109_vm2, %v257_v62, %v239_v46 }
 0x116   :  { %v262_v6 = vpop.f32.mrf.mxu0 }
 0x117   :  { %v263_v13 = vadd.f32 %v262_v6, %v128_v39  ;;  %v4618_v18 = vsel %vm110_vm3, %v241_v48, %v259_v3  ;;  %v4622_v19 = vsel %vm110_vm3, %v259_v3, %v241_v48 }
 0x118   :  { %v264_v24 = vpop.f32.mrf.mxu0 }
 0x119   :  { %v265_v27 = vadd.f32 %v264_v24, %v132_v41  ;;  %v4626_v28 = vsel %vm109_vm2, %v233_v42, %v263_v13  ;;  %v4630_v29 = vsel %vm109_vm2, %v263_v13, %v233_v42 }
 0x11a   :  { %v268_v30 = vpop.f32.mrf.mxu0 }
 0x11b   :  { %v269_v32 = vadd.f32 %v268_v30, %v128_v39  ;;  %v4634_v35 = vsel %vm110_vm3, %v235_v44, %v265_v27  ;;  %v4638_v40 = vsel %vm110_vm3, %v265_v27, %v235_v44 }
 0x11c   :  { %v270_v43 = vpop.f32.mrf.mxu0 }
 0x11d   :  { %v311_v46 = vsel %vm109_vm2, %v227_v31, %v269_v32  ;;  %v271_v48 = vadd.f32 %v270_v43, %v132_v41  ;;  %v4644_v42 = vsel %vm109_vm2, %v269_v32, %v227_v31 }
 0x11e   :  { %v388_v36 = vadd.f32 %v383_v47, %v311_v46 }
 0x11f   :  { %v4648_v39 = vsel %vm110_vm3, %v271_v48, %v229_v45  ;;  %v312_v44 = vsel %vm110_vm3, %v229_v45, %v271_v48 }
 0x120   :  { %v3585_v49 = vmul.f32 -1.442695, %v388_v36  ;;  %v389_v50 = vadd.f32 %v385_v38, %v312_v44 }
 0x122   :  { %3952 = vpow2.f32 %v3585_v49  ;;  %v3586_v57 = vmul.f32 -1.442695, %v389_v50 }
 0x123   :  { %3954 = vtanh.f32 %v389_v50 }
 0x12f   :  { %v3953_v52 = vpop.eup %3952 }
 0x130   :  { %v393_v53 = vadd.f32 1.0, %v3953_v52  ;;  %v3955_v41 = vpop.eup %3954 }
 0x132   :  { %3956 = vrcp.f32 %v393_v53 }
 0x133   :  { %3958 = vpow2.f32 %v3586_v57 }
 0x13f   :  { %v3957_v55 = vpop.eup %3956 }
 0x140   :  { %v408_v56 = vmul.f32 %v3957_v55, %v3955_v41  ;;  %v3959_v58 = vpop.eup %3958  ;;  %v407_v2 = vmul.f32 %v3957_v55, %v405_v61 }
 0x141   :  { %v400_v62 = vadd.f32 1.0, %v3959_v58 }
 0x142   :  { %410 = vrot.lane.b32.xlu0 %v408_v56, %s4268_s22 }
 0x143   :  { %3960 = vrcp.f32 %v400_v62 }
 0x150   :  { %v3961_v13 = vpop.eup %3960 }
 0x1b4   :  { %v411_v3 = vpop.permute.xlu0 %410 }
 0x1b5   :  { %v413_v6 = vadd.f32 %v411_v3, %v407_v2 }
 0x1b7   :  { %3962 = vtanh.f32 %v413_v6 }
 0x1c4   :  { %v3963_v24 = vpop.eup %3962 }
 0x1c5   :  { %v415_v27 = vmul.f32 %v3963_v24, %v3961_v13 }
 0x1c7   :  { %417 = vrot.lane.b32.xlu1 %v415_v27, %s4268_s22 }
 0x239   :  { %v418_v30 = vpop.permute.xlu1 %417 }
 0x23a   :  { %421 = vst.msk [vmem:[#allocation3] sm:$0xff] %vm420_vm4, %v418_v30  ;;  %3587 = vmatmul.mubr.msk.f32.vlgmr.msra.gmra.mxu1 %vm313_vm1, %v418_v30 }
 0x23b   :  { %423 = vst.msk [vmem:[#allocation3 + $0x38] sm:$0xff] %vm422_vm5, %v418_v30  ;;  %667 = vmatpush1.msra.mxu1 %v4400_v8  ;;  %714 = vmatprep.mubr.f32.mxu1 %v4272_v1 }
 0x23c   :  { %668 = vmatprep.subr.mxu1 %v4405_v9 }
 0x23d   :  { %669 = vmatpush1.msra.mxu1 %v4411_v10 }
 0x23e   :  { %670 = vmatprep.subr.mxu1 %v4416_v11 }
 0x23f   :  { %671 = vmatpush1.msra.mxu1 %v4423_v12 }
 0x240   :  { %672 = vmatprep.subr.mxu1 %v4433_v14 }
 0x241   :  { %673 = vmatpush1.msra.mxu1 %v4439_v15 }
 0x242   :  { %674 = vmatprep.subr.mxu1 %v4446_v16 }
 0x243   :  { %675 = vmatpush1.msra.mxu1 %v4454_v17 }
 0x244   :  { %676 = vmatprep.subr.mxu1 %v4467_v20 }
 0x245   :  { %677 = vmatpush1.msra.mxu1 %v4473_v21 }
 0x246   :  { %678 = vmatprep.subr.mxu1 %v4480_v22 }
 0x247   :  { %679 = vmatpush1.msra.mxu1 %v4488_v23 }
 0x248   :  { %680 = vmatprep.subr.mxu1 %v4498_v25 }
 0x249   :  { %681 = vmatpush1.msra.mxu1 %v4504_v26 }
 0x24a   :  { %884 = vmatprep.subr.mxu1 %v4394_v7 }
 0x2fa   :  { %v498_v31 = vpop.f32.mrf.mxu1 }
 0x2fb   :  { %v503_v32 = vadd.f32 %v498_v31, %v4626_v28 }
 0x2fc   :  { %v500_v45 = vpop.f32.mrf.mxu1 }
 0x2fd   :  { %v3588_v43 = vmul.f32 -1.442695, %v503_v32  ;;  %v504_v46 = vadd.f32 %v500_v45, %v4634_v35 }
 0x2ff   :  { %3964 = vpow2.f32 %v3588_v43  ;;  %v3589_v38 = vmul.f32 -1.442695, %v504_v46 }
 0x300   :  { %3966 = vtanh.f32 %v504_v46 }
 0x30c   :  { %v3965_v47 = vpop.eup %3964 }
 0x30d   :  { %v508_v48 = vadd.f32 1.0, %v3965_v47  ;;  %v3967_v36 = vpop.eup %3966 }
 0x30f   :  { %3968 = vrcp.f32 %v508_v48 }
 0x310   :  { %3970 = vpow2.f32 %v3589_v38 }
 0x31c   :  { %v3969_v49 = vpop.eup %3968 }
 0x31d   :  { %v519_v44 = vmul.f32 %v3969_v49, %v3967_v36  ;;  %v3971_v50 = vpop.eup %3970  ;;  %v518_v53 = vmul.f32 %v3969_v49, %v413_v6 }
 0x31e   :  { %v515_v52 = vadd.f32 1.0, %v3971_v50 }
 0x31f   :  { %521 = vrot.lane.b32.xlu1 %v519_v44, %s4268_s22 }
 0x320   :  { %3972 = vrcp.f32 %v515_v52 }
 0x32d   :  { %v3973_v55 = vpop.eup %3972 }
 0x391   :  { %v522_v28 = vpop.permute.xlu1 %521 }
 0x392   :  { %v524_v41 = vadd.f32 %v522_v28, %v518_v53 }
 0x394   :  { %3974 = vtanh.f32 %v524_v41 }
 0x3a1   :  { %v3975_v35 = vpop.eup %3974 }
 0x3a2   :  { %v526_v56 = vmul.f32 %v3975_v35, %v3973_v55 }
 0x3a4   :  { %528 = vrot.lane.b32.xlu0 %v526_v56, %s4268_s22 }
 0x416   :  { %v529_v57 = vpop.permute.xlu0 %528 }
 0x417   :  { %531 = vst.msk [vmem:[#allocation3 + $0x8] sm:$0xff] %vm420_vm4, %v529_v57  ;;  %3590 = vmatmul.mubr.msk.f32.vlgmr.msra.gmra.mxu0 %vm313_vm1, %v529_v57 }
 0x418   :  { %532 = vst.msk [vmem:[#allocation3 + $0x30] sm:$0xff] %vm422_vm5, %v529_v57  ;;  %776 = vmatpush1.msra.mxu0 %v4400_v8  ;;  %823 = vmatprep.mubr.f32.mxu0 %v4272_v1 }
 0x419   :  { %777 = vmatprep.subr.mxu0 %v4405_v9 }
 0x41a   :  { %778 = vmatpush1.msra.mxu0 %v4411_v10 }
 0x41b   :  { %779 = vmatprep.subr.mxu0 %v4416_v11 }
 0x41c   :  { %780 = vmatpush1.msra.mxu0 %v4423_v12 }
 0x41d   :  { %781 = vmatprep.subr.mxu0 %v4433_v14 }
 0x41e   :  { %782 = vmatpush1.msra.mxu0 %v4439_v15 }
 0x41f   :  { %783 = vmatprep.subr.mxu0 %v4446_v16 }
 0x420   :  { %784 = vmatpush1.msra.mxu0 %v4454_v17 }
 0x421   :  { %785 = vmatprep.subr.mxu0 %v4467_v20 }
 0x422   :  { %786 = vmatpush1.msra.mxu0 %v4473_v21 }
 0x423   :  { %787 = vmatprep.subr.mxu0 %v4480_v22 }
 0x424   :  { %788 = vmatpush1.msra.mxu0 %v4488_v23 }
 0x425   :  { %789 = vmatprep.subr.mxu0 %v4498_v25 }
 0x426   :  { %790 = vmatpush1.msra.mxu0 %v4504_v26 }
 0x427   :  { %993 = vmatprep.subr.mxu0 %v4394_v7 }
 0x4d7   :  { %v607_v58 = vpop.f32.mrf.mxu0 }
 0x4d8   :  { %v612_v61 = vadd.f32 %v607_v58, %v4610_v4 }
 0x4d9   :  { %v609_v2 = vpop.f32.mrf.mxu0 }
 0x4da   :  { %v3591_v62 = vmul.f32 -1.442695, %v612_v61  ;;  %v613_v3 = vadd.f32 %v609_v2, %v4618_v18 }
 0x4dc   :  { %3976 = vpow2.f32 %v3591_v62  ;;  %v3592_v31 = vmul.f32 -1.442695, %v613_v3 }
 0x4dd   :  { %3978 = vtanh.f32 %v613_v3 }
 0x4e9   :  { %v3977_v6 = vpop.eup %3976 }
 0x4ea   :  { %v617_v13 = vadd.f32 1.0, %v3977_v6  ;;  %v3979_v24 = vpop.eup %3978 }
 0x4ec   :  { %3980 = vrcp.f32 %v617_v13 }
 0x4ed   :  { %3982 = vpow2.f32 %v3592_v31 }
 0x4f9   :  { %v3981_v27 = vpop.eup %3980 }
 0x4fa   :  { %v628_v30 = vmul.f32 %v3981_v27, %v3979_v24  ;;  %v3983_v32 = vpop.eup %3982  ;;  %v627_v45 = vmul.f32 %v3981_v27, %v524_v41 }
 0x4fb   :  { %v624_v43 = vadd.f32 1.0, %v3983_v32 }
 0x4fc   :  { %630 = vrot.lane.b32.xlu1 %v628_v30, %s4268_s22 }
 0x4fd   :  { %3984 = vrcp.f32 %v624_v43 }
 0x50a   :  { %v3985_v47 = vpop.eup %3984 }
 0x56e   :  { %v631_v4 = vpop.permute.xlu1 %630 }
 0x56f   :  { %v633_v46 = vadd.f32 %v631_v4, %v627_v45 }
 0x571   :  { %3986 = vtanh.f32 %v633_v46 }
 0x57e   :  { %v3987_v18 = vpop.eup %3986 }
 0x57f   :  { %v635_v48 = vmul.f32 %v3987_v18, %v3985_v47 }
 0x581   :  { %637 = vrot.lane.b32.xlu0 %v635_v48, %s4268_s22 }
 0x5f3   :  { %v638_v36 = vpop.permute.xlu0 %637 }
 0x5f4   :  { %640 = vst.msk [vmem:[#allocation3 + $0x10] sm:$0xff] %vm420_vm4, %v638_v36  ;;  %3593 = vmatmul.mubr.msk.f32.vlgmr.msra.gmra.mxu1 %vm313_vm1, %v638_v36 }
 0x5f5   :  { %641 = vst.msk [vmem:[#allocation3 + $0x28] sm:$0xff] %vm422_vm5, %v638_v36  ;;  %885 = vmatpush1.msra.mxu1 %v4400_v8  ;;  %932 = vmatprep.mubr.f32.mxu1 %v4272_v1 }
 0x5f6   :  { %886 = vmatprep.subr.mxu1 %v4405_v9 }
 0x5f7   :  { %887 = vmatpush1.msra.mxu1 %v4411_v10 }
 0x5f8   :  { %888 = vmatprep.subr.mxu1 %v4416_v11 }
 0x5f9   :  { %889 = vmatpush1.msra.mxu1 %v4423_v12 }
 0x5fa   :  { %890 = vmatprep.subr.mxu1 %v4433_v14 }
 0x5fb   :  { %891 = vmatpush1.msra.mxu1 %v4439_v15 }
 0x5fc   :  { %892 = vmatprep.subr.mxu1 %v4446_v16 }
 0x5fd   :  { %893 = vmatpush1.msra.mxu1 %v4454_v17 }
 0x5fe   :  { %894 = vmatprep.subr.mxu1 %v4467_v20 }
 0x5ff   :  { %895 = vmatpush1.msra.mxu1 %v4473_v21 }
 0x600   :  { %896 = vmatprep.subr.mxu1 %v4480_v22 }
 0x601   :  { %897 = vmatpush1.msra.mxu1 %v4488_v23 }
 0x602   :  { %898 = vmatprep.subr.mxu1 %v4498_v25 }
 0x603   :  { %899 = vmatpush1.msra.mxu1 %v4504_v26 }
 0x604   :  { %1102 = vmatprep.subr.mxu1 %v4394_v7 }
 0x6b4   :  { %v716_v49 = vpop.f32.mrf.mxu1 }
 0x6b5   :  { %v721_v44 = vadd.f32 %v716_v49, %v4594_v59 }
 0x6b6   :  { %v718_v50 = vpop.f32.mrf.mxu1 }
 0x6b7   :  { %v3594_v38 = vmul.f32 -1.442695, %v721_v44  ;;  %v722_v52 = vadd.f32 %v718_v50, %v4602_v63 }
 0x6b9   :  { %3988 = vpow2.f32 %v3594_v38  ;;  %v3595_v56 = vmul.f32 -1.442695, %v722_v52 }
 0x6ba   :  { %3990 = vtanh.f32 %v722_v52 }
 0x6c6   :  { %v3989_v53 = vpop.eup %3988 }
 0x6c7   :  { %v726_v28 = vadd.f32 1.0, %v3989_v53  ;;  %v3991_v41 = vpop.eup %3990 }
 0x6c9   :  { %3992 = vrcp.f32 %v726_v28 }
 0x6ca   :  { %3994 = vpow2.f32 %v3595_v56 }
 0x6d6   :  { %v3993_v55 = vpop.eup %3992 }
 0x6d7   :  { %v737_v35 = vmul.f32 %v3993_v55, %v3991_v41  ;;  %v3995_v7 = vpop.eup %3994  ;;  %v736_v58 = vmul.f32 %v3993_v55, %v633_v46 }
 0x6d8   :  { %v733_v57 = vadd.f32 1.0, %v3995_v7 }
 0x6d9   :  { %739 = vrot.lane.b32.xlu1 %v737_v35, %s4268_s22 }
 0x6da   :  { %3996 = vrcp.f32 %v733_v57 }
 0x6e7   :  { %v3997_v62 = vpop.eup %3996 }
 0x74b   :  { %v740_v59 = vpop.permute.xlu1 %739 }
 0x74c   :  { %v742_v61 = vadd.f32 %v740_v59, %v736_v58 }
 0x74e   :  { %3998 = vtanh.f32 %v742_v61 }
 0x75b   :  { %v3999_v63 = vpop.eup %3998 }
 0x75c   :  { %v744_v2 = vmul.f32 %v3999_v63, %v3997_v62 }
 0x75e   :  { %746 = vrot.lane.b32.xlu0 %v744_v2, %s4268_s22 }
 0x7d0   :  { %v747_v3 = vpop.permute.xlu0 %746 }
 0x7d1   :  { %749 = vst.msk [vmem:[#allocation3 + $0x18] sm:$0xff] %vm420_vm4, %v747_v3  ;;  %3596 = vmatmul.mubr.msk.f32.vlgmr.msra.gmra.mxu0 %vm313_vm1, %v747_v3 }
 0x7d2   :  { %750 = vst.msk [vmem:[#allocation3 + $0x20] sm:$0xff] %vm422_vm5, %v747_v3  ;;  %994 = vmatpush1.msra.mxu0 %v4400_v8  ;;  %1041 = vmatprep.mubr.f32.mxu0 %v4272_v1 }
 0x7d3   :  { %995 = vmatprep.subr.mxu0 %v4405_v9 }
 0x7d4   :  { %996 = vmatpush1.msra.mxu0 %v4411_v10 }
 0x7d5   :  { %997 = vmatprep.subr.mxu0 %v4416_v11 }
 0x7d6   :  { %998 = vmatpush1.msra.mxu0 %v4423_v12 }
 0x7d7   :  { %999 = vmatprep.subr.mxu0 %v4433_v14 }
 0x7d8   :  { %1000 = vmatpush1.msra.mxu0 %v4439_v15 }
 0x7d9   :  { %1001 = vmatprep.subr.mxu0 %v4446_v16 }
 0x7da   :  { %1002 = vmatpush1.msra.mxu0 %v4454_v17 }
 0x7db   :  { %1003 = vmatprep.subr.mxu0 %v4467_v20 }
 0x7dc   :  { %1004 = vmatpush1.msra.mxu0 %v4473_v21 }
 0x7dd   :  { %1005 = vmatprep.subr.mxu0 %v4480_v22 }
 0x7de   :  { %1006 = vmatpush1.msra.mxu0 %v4488_v23 }
 0x7df   :  { %1007 = vmatprep.subr.mxu0 %v4498_v25 }
 0x7e0   :  { %1008 = vmatpush1.msra.mxu0 %v4504_v26 }
 0x891   :  { %v825_v6 = vpop.f32.mrf.mxu0 }
 0x892   :  { %v830_v13 = vadd.f32 %v825_v6, %v4598_v60 }
 0x893   :  { %v827_v27 = vpop.f32.mrf.mxu0 }
 0x894   :  { %v3597_v24 = vmul.f32 -1.442695, %v830_v13  ;;  %v831_v30 = vadd.f32 %v827_v27, %v4606_v0 }
 0x896   :  { %4000 = vpow2.f32 %v3597_v24  ;;  %v3598_v46 = vmul.f32 -1.442695, %v831_v30 }
 0x897   :  { %4002 = vtanh.f32 %v831_v30 }
 0x8a3   :  { %v4001_v31 = vpop.eup %4000 }
 0x8a4   :  { %v835_v32 = vadd.f32 1.0, %v4001_v31  ;;  %v4003_v43 = vpop.eup %4002 }
 0x8a6   :  { %4004 = vrcp.f32 %v835_v32 }
 0x8a7   :  { %4006 = vpow2.f32 %v3598_v46 }
 0x8b3   :  { %v4005_v45 = vpop.eup %4004 }
 0x8b4   :  { %v846_v4 = vmul.f32 %v4005_v45, %v4003_v43  ;;  %v4007_v47 = vpop.eup %4006  ;;  %v845_v48 = vmul.f32 %v4005_v45, %v742_v61 }
 0x8b5   :  { %v842_v18 = vadd.f32 1.0, %v4007_v47 }
 0x8b6   :  { %848 = vrot.lane.b32.xlu1 %v846_v4, %s4268_s22 }
 0x8b7   :  { %4008 = vrcp.f32 %v842_v18 }
 0x8c4   :  { %v4009_v49 = vpop.eup %4008 }
 0x928   :  { %v849_v60 = vpop.permute.xlu1 %848 }
 0x929   :  { %v851_v36 = vadd.f32 %v849_v60, %v845_v48  ;;  %v1216_v60 = vld [vmem:[#allocation6 + $0x78] sm:$0xff] }
 0x92a   :  { %1269 = vmatprep.subr.mxu0 %v1216_v60 }
 0x92b   :  { %4010 = vtanh.f32 %v851_v36 }
 0x938   :  { %v4011_v0 = vpop.eup %4010 }
 0x939   :  { %v853_v44 = vmul.f32 %v4011_v0, %v4009_v49  ;;  %v1214_v49 = vld [vmem:[#allocation6 + $0x68] sm:$0xff]  ;;  %v1213_v0 = vld [vmem:[#allocation6 + $0x60] sm:$0xff] }
 0x93b   :  { %855 = vrot.lane.b32.xlu0 %v853_v44, %s4268_s22  ;;  %v1211_v44 = vld [vmem:[#allocation6 + $0x50] sm:$0xff] }
 0x9ad   :  { %v856_v38 = vpop.permute.xlu0 %855 }
 0x9ae   :  { %858 = vst.msk [vmem:[#allocation3 + $0x20] sm:$0xff] %vm420_vm4, %v856_v38  ;;  %3599 = vmatmul.mubr.msk.f32.vlgmr.msra.gmra.mxu1 %vm313_vm1, %v856_v38 }
 0x9af   :  { %859 = vst.msk [vmem:[#allocation3 + $0x18] sm:$0xff] %vm422_vm5, %v856_v38  ;;  %1103 = vmatpush1.msra.mxu1 %v4400_v8  ;;  %1150 = vmatprep.mubr.f32.mxu1 %v4272_v1  ;;  %v1209_v38 = vld [vmem:[#allocation6 + $0x40] sm:$0xff] }
 0x9b0   :  { %1104 = vmatprep.subr.mxu1 %v4405_v9 }
 0x9b1   :  { %1105 = vmatpush1.msra.mxu1 %v4411_v10 }
 0x9b2   :  { %1106 = vmatprep.subr.mxu1 %v4416_v11 }
 0x9b3   :  { %1107 = vmatpush1.msra.mxu1 %v4423_v12 }
 0x9b4   :  { %1108 = vmatprep.subr.mxu1 %v4433_v14 }
 0x9b5   :  { %1109 = vmatpush1.msra.mxu1 %v4439_v15 }
 0x9b6   :  { %1110 = vmatprep.subr.mxu1 %v4446_v16 }
 0x9b7   :  { %1111 = vmatpush1.msra.mxu1 %v4454_v17 }
 0x9b8   :  { %1112 = vmatprep.subr.mxu1 %v4467_v20 }
 0x9b9   :  { %1113 = vmatpush1.msra.mxu1 %v4473_v21 }
 0x9ba   :  { %1114 = vmatprep.subr.mxu1 %v4480_v22 }
 0x9bb   :  { %1115 = vmatpush1.msra.mxu1 %v4488_v23 }
 0x9bc   :  { %1116 = vmatprep.subr.mxu1 %v4498_v25 }
 0x9bd   :  { %1117 = vmatpush1.msra.mxu1 %v4504_v26 }
 0xa6e   :  { %v934_v8 = vpop.f32.mrf.mxu1 }
 0xa6f   :  { %v939_v9 = vadd.f32 %v934_v8, %v4614_v5 }
 0xa70   :  { %v936_v11 = vpop.f32.mrf.mxu1 }
 0xa71   :  { %v3600_v10 = vmul.f32 -1.442695, %v939_v9  ;;  %v940_v12 = vadd.f32 %v936_v11, %v4622_v19 }
 0xa73   :  { %4012 = vpow2.f32 %v3600_v10  ;;  %v3601_v21 = vmul.f32 -1.442695, %v940_v12 }
 0xa74   :  { %4014 = vtanh.f32 %v940_v12 }
 0xa80   :  { %v4013_v14 = vpop.eup %4012 }
 0xa81   :  { %v944_v15 = vadd.f32 1.0, %v4013_v14  ;;  %v4015_v16 = vpop.eup %4014 }
 0xa83   :  { %4016 = vrcp.f32 %v944_v15  ;;  %v1208_v15 = vld [vmem:[#allocation6 + $0x38] sm:$0xff] }
 0xa84   :  { %4018 = vpow2.f32 %v3601_v21  ;;  %v1204_v21 = vld [vmem:[#allocation6 + $0x18] sm:$0xff] }
 0xa90   :  { %v4017_v17 = vpop.eup %4016 }
 0xa91   :  { %v955_v20 = vmul.f32 %v4017_v17, %v4015_v16  ;;  %v4019_v22 = vpop.eup %4018  ;;  %v954_v25 = vmul.f32 %v4017_v17, %v851_v36  ;;  %v1215_v36 = vld [vmem:[#allocation6 + $0x70] sm:$0xff]  ;;  %v1206_v17 = vld [vmem:[#allocation6 + $0x28] sm:$0xff] }
 0xa92   :  { %v951_v23 = vadd.f32 1.0, %v4019_v22  ;;  %v1207_v16 = vld [vmem:[#allocation6 + $0x30] sm:$0xff] }
 0xa93   :  { %957 = vrot.lane.b32.xlu1 %v955_v20, %s4268_s22  ;;  %v1205_v20 = vld [vmem:[#allocation6 + $0x20] sm:$0xff]  ;;  %v1203_v22 = vld [vmem:[#allocation6 + $0x10] sm:$0xff] }
 0xa94   :  { %4020 = vrcp.f32 %v951_v23  ;;  %v1202_v23 = vld [vmem:[#allocation6 + $0x8] sm:$0xff] }
 0xaa1   :  { %v4021_v50 = vpop.eup %4020 }
 0xb05   :  { %v958_v26 = vpop.permute.xlu1 %957 }
 0xb06   :  { %v960_v5 = vadd.f32 %v958_v26, %v954_v25  ;;  %v1201_v25 = vld [vmem:[#allocation6] sm:$0xff] }
 0xb08   :  { %4022 = vtanh.f32 %v960_v5 }
 0xb15   :  { %v4023_v19 = vpop.eup %4022 }
 0xb16   :  { %v962_v52 = vmul.f32 %v4023_v19, %v4021_v50  ;;  %v4791_v19 = vld [vmem:[#allocation8 + $0x78] sm:$0xff] }
 0xb17   :  { %1427 = vmatprep.subr.mxu1 %v4791_v19 }
 0xb18   :  { %964 = vrot.lane.b32.xlu0 %v962_v52, %s4268_s22  ;;  %v4793_v52 = vld [vmem:[#allocation8 + $0x70] sm:$0xff] }
 0xb8a   :  { %v965_v53 = vpop.permute.xlu0 %964 }
 0xb8b   :  { %967 = vst.msk [vmem:[#allocation3 + $0x28] sm:$0xff] %vm420_vm4, %v965_v53  ;;  %3602 = vmatmul.mubr.msk.f32.vlgmr.msra.gmra.mxu0 %vm313_vm1, %v965_v53 }
 0xb8c   :  { %968 = vst.msk [vmem:[#allocation3 + $0x10] sm:$0xff] %vm422_vm5, %v965_v53  ;;  %1317 = vmatprep.mubr.f32.mxu0 %v4272_v1  ;;  %1270 = vmatpush1.msra.mxu0 %v1215_v36  ;;  %v4796_v53 = vld [vmem:[#allocation8 + $0x68] sm:$0xff] }
 0xb8d   :  { %1271 = vmatprep.subr.mxu0 %v1214_v49 }
 0xb8e   :  { %1272 = vmatpush1.msra.mxu0 %v1213_v0 }
 0xc4b   :  { %v1043_v28 = vpop.f32.mrf.mxu0 }
 0xc4c   :  { %v1048_v41 = vadd.f32 %v1043_v28, %v4630_v29  ;;  %v4801_v28 = vld [vmem:[#allocation8 + $0x60] sm:$0xff] }
 0xc4d   :  { %v1045_v35 = vpop.f32.mrf.mxu0 }
 0xc4e   :  { %v3603_v55 = vmul.f32 -1.442695, %v1048_v41  ;;  %v1049_v56 = vadd.f32 %v1045_v35, %v4638_v40  ;;  %v4803_v41 = vld [vmem:[#allocation8 + $0x58] sm:$0xff]  ;;  %v4808_v35 = vld [vmem:[#allocation8 + $0x48] sm:$0xff] }
 0xc50   :  { %4024 = vpow2.f32 %v3603_v55  ;;  %v3604_v62 = vmul.f32 -1.442695, %v1049_v56  ;;  %v4805_v55 = vld [vmem:[#allocation8 + $0x50] sm:$0xff] }
 0xc51   :  { %4026 = vtanh.f32 %v1049_v56  ;;  %v4813_v56 = vld [vmem:[#allocation8 + $0x40] sm:$0xff] }
 0xc5d   :  { %v4025_v7 = vpop.eup %4024 }
 0xc5e   :  { %v1053_v57 = vadd.f32 1.0, %v4025_v7  ;;  %v4027_v58 = vpop.eup %4026  ;;  %v4815_v7 = vld [vmem:[#allocation8 + $0x38] sm:$0xff] }
 0xc60   :  { %4028 = vrcp.f32 %v1053_v57  ;;  %v4817_v57 = vld [vmem:[#allocation8 + $0x30] sm:$0xff] }
 0xc61   :  { %4030 = vpow2.f32 %v3604_v62  ;;  %v4829_v62 = vld [vmem:[#allocation8 + $0x10] sm:$0xff] }
 0xc6d   :  { %v4029_v59 = vpop.eup %4028 }
 0xc6e   :  { %v1064_v61 = vmul.f32 %v4029_v59, %v4027_v58  ;;  %v4031_v63 = vpop.eup %4030  ;;  %v1063_v3 = vmul.f32 %v4029_v59, %v960_v5  ;;  %v4820_v58 = vld [vmem:[#allocation8 + $0x28] sm:$0xff]  ;;  %v4825_v59 = vld [vmem:[#allocation8 + $0x20] sm:$0xff] }
 0xc6f   :  { %v1060_v2 = vadd.f32 1.0, %v4031_v63  ;;  %v4832_v63 = vld [vmem:[#allocation8 + $0x8] sm:$0xff] }
 0xc70   :  { %1066 = vrot.lane.b32.xlu1 %v1064_v61, %s4268_s22  ;;  %v4827_v61 = vld [vmem:[#allocation8 + $0x18] sm:$0xff] }
 0xc71   :  { %4032 = vrcp.f32 %v1060_v2  ;;  %v4837_v2 = vld [vmem:[#allocation8] sm:$0xff] }
 0xc7e   :  { %v4033_v13 = vpop.eup %4032 }
 0xce2   :  { %v1067_v29 = vpop.permute.xlu1 %1066 }
 0xce3   :  { %v1069_v6 = vadd.f32 %v1067_v29, %v1063_v3  ;;  %v3616_v3 = vld [vmem:[%s5600_s1 + $0x8] sm:$0xff] }
 0xce4   :  { %v3617_v29 = vld [vmem:[%s5601_s2 + $0x8] sm:$0xff] }
 0xce5   :  { %4034 = vtanh.f32 %v1069_v6 }
 0xcf2   :  { %v4035_v40 = vpop.eup %4034 }
 0xcf3   :  { %v1071_v24 = vmul.f32 %v4035_v40, %v4033_v13 }
 0xcf5   :  { %1073 = vrot.lane.b32.xlu0 %v1071_v24, %s4268_s22  ;;  %v1195_v24 = vld [vmem:[#allocation3 + $0x10] sm:$0xff] }
 0xd67   :  { %v1074_v27 = vpop.permute.xlu0 %1073 }
 0xd68   :  { %1076 = vst.msk [vmem:[#allocation3 + $0x30] sm:$0xff] %vm420_vm4, %v1074_v27  ;;  %3605 = vmatmul.mubr.msk.f32.vlgmr.msra.gmra.mxu1 %vm313_vm1, %v1074_v27 }
 0xd69   :  { %1077 = vst.msk [vmem:[#allocation3 + $0x8] sm:$0xff] %vm422_vm5, %v1074_v27  ;;  %1475 = vmatprep.mubr.f32.mxu1 %v4272_v1  ;;  %1428 = vmatpush1.msra.mxu1 %v4793_v52  ;;  %v1196_v27 = vld [vmem:[#allocation3 + $0x18] sm:$0xff] }
 0xd6a   :  { %1429 = vmatprep.subr.mxu1 %v4796_v53 }
 0xd6b   :  { %1430 = vmatpush1.msra.mxu1 %v4801_v28 }
 0xd6c   :  { %1431 = vmatprep.subr.mxu1 %v4803_v41 }
 0xd6d   :  { %1432 = vmatpush1.msra.mxu1 %v4805_v55 }
 0xd6e   :  { %1433 = vmatprep.subr.mxu1 %v4808_v35 }
 0xd6f   :  { %1434 = vmatpush1.msra.mxu1 %v4813_v56 }
 0xd70   :  { %1435 = vmatprep.subr.mxu1 %v4815_v7  ;;  %v1194_v40 = vld [vmem:[#allocation3 + $0x8] sm:$0xff] }
 0xd71   :  { %1436 = vmatpush1.msra.mxu1 %v4817_v57 }
 0xd72   :  { %1437 = vmatprep.subr.mxu1 %v4820_v58 }
 0xd73   :  { %1438 = vmatpush1.msra.mxu1 %v4825_v59 }
 0xd74   :  { %1439 = vmatprep.subr.mxu1 %v4827_v61 }
 0xd75   :  { %1440 = vmatpush1.msra.mxu1 %v4829_v62 }
 0xd76   :  { %1441 = vmatprep.subr.mxu1 %v4832_v63 }
 0xd77   :  { %1442 = vmatpush1.msra.mxu1 %v4837_v2 }
 0xd78   :  { %3618 = vmatmul.mubr.msk.f32.vlgmr.msra.gmra.mxu1 %vm313_vm1, %v3616_v3  ;;  %1540 = vmatprep.subr.mxu1 %v4791_v19 }
 0xd79   :  { %1541 = vmatpush1.msra.mxu1 %v4793_v52  ;;  %1588 = vmatprep.mubr.f32.mxu1 %v4272_v1 }
 0xd7a   :  { %1542 = vmatprep.subr.mxu1 %v4796_v53 }
 0xd7b   :  { %1543 = vmatpush1.msra.mxu1 %v4801_v28 }
 0xd7c   :  { %1544 = vmatprep.subr.mxu1 %v4803_v41 }
 0xd7d   :  { %1545 = vmatpush1.msra.mxu1 %v4805_v55 }
 0xd7e   :  { %1546 = vmatprep.subr.mxu1 %v4808_v35 }
 0xd7f   :  { %1547 = vmatpush1.msra.mxu1 %v4813_v56 }
 0xd80   :  { %1548 = vmatprep.subr.mxu1 %v4815_v7 }
 0xd81   :  { %1549 = vmatpush1.msra.mxu1 %v4817_v57 }
 0xd82   :  { %1550 = vmatprep.subr.mxu1 %v4820_v58 }
 0xd83   :  { %1551 = vmatpush1.msra.mxu1 %v4825_v59 }
 0xd84   :  { %1552 = vmatprep.subr.mxu1 %v4827_v61 }
 0xd85   :  { %1553 = vmatpush1.msra.mxu1 %v4829_v62 }
 0xd86   :  { %1554 = vmatprep.subr.mxu1 %v4832_v63 }
 0xd87   :  { %1555 = vmatpush1.msra.mxu1 %v4837_v2 }
 0xd88   :  { %1758 = vmatprep.subr.mxu1 %v4791_v19 }
 0xe28   :  { %v1152_v30 = vpop.f32.mrf.mxu1 }
 0xe29   :  { %v1157_v31 = vadd.f32 %v1152_v30, %v4644_v42  ;;  %v1212_v42 = vld [vmem:[#allocation6 + $0x58] sm:$0xff] }
 0xe2a   :  { %v1154_v43 = vpop.f32.mrf.mxu1  ;;  %1273 = vmatprep.subr.mxu0 %v1212_v42  ;;  %v1197_v30 = vld [vmem:[#allocation3 + $0x20] sm:$0xff] }
 0xe2b   :  { %v3606_v32 = vmul.f32 -1.442695, %v1157_v31  ;;  %v1158_v45 = vadd.f32 %v1154_v43, %v4648_v39  ;;  %v1210_v39 = vld [vmem:[#allocation6 + $0x48] sm:$0xff]  ;;  %1274 = vmatpush1.msra.mxu0 %v1211_v44 }
 0xe2c   :  { %1275 = vmatprep.subr.mxu0 %v1210_v39  ;;  %v1198_v31 = vld [vmem:[#allocation3 + $0x28] sm:$0xff] }
 0xe2d   :  { %4036 = vpow2.f32 %v3606_v32  ;;  %1276 = vmatpush1.msra.mxu0 %v1209_v38  ;;  %v3607_v8 = vmul.f32 -1.442695, %v1158_v45  ;;  %v1199_v32 = vld [vmem:[#allocation3 + $0x30] sm:$0xff] }
 0xe2e   :  { %4038 = vtanh.f32 %v1158_v45  ;;  %1277 = vmatprep.subr.mxu0 %v1208_v15  ;;  %v1217_v45 = vld [vmem:[%s5608_s9] sm:$0x3] }
 0xe2f   :  { %1278 = vmatpush1.msra.mxu0 %v1207_v16 }
 0xe30   :  { %1279 = vmatprep.subr.mxu0 %v1206_v17 }
 0xe31   :  { %1280 = vmatpush1.msra.mxu0 %v1205_v20 }
 0xe32   :  { %1281 = vmatprep.subr.mxu0 %v1204_v21 }
 0xe33   :  { %1282 = vmatpush1.msra.mxu0 %v1203_v22 }
 0xe34   :  { %1283 = vmatprep.subr.mxu0 %v1202_v23 }
 0xe35   :  { %1284 = vmatpush1.msra.mxu0 %v1201_v25 }
 0xe36   :  { %1649 = vmatprep.subr.mxu0 %v4791_v19 }
 0xe3a   :  { %v4037_v4 = vpop.eup %4036 }
 0xe3b   :  { %v1162_v46 = vadd.f32 1.0, %v4037_v4  ;;  %v4039_v47 = vpop.eup %4038 }
 0xe3d   :  { %4040 = vrcp.f32 %v1162_v46 }
 0xe3e   :  { %4042 = vpow2.f32 %v3607_v8 }
 0xe4a   :  { %v4041_v18 = vpop.eup %4040 }
 0xe4b   :  { %v1173_v48 = vmul.f32 %v4041_v18, %v4039_v47  ;;  %v4043_v9 = vpop.eup %4042  ;;  %v1172_v11 = vmul.f32 %v4041_v18, %v1069_v6  ;;  %v1222_v47 = vrot.slane %v1217_v45, %v4570_v34 }
 0xe4c   :  { %v1169_v10 = vadd.f32 1.0, %v4043_v9 }
 0xe4d   :  { %1175 = vrot.lane.b32.xlu1 %v1173_v48, %s4268_s22  ;;  %v1226_v48 = vrot.slane %v1217_v45, %v4576_v37 }
 0xe4e   :  { %4044 = vrcp.f32 %v1169_v10 }
 0xe51   :  { %1498 = vrot.lane.b32.xlu1 %v3617_v29, %s4268_s22 }
 0xe5b   :  { %v4045_v26 = vpop.eup %4044 }
 0xebf   :  { %v1176_v12 = vpop.permute.xlu1 %1175 }
 0xec0   :  { %v4787_v14 = vadd.f32 %v1176_v12, %v1172_v11 }
 0xec2   :  { %4046 = vtanh.f32 %v4787_v14 }
 0xecf   :  { %v4047_v5 = vpop.eup %4046 }
 0xed0   :  { %v1180_v50 = vmul.f32 %v4047_v5, %v4045_v26 }
 0xed2   :  { %1182 = vrot.lane.b32.xlu0 %v1180_v50, %s4268_s22 }
 0xf44   :  { %v1183_v6 = vpop.permute.xlu0 %1182 }
 0xf45   :  { %1185 = vst.msk [vmem:[#allocation3 + $0x38] sm:$0xff] %vm420_vm4, %v1183_v6 }
 0xf46   :  { %1186 = vst.msk [vmem:[#allocation3] sm:$0xff] %vm422_vm5, %v1183_v6 }
 0xf47   :  { %1187 = vst.msk [vmem:[%s5614_s15] sm:$0xff] %vm313_vm1, %v1183_v6 }
 0xf4c   :  { %v1200_v43 = vld [vmem:[#allocation3 + $0x38] sm:$0xff] }
 0xf4d   :  { %v1193_v13 = vld [vmem:[#allocation3] sm:$0xff] }
 0xf4e   :  { %3608 = vmatmul.mubr.msk.f32.vlgmr.msra.gmra.mxu0 %vm313_vm1, %v1193_v13 }
 0xf4f   :  { %1323 = vmatprep.mubr.f32.mxu0 %v4272_v1  ;;  %1650 = vmatpush1.msra.mxu0 %v4793_v52 }
 0xf50   :  { %1651 = vmatprep.subr.mxu0 %v4796_v53 }
 0xf51   :  { %1652 = vmatpush1.msra.mxu0 %v4801_v28 }
 0xf52   :  { %3609 = vmatmul.mubr.msk.f32.gmra.mxu0 %vm313_vm1, %v1194_v40  ;;  %1653 = vmatprep.subr.mxu0 %v4803_v41 }
 0xf53   :  { %1329 = vmatprep.mubr.f32.mxu0 %v4272_v1  ;;  %1654 = vmatpush1.msra.mxu0 %v4805_v55 }
 0xf54   :  { %1655 = vmatprep.subr.mxu0 %v4808_v35 }
 0xf55   :  { %1656 = vmatpush1.msra.mxu0 %v4813_v56 }
 0xf56   :  { %3610 = vmatmul.mubr.msk.f32.gmra.mxu0 %vm313_vm1, %v1195_v24  ;;  %1657 = vmatprep.subr.mxu0 %v4815_v7 }
 0xf57   :  { %1335 = vmatprep.mubr.f32.mxu0 %v4272_v1  ;;  %1658 = vmatpush1.msra.mxu0 %v4817_v57 }
 0xf58   :  { %1659 = vmatprep.subr.mxu0 %v4820_v58 }
 0xf59   :  { %1660 = vmatpush1.msra.mxu0 %v4825_v59 }
 0xf5a   :  { %3611 = vmatmul.mubr.msk.f32.gmra.mxu0 %vm313_vm1, %v1196_v27  ;;  %1661 = vmatprep.subr.mxu0 %v4827_v61 }
 0xf5b   :  { %1341 = vmatprep.mubr.f32.mxu0 %v4272_v1  ;;  %1662 = vmatpush1.msra.mxu0 %v4829_v62 }
 0xf5c   :  { %1663 = vmatprep.subr.mxu0 %v4832_v63 }
 0xf5d   :  { %1664 = vmatpush1.msra.mxu0 %v4837_v2 }
 0xf5e   :  { %3612 = vmatmul.mubr.msk.f32.gmra.mxu0 %vm313_vm1, %v1197_v30  ;;  %1867 = vmatprep.subr.mxu0 %v4791_v19 }
 0xf5f   :  { %1347 = vmatprep.mubr.f32.mxu0 %v4272_v1 }
 0xf62   :  { %3613 = vmatmul.mubr.msk.f32.gmra.mxu0 %vm313_vm1, %v1198_v31 }
 0xf63   :  { %1353 = vmatprep.mubr.f32.mxu0 %v4272_v1 }
 0xf66   :  { %3614 = vmatmul.mubr.msk.f32.gmra.mxu0 %vm313_vm1, %v1199_v32 }
 0xf67   :  { %1359 = vmatprep.mubr.f32.mxu0 %v4272_v1 }
 0xf6a   :  { %3615 = vmatmul.mubr.msk.f32.gmra.mxu0 %vm313_vm1, %v1200_v43 }
 0xf6b   :  { %1697 = vmatprep.mubr.f32.mxu0 %v4272_v1 }
0x100e   :  { %v1319_v4 = vpop.f32.mrf.mxu0 }
0x100f   :  { %v1320_v43 = vadd.f32 %v1319_v4, %v1222_v47 }
0x1010   :  { %v1321_v46 = vpop.f32.mrf.mxu0 }
0x1012   :  { %v1325_v18 = vpop.f32.mrf.mxu0 }
0x1013   :  { %v1326_v60 = vadd.f32 %v1325_v18, %v1222_v47 }
0x1014   :  { %v1327_v36 = vpop.f32.mrf.mxu0 }
0x1015   :  { %v1328_v49 = vadd.f32 %v1327_v36, %v1226_v48 }
0x1016   :  { %v1331_v0 = vpop.f32.mrf.mxu0 }
0x1017   :  { %v1332_v42 = vadd.f32 %v1331_v0, %v1222_v47 }
0x1018   :  { %v1333_v44 = vpop.f32.mrf.mxu0 }
0x1019   :  { %v1334_v39 = vadd.f32 %v1333_v44, %v1226_v48 }
0x101a   :  { %v1337_v38 = vpop.f32.mrf.mxu0 }
0x101b   :  { %v1338_v8 = vadd.f32 %v1337_v38, %v1222_v47 }
0x101c   :  { %v1339_v9 = vpop.f32.mrf.mxu0 }
0x101d   :  { %v1340_v10 = vadd.f32 %v1339_v9, %v1226_v48 }
0x101e   :  { %v1343_v11 = vpop.f32.mrf.mxu0 }
0x101f   :  { %v1344_v12 = vadd.f32 %v1343_v11, %v1222_v47 }
0x1020   :  { %v1345_v15 = vpop.f32.mrf.mxu0 }
0x1021   :  { %v1346_v16 = vadd.f32 %v1345_v15, %v1226_v48  ;;  %v4911_v17 = vsel %vm109_vm2, %v1338_v8, %v1344_v12  ;;  %v4915_v20 = vsel %vm109_vm2, %v1344_v12, %v1338_v8 }
0x1022   :  { %v1349_v21 = vpop.f32.mrf.mxu0 }
0x1023   :  { %v1350_v22 = vadd.f32 %v1349_v21, %v1222_v47  ;;  %v4919_v23 = vsel %vm110_vm3, %v1340_v10, %v1346_v16  ;;  %v4923_v25 = vsel %vm110_vm3, %v1346_v16, %v1340_v10  ;;  %v1499_v21 = vpop.permute.xlu1 %1498 }
0x1024   :  { %v1351_v26 = vpop.f32.mrf.mxu0 }
0x1025   :  { %v1352_v5 = vadd.f32 %v1351_v26, %v1226_v48  ;;  %v4927_v50 = vsel %vm109_vm2, %v1332_v42, %v1350_v22  ;;  %v4931_v3 = vsel %vm109_vm2, %v1350_v22, %v1332_v42  ;;  %v1322_v42 = vadd.f32 %v1321_v46, %v1226_v48 }
0x1026   :  { %v1355_v29 = vpop.f32.mrf.mxu0 }
0x1027   :  { %v1356_v6 = vadd.f32 %v1355_v29, %v1222_v47  ;;  %v4935_v13 = vsel %vm110_vm3, %v1334_v39, %v1352_v5  ;;  %v4939_v40 = vsel %vm110_vm3, %v1352_v5, %v1334_v39  ;;  %v1477_v39 = vpop.f32.mrf.mxu1 }
0x1028   :  { %v1357_v24 = vpop.f32.mrf.mxu0 }
0x1029   :  { %v1358_v27 = vadd.f32 %v1357_v24, %v1226_v48  ;;  %v4943_v30 = vsel %vm109_vm2, %v1326_v60, %v1356_v6  ;;  %v4947_v31 = vsel %vm109_vm2, %v1356_v6, %v1326_v60  ;;  %v1479_v46 = vpop.f32.mrf.mxu1 }
0x102a   :  { %v1361_v32 = vpop.f32.mrf.mxu0 }
0x102b   :  { %v1362_v45 = vadd.f32 %v1361_v32, %v1222_v47  ;;  %v4951_v18 = vsel %vm110_vm3, %v1328_v49, %v1358_v27  ;;  %v4955_v36 = vsel %vm110_vm3, %v1358_v27, %v1328_v49 }
0x102c   :  { %v1363_v0 = vpop.f32.mrf.mxu0 }
0x102d   :  { %v1406_v44 = vsel %vm109_vm2, %v1320_v43, %v1362_v45  ;;  %v1364_v38 = vadd.f32 %v1363_v0, %v1226_v48  ;;  %v4961_v60 = vsel %vm109_vm2, %v1362_v45, %v1320_v43 }
0x102e   :  { %v1482_v4 = vadd.f32 %v1477_v39, %v1406_v44 }
0x102f   :  { %v4965_v47 = vsel %vm110_vm3, %v1364_v38, %v1322_v42  ;;  %v1407_v49 = vsel %vm110_vm3, %v1322_v42, %v1364_v38 }
0x1030   :  { %v3619_v8 = vmul.f32 -1.442695, %v1482_v4  ;;  %v1483_v9 = vadd.f32 %v1479_v46, %v1407_v49 }
0x1032   :  { %4048 = vpow2.f32 %v3619_v8  ;;  %v3620_v15 = vmul.f32 -1.442695, %v1483_v9 }
0x1033   :  { %4050 = vtanh.f32 %v1483_v9 }
0x103f   :  { %v4049_v10 = vpop.eup %4048 }
0x1040   :  { %v1487_v11 = vadd.f32 1.0, %v4049_v10  ;;  %v4051_v48 = vpop.eup %4050 }
0x1042   :  { %4052 = vrcp.f32 %v1487_v11 }
0x1043   :  { %4054 = vpow2.f32 %v3620_v15 }
0x104f   :  { %v4053_v51 = vpop.eup %4052 }
0x1050   :  { %v1502_v12 = vmul.f32 %v4053_v51, %v4051_v48  ;;  %v4055_v16 = vpop.eup %4054  ;;  %v1501_v26 = vmul.f32 %v4053_v51, %v1499_v21 }
0x1051   :  { %v1494_v22 = vadd.f32 1.0, %v4055_v16 }
0x1052   :  { %1504 = vrot.lane.b32.xlu0 %v1502_v12, %s4268_s22 }
0x1053   :  { %4056 = vrcp.f32 %v1494_v22 }
0x1060   :  { %v4057_v29 = vpop.eup %4056 }
0x10c4   :  { %v1505_v5 = vpop.permute.xlu0 %1504 }
0x10c5   :  { %v1507_v54 = vadd.f32 %v1505_v5, %v1501_v26 }
0x10c7   :  { %4058 = vtanh.f32 %v1507_v54 }
0x10d4   :  { %v4059_v6 = vpop.eup %4058 }
0x10d5   :  { %v1509_v24 = vmul.f32 %v4059_v6, %v4057_v29 }
0x10d7   :  { %1511 = vrot.lane.b32.xlu1 %v1509_v24, %s4268_s22 }
0x1149   :  { %v1512_v27 = vpop.permute.xlu1 %1511 }
0x114a   :  { %1514 = vst.msk [vmem:[#allocation4] sm:$0xff] %vm420_vm4, %v1512_v27  ;;  %3621 = vmatmul.mubr.msk.f32.vlgmr.msra.gmra.mxu1 %vm313_vm1, %v1512_v27 }
0x114b   :  { %1515 = vst.msk [vmem:[#allocation4 + $0x38] sm:$0xff] %vm422_vm5, %v1512_v27  ;;  %1759 = vmatpush1.msra.mxu1 %v4793_v52  ;;  %1806 = vmatprep.mubr.f32.mxu1 %v4272_v1 }
0x114c   :  { %1760 = vmatprep.subr.mxu1 %v4796_v53 }
0x114d   :  { %1761 = vmatpush1.msra.mxu1 %v4801_v28 }
0x114e   :  { %1762 = vmatprep.subr.mxu1 %v4803_v41 }
0x114f   :  { %1763 = vmatpush1.msra.mxu1 %v4805_v55 }
0x1150   :  { %1764 = vmatprep.subr.mxu1 %v4808_v35 }
0x1151   :  { %1765 = vmatpush1.msra.mxu1 %v4813_v56 }
0x1152   :  { %1766 = vmatprep.subr.mxu1 %v4815_v7 }
0x1153   :  { %1767 = vmatpush1.msra.mxu1 %v4817_v57 }
0x1154   :  { %1768 = vmatprep.subr.mxu1 %v4820_v58 }
0x1155   :  { %1769 = vmatpush1.msra.mxu1 %v4825_v59 }
0x1156   :  { %1770 = vmatprep.subr.mxu1 %v4827_v61 }
0x1157   :  { %1771 = vmatpush1.msra.mxu1 %v4829_v62 }
0x1158   :  { %1772 = vmatprep.subr.mxu1 %v4832_v63 }
0x1159   :  { %1773 = vmatpush1.msra.mxu1 %v4837_v2 }
0x115a   :  { %1976 = vmatprep.subr.mxu1 %v4791_v19 }
0x120a   :  { %v1590_v32 = vpop.f32.mrf.mxu1 }
0x120b   :  { %v1595_v43 = vadd.f32 %v1590_v32, %v4943_v30 }
0x120c   :  { %v1592_v0 = vpop.f32.mrf.mxu1 }
0x120d   :  { %v3622_v45 = vmul.f32 -1.442695, %v1595_v43  ;;  %v1596_v42 = vadd.f32 %v1592_v0, %v4951_v18 }
0x120f   :  { %4060 = vpow2.f32 %v3622_v45  ;;  %v3623_v49 = vmul.f32 -1.442695, %v1596_v42 }
0x1210   :  { %4062 = vtanh.f32 %v1596_v42 }
0x121c   :  { %v4061_v44 = vpop.eup %4060 }
0x121d   :  { %v1600_v39 = vadd.f32 1.0, %v4061_v44  ;;  %v4063_v38 = vpop.eup %4062 }
0x121f   :  { %4064 = vrcp.f32 %v1600_v39 }
0x1220   :  { %4066 = vpow2.f32 %v3623_v49 }
0x122c   :  { %v4065_v4 = vpop.eup %4064 }
0x122d   :  { %v1611_v8 = vmul.f32 %v4065_v4, %v4063_v38  ;;  %v4067_v46 = vpop.eup %4066  ;;  %v1610_v10 = vmul.f32 %v4065_v4, %v1507_v54 }
0x122e   :  { %v1607_v9 = vadd.f32 1.0, %v4067_v46 }
0x122f   :  { %1613 = vrot.lane.b32.xlu0 %v1611_v8, %s4268_s22 }
0x1230   :  { %4068 = vrcp.f32 %v1607_v9 }
0x123d   :  { %v4069_v48 = vpop.eup %4068 }
0x12a1   :  { %v1614_v30 = vpop.permute.xlu0 %1613 }
0x12a2   :  { %v1616_v11 = vadd.f32 %v1614_v30, %v1610_v10 }
0x12a4   :  { %4070 = vtanh.f32 %v1616_v11 }
0x12b1   :  { %v4071_v18 = vpop.eup %4070 }
0x12b2   :  { %v1618_v51 = vmul.f32 %v4071_v18, %v4069_v48 }
0x12b4   :  { %1620 = vrot.lane.b32.xlu1 %v1618_v51, %s4268_s22 }
0x1326   :  { %v1621_v12 = vpop.permute.xlu1 %1620 }
0x1327   :  { %1623 = vst.msk [vmem:[#allocation4 + $0x8] sm:$0xff] %vm420_vm4, %v1621_v12  ;;  %3624 = vmatmul.mubr.msk.f32.vlgmr.msra.gmra.mxu0 %vm313_vm1, %v1621_v12 }
0x1328   :  { %1624 = vst.msk [vmem:[#allocation4 + $0x30] sm:$0xff] %vm422_vm5, %v1621_v12  ;;  %1868 = vmatpush1.msra.mxu0 %v4793_v52  ;;  %1915 = vmatprep.mubr.f32.mxu0 %v4272_v1 }
0x1329   :  { %1869 = vmatprep.subr.mxu0 %v4796_v53 }
0x132a   :  { %1870 = vmatpush1.msra.mxu0 %v4801_v28 }
0x132b   :  { %1871 = vmatprep.subr.mxu0 %v4803_v41 }
0x132c   :  { %1872 = vmatpush1.msra.mxu0 %v4805_v55 }
0x132d   :  { %1873 = vmatprep.subr.mxu0 %v4808_v35 }
0x132e   :  { %1874 = vmatpush1.msra.mxu0 %v4813_v56 }
0x132f   :  { %1875 = vmatprep.subr.mxu0 %v4815_v7 }
0x1330   :  { %1876 = vmatpush1.msra.mxu0 %v4817_v57 }
0x1331   :  { %1877 = vmatprep.subr.mxu0 %v4820_v58 }
0x1332   :  { %1878 = vmatpush1.msra.mxu0 %v4825_v59 }
0x1333   :  { %1879 = vmatprep.subr.mxu0 %v4827_v61 }
0x1334   :  { %1880 = vmatpush1.msra.mxu0 %v4829_v62 }
0x1335   :  { %1881 = vmatprep.subr.mxu0 %v4832_v63 }
0x1336   :  { %1882 = vmatpush1.msra.mxu0 %v4837_v2 }
0x1337   :  { %2085 = vmatprep.subr.mxu0 %v4791_v19 }
0x13e7   :  { %v1699_v15 = vpop.f32.mrf.mxu0 }
0x13e8   :  { %v1704_v16 = vadd.f32 %v1699_v15, %v4927_v50 }
0x13e9   :  { %v1701_v22 = vpop.f32.mrf.mxu0 }
0x13ea   :  { %v3625_v21 = vmul.f32 -1.442695, %v1704_v16  ;;  %v1705_v26 = vadd.f32 %v1701_v22, %v4935_v13 }
0x13ec   :  { %4072 = vpow2.f32 %v3625_v21  ;;  %v3626_v27 = vmul.f32 -1.442695, %v1705_v26 }
0x13ed   :  { %4074 = vtanh.f32 %v1705_v26 }
0x13f9   :  { %v4073_v5 = vpop.eup %4072 }
0x13fa   :  { %v1709_v54 = vadd.f32 1.0, %v4073_v5  ;;  %v4075_v29 = vpop.eup %4074 }
0x13fc   :  { %4076 = vrcp.f32 %v1709_v54 }
0x13fd   :  { %4078 = vpow2.f32 %v3626_v27 }
0x1409   :  { %v4077_v6 = vpop.eup %4076 }
0x140a   :  { %v1720_v24 = vmul.f32 %v4077_v6, %v4075_v29  ;;  %v4079_v32 = vpop.eup %4078  ;;  %v1719_v45 = vmul.f32 %v4077_v6, %v1616_v11 }
0x140b   :  { %v1716_v43 = vadd.f32 1.0, %v4079_v32 }
0x140c   :  { %1722 = vrot.lane.b32.xlu0 %v1720_v24, %s4268_s22 }
0x140d   :  { %4080 = vrcp.f32 %v1716_v43 }
0x141a   :  { %v4081_v42 = vpop.eup %4080 }
0x147e   :  { %v1723_v50 = vpop.permute.xlu0 %1722 }
0x147f   :  { %v1725_v0 = vadd.f32 %v1723_v50, %v1719_v45 }
0x1481   :  { %4082 = vtanh.f32 %v1725_v0 }
0x148e   :  { %v4083_v13 = vpop.eup %4082 }
0x148f   :  { %v1727_v44 = vmul.f32 %v4083_v13, %v4081_v42 }
0x1491   :  { %1729 = vrot.lane.b32.xlu1 %v1727_v44, %s4268_s22 }
0x1503   :  { %v1730_v39 = vpop.permute.xlu1 %1729 }
0x1504   :  { %1732 = vst.msk [vmem:[#allocation4 + $0x10] sm:$0xff] %vm420_vm4, %v1730_v39  ;;  %3627 = vmatmul.mubr.msk.f32.vlgmr.msra.gmra.mxu1 %vm313_vm1, %v1730_v39 }
0x1505   :  { %1733 = vst.msk [vmem:[#allocation4 + $0x28] sm:$0xff] %vm422_vm5, %v1730_v39  ;;  %1977 = vmatpush1.msra.mxu1 %v4793_v52  ;;  %2024 = vmatprep.mubr.f32.mxu1 %v4272_v1 }
0x1506   :  { %1978 = vmatprep.subr.mxu1 %v4796_v53 }
0x1507   :  { %1979 = vmatpush1.msra.mxu1 %v4801_v28 }
0x1508   :  { %1980 = vmatprep.subr.mxu1 %v4803_v41 }
0x1509   :  { %1981 = vmatpush1.msra.mxu1 %v4805_v55 }
0x150a   :  { %1982 = vmatprep.subr.mxu1 %v4808_v35 }
0x150b   :  { %1983 = vmatpush1.msra.mxu1 %v4813_v56 }
0x150c   :  { %1984 = vmatprep.subr.mxu1 %v4815_v7 }
0x150d   :  { %1985 = vmatpush1.msra.mxu1 %v4817_v57 }
0x150e   :  { %1986 = vmatprep.subr.mxu1 %v4820_v58 }
0x150f   :  { %1987 = vmatpush1.msra.mxu1 %v4825_v59 }
0x1510   :  { %1988 = vmatprep.subr.mxu1 %v4827_v61 }
0x1511   :  { %1989 = vmatpush1.msra.mxu1 %v4829_v62 }
0x1512   :  { %1990 = vmatprep.subr.mxu1 %v4832_v63 }
0x1513   :  { %1991 = vmatpush1.msra.mxu1 %v4837_v2 }
0x1514   :  { %2194 = vmatprep.subr.mxu1 %v4791_v19 }
0x15c4   :  { %v1808_v38 = vpop.f32.mrf.mxu1 }
0x15c5   :  { %v1813_v4 = vadd.f32 %v1808_v38, %v4911_v17 }
0x15c6   :  { %v1810_v49 = vpop.f32.mrf.mxu1 }
0x15c7   :  { %v3628_v8 = vmul.f32 -1.442695, %v1813_v4  ;;  %v1814_v46 = vadd.f32 %v1810_v49, %v4919_v23 }
0x15c9   :  { %4084 = vpow2.f32 %v3628_v8  ;;  %v3629_v18 = vmul.f32 -1.442695, %v1814_v46 }
0x15ca   :  { %4086 = vtanh.f32 %v1814_v46 }
0x15d6   :  { %v4085_v9 = vpop.eup %4084 }
0x15d7   :  { %v1818_v10 = vadd.f32 1.0, %v4085_v9  ;;  %v4087_v30 = vpop.eup %4086 }
0x15d9   :  { %4088 = vrcp.f32 %v1818_v10 }
0x15da   :  { %4090 = vpow2.f32 %v3629_v18 }
0x15e6   :  { %v4089_v11 = vpop.eup %4088 }
0x15e7   :  { %v1829_v48 = vmul.f32 %v4089_v11, %v4087_v30  ;;  %v4091_v19 = vpop.eup %4090  ;;  %v1828_v12 = vmul.f32 %v4089_v11, %v1725_v0 }
0x15e8   :  { %v1825_v51 = vadd.f32 1.0, %v4091_v19 }
0x15e9   :  { %1831 = vrot.lane.b32.xlu0 %v1829_v48, %s4268_s22 }
0x15ea   :  { %4092 = vrcp.f32 %v1825_v51 }
0x15f7   :  { %v4093_v16 = vpop.eup %4092 }
0x165b   :  { %v1832_v17 = vpop.permute.xlu0 %1831 }
0x165c   :  { %v1834_v15 = vadd.f32 %v1832_v17, %v1828_v12 }
0x165e   :  { %4094 = vtanh.f32 %v1834_v15 }
0x166b   :  { %v4095_v23 = vpop.eup %4094 }
0x166c   :  { %v1836_v21 = vmul.f32 %v4095_v23, %v4093_v16 }
0x166e   :  { %1838 = vrot.lane.b32.xlu1 %v1836_v21, %s4268_s22 }
0x16e0   :  { %v1839_v22 = vpop.permute.xlu1 %1838 }
0x16e1   :  { %1841 = vst.msk [vmem:[#allocation4 + $0x18] sm:$0xff] %vm420_vm4, %v1839_v22  ;;  %3630 = vmatmul.mubr.msk.f32.vlgmr.msra.gmra.mxu0 %vm313_vm1, %v1839_v22 }
0x16e2   :  { %1842 = vst.msk [vmem:[#allocation4 + $0x20] sm:$0xff] %vm422_vm5, %v1839_v22  ;;  %2086 = vmatpush1.msra.mxu0 %v4793_v52  ;;  %2133 = vmatprep.mubr.f32.mxu0 %v4272_v1 }
0x16e3   :  { %2087 = vmatprep.subr.mxu0 %v4796_v53 }
0x16e4   :  { %2088 = vmatpush1.msra.mxu0 %v4801_v28 }
0x16e5   :  { %2089 = vmatprep.subr.mxu0 %v4803_v41 }
0x16e6   :  { %2090 = vmatpush1.msra.mxu0 %v4805_v55 }
0x16e7   :  { %2091 = vmatprep.subr.mxu0 %v4808_v35 }
0x16e8   :  { %2092 = vmatpush1.msra.mxu0 %v4813_v56 }
0x16e9   :  { %2093 = vmatprep.subr.mxu0 %v4815_v7 }
0x16ea   :  { %2094 = vmatpush1.msra.mxu0 %v4817_v57 }
0x16eb   :  { %2095 = vmatprep.subr.mxu0 %v4820_v58 }
0x16ec   :  { %2096 = vmatpush1.msra.mxu0 %v4825_v59 }
0x16ed   :  { %2097 = vmatprep.subr.mxu0 %v4827_v61 }
0x16ee   :  { %2098 = vmatpush1.msra.mxu0 %v4829_v62 }
0x16ef   :  { %2099 = vmatprep.subr.mxu0 %v4832_v63 }
0x16f0   :  { %2100 = vmatpush1.msra.mxu0 %v4837_v2 }
0x17a1   :  { %v1917_v26 = vpop.f32.mrf.mxu0 }
0x17a2   :  { %v1922_v5 = vadd.f32 %v1917_v26, %v4915_v20 }
0x17a3   :  { %v1919_v29 = vpop.f32.mrf.mxu0 }
0x17a4   :  { %v3631_v54 = vmul.f32 -1.442695, %v1922_v5  ;;  %v1923_v6 = vadd.f32 %v1919_v29, %v4923_v25 }
0x17a6   :  { %4096 = vpow2.f32 %v3631_v54  ;;  %v3632_v50 = vmul.f32 -1.442695, %v1923_v6 }
0x17a7   :  { %4098 = vtanh.f32 %v1923_v6 }
0x17b3   :  { %v4097_v24 = vpop.eup %4096 }
0x17b4   :  { %v1927_v27 = vadd.f32 1.0, %v4097_v24  ;;  %v4099_v32 = vpop.eup %4098 }
0x17b6   :  { %4100 = vrcp.f32 %v1927_v27 }
0x17b7   :  { %4102 = vpow2.f32 %v3632_v50 }
0x17c3   :  { %v4101_v43 = vpop.eup %4100 }
0x17c4   :  { %v1938_v45 = vmul.f32 %v4101_v43, %v4099_v32  ;;  %v4103_v0 = vpop.eup %4102  ;;  %v1937_v13 = vmul.f32 %v4101_v43, %v1834_v15 }
0x17c5   :  { %v1934_v42 = vadd.f32 1.0, %v4103_v0 }
0x17c6   :  { %1940 = vrot.lane.b32.xlu0 %v1938_v45, %s4268_s22 }
0x17c7   :  { %4104 = vrcp.f32 %v1934_v42 }
0x17d4   :  { %v4105_v39 = vpop.eup %4104 }
0x1838   :  { %v1941_v20 = vpop.permute.xlu0 %1940 }
0x1839   :  { %v1943_v44 = vadd.f32 %v1941_v20, %v1937_v13  ;;  %v2360_v13 = vld [vmem:[#allocation10 + $0x1c8] sm:$0xff]  ;;  %v2359_v20 = vld [vmem:[#allocation10 + $0x1c0] sm:$0xff] }
0x183a   :  { %2449 = vmatprep.subr.mxu0 %v2360_v13  ;;  %v2340_v13 = vld [vmem:[#allocation10 + $0x128] sm:$0xff] }
0x183b   :  { %4106 = vtanh.f32 %v1943_v44 }
0x1848   :  { %v4107_v25 = vpop.eup %4106 }
0x1849   :  { %v1945_v38 = vmul.f32 %v4107_v25, %v4105_v39  ;;  %v2361_v39 = vld [vmem:[#allocation10 + $0x1d0] sm:$0xff]  ;;  %v2354_v25 = vld [vmem:[#allocation10 + $0x198] sm:$0xff] }
0x184b   :  { %1947 = vrot.lane.b32.xlu1 %v1945_v38, %s4268_s22  ;;  %v2344_v38 = vld [vmem:[#allocation10 + $0x148] sm:$0xff] }
0x18bd   :  { %v1948_v4 = vpop.permute.xlu1 %1947 }
0x18be   :  { %1950 = vst.msk [vmem:[#allocation4 + $0x20] sm:$0xff] %vm420_vm4, %v1948_v4  ;;  %3633 = vmatmul.mubr.msk.f32.vlgmr.msra.gmra.mxu1 %vm313_vm1, %v1948_v4 }
0x18bf   :  { %1951 = vst.msk [vmem:[#allocation4 + $0x18] sm:$0xff] %vm422_vm5, %v1948_v4  ;;  %2195 = vmatpush1.msra.mxu1 %v4793_v52  ;;  %2242 = vmatprep.mubr.f32.mxu1 %v4272_v1  ;;  %v2353_v4 = vld [vmem:[#allocation10 + $0x190] sm:$0xff] }
0x18c0   :  { %2196 = vmatprep.subr.mxu1 %v4796_v53 }
0x18c1   :  { %2197 = vmatpush1.msra.mxu1 %v4801_v28 }
0x18c2   :  { %2198 = vmatprep.subr.mxu1 %v4803_v41 }
0x18c3   :  { %2199 = vmatpush1.msra.mxu1 %v4805_v55 }
0x18c4   :  { %2200 = vmatprep.subr.mxu1 %v4808_v35 }
0x18c5   :  { %2201 = vmatpush1.msra.mxu1 %v4813_v56 }
0x18c6   :  { %2202 = vmatprep.subr.mxu1 %v4815_v7 }
0x18c7   :  { %2203 = vmatpush1.msra.mxu1 %v4817_v57 }
0x18c8   :  { %2204 = vmatprep.subr.mxu1 %v4820_v58 }
0x18c9   :  { %2205 = vmatpush1.msra.mxu1 %v4825_v59 }
0x18ca   :  { %2206 = vmatprep.subr.mxu1 %v4827_v61 }
0x18cb   :  { %2207 = vmatpush1.msra.mxu1 %v4829_v62 }
0x18cc   :  { %2208 = vmatprep.subr.mxu1 %v4832_v63 }
0x18cd   :  { %2209 = vmatpush1.msra.mxu1 %v4837_v2 }
0x197e   :  { %v2026_v52 = vpop.f32.mrf.mxu1 }
0x197f   :  { %v2031_v53 = vadd.f32 %v2026_v52, %v4931_v3  ;;  %v2343_v52 = vld [vmem:[#allocation10 + $0x140] sm:$0xff] }
0x1980   :  { %v2028_v41 = vpop.f32.mrf.mxu1 }
0x1981   :  { %v3634_v28 = vmul.f32 -1.442695, %v2031_v53  ;;  %v2032_v55 = vadd.f32 %v2028_v41, %v4939_v40  ;;  %v2346_v53 = vld [vmem:[#allocation10 + $0x158] sm:$0xff] }
0x1983   :  { %4108 = vpow2.f32 %v3634_v28  ;;  %v3635_v59 = vmul.f32 -1.442695, %v2032_v55  ;;  %v2345_v28 = vld [vmem:[#allocation10 + $0x150] sm:$0xff] }
0x1984   :  { %4110 = vtanh.f32 %v2032_v55 }
0x1990   :  { %v4109_v35 = vpop.eup %4108 }
0x1991   :  { %v2036_v56 = vadd.f32 1.0, %v4109_v35  ;;  %v4111_v7 = vpop.eup %4110 }
0x1993   :  { %4112 = vrcp.f32 %v2036_v56 }
0x1994   :  { %4114 = vpow2.f32 %v3635_v59  ;;  %v2335_v59 = vld [vmem:[#allocation10 + $0x100] sm:$0xff] }
0x19a0   :  { %v4113_v57 = vpop.eup %4112 }
0x19a1   :  { %v2047_v58 = vmul.f32 %v4113_v57, %v4111_v7  ;;  %v4115_v61 = vpop.eup %4114  ;;  %v2046_v63 = vmul.f32 %v4113_v57, %v1943_v44  ;;  %v2352_v44 = vld [vmem:[#allocation10 + $0x188] sm:$0xff] }
0x19a2   :  { %v2043_v62 = vadd.f32 1.0, %v4115_v61  ;;  %v2338_v61 = vld [vmem:[#allocation10 + $0x118] sm:$0xff] }
0x19a3   :  { %2049 = vrot.lane.b32.xlu0 %v2047_v58, %s4268_s22 }
0x19a4   :  { %4116 = vrcp.f32 %v2043_v62  ;;  %v2328_v62 = vld [vmem:[#allocation10 + $0xc8] sm:$0xff] }
0x19b1   :  { %v4117_v8 = vpop.eup %4116 }
0x1a15   :  { %v2050_v2 = vpop.permute.xlu0 %2049 }
0x1a16   :  { %v2052_v3 = vadd.f32 %v2050_v2, %v2046_v63  ;;  %v2337_v63 = vld [vmem:[#allocation10 + $0x110] sm:$0xff]  ;;  %v2327_v2 = vld [vmem:[#allocation10 + $0xc0] sm:$0xff] }
0x1a18   :  { %4118 = vtanh.f32 %v2052_v3 }
0x1a25   :  { %v4119_v40 = vpop.eup %4118 }
0x1a26   :  { %v2054_v49 = vmul.f32 %v4119_v40, %v4117_v8  ;;  %v2320_v8 = vld [vmem:[#allocation10 + $0x88] sm:$0xff]  ;;  %v2329_v40 = vld [vmem:[#allocation10 + $0xd0] sm:$0xff] }
0x1a28   :  { %2056 = vrot.lane.b32.xlu1 %v2054_v49, %s4268_s22  ;;  %v2319_v49 = vld [vmem:[#allocation10 + $0x80] sm:$0xff] }
0x1a9a   :  { %v2057_v46 = vpop.permute.xlu1 %2056 }
0x1a9b   :  { %2059 = vst.msk [vmem:[#allocation4 + $0x28] sm:$0xff] %vm420_vm4, %v2057_v46  ;;  %3636 = vmatmul.mubr.msk.f32.vlgmr.msra.gmra.mxu0 %vm313_vm1, %v2057_v46 }
0x1a9c   :  { %2060 = vst.msk [vmem:[#allocation4 + $0x10] sm:$0xff] %vm422_vm5, %v2057_v46  ;;  %2497 = vmatprep.mubr.f32.mxu0 %v4272_v1  ;;  %2450 = vmatpush1.msra.mxu0 %v2359_v20  ;;  %v2322_v46 = vld [vmem:[#allocation10 + $0x98] sm:$0xff] }
0x1a9d   :  { %2451 = vmatprep.subr.mxu0 %v2352_v44  ;;  %v2350_v20 = vld [vmem:[#allocation10 + $0x178] sm:$0xff]  ;;  %v2339_v44 = vld [vmem:[#allocation10 + $0x120] sm:$0xff] }
0x1b5b   :  { %v2135_v9 = vpop.f32.mrf.mxu0 }
0x1b5c   :  { %v2140_v10 = vadd.f32 %v2135_v9, %v4947_v31  ;;  %v2312_v9 = vld [vmem:[#allocation10 + $0x48] sm:$0xff] }
0x1b5d   :  { %v2137_v11 = vpop.f32.mrf.mxu0 }
0x1b5e   :  { %v3637_v30 = vmul.f32 -1.442695, %v2140_v10  ;;  %v2141_v48 = vadd.f32 %v2137_v11, %v4955_v36  ;;  %v2321_v10 = vld [vmem:[#allocation10 + $0x90] sm:$0xff]  ;;  %v2314_v11 = vld [vmem:[#allocation10 + $0x58] sm:$0xff] }
0x1b60   :  { %4120 = vpow2.f32 %v3637_v30  ;;  %v3638_v15 = vmul.f32 -1.442695, %v2141_v48  ;;  %v2311_v30 = vld [vmem:[#allocation10 + $0x40] sm:$0xff] }
0x1b61   :  { %4122 = vtanh.f32 %v2141_v48  ;;  %v2304_v48 = vld [vmem:[#allocation10 + $0x8] sm:$0xff] }
0x1b6d   :  { %v4121_v18 = vpop.eup %4120 }
0x1b6e   :  { %v2145_v19 = vadd.f32 1.0, %v4121_v18  ;;  %v4123_v51 = vpop.eup %4122  ;;  %v2313_v18 = vld [vmem:[#allocation10 + $0x50] sm:$0xff] }
0x1b70   :  { %4124 = vrcp.f32 %v2145_v19  ;;  %v2303_v19 = vld [vmem:[#allocation10] sm:$0xff] }
0x1b71   :  { %4126 = vpow2.f32 %v3638_v15 }
0x1b7d   :  { %v4125_v12 = vpop.eup %4124 }
0x1b7e   :  { %v2156_v17 = vmul.f32 %v4125_v12, %v4123_v51  ;;  %v4127_v16 = vpop.eup %4126  ;;  %v2155_v21 = vmul.f32 %v4125_v12, %v2052_v3  ;;  %v2330_v3 = vld [vmem:[#allocation10 + $0xd8] sm:$0xff]  ;;  %v2305_v12 = vld [vmem:[#allocation10 + $0x10] sm:$0xff] }
0x1b7f   :  { %v2152_v23 = vadd.f32 1.0, %v4127_v16  ;;  %v2306_v51 = vld [vmem:[#allocation10 + $0x18] sm:$0xff] }
0x1b80   :  { %2158 = vrot.lane.b32.xlu0 %v2156_v17, %s4268_s22  ;;  %v2364_v17 = vld [vmem:[#allocation10 + $0x1e8] sm:$0xff] }
0x1b81   :  { %4128 = vrcp.f32 %v2152_v23 }
0x1b8e   :  { %v4129_v26 = vpop.eup %4128 }
0x1bf2   :  { %v2159_v31 = vpop.permute.xlu0 %2158 }
0x1bf3   :  { %v2161_v22 = vadd.f32 %v2159_v31, %v2155_v21  ;;  %v2366_v21 = vld [vmem:[#allocation10 + $0x1f8] sm:$0xff] }
0x1bf5   :  { %4130 = vtanh.f32 %v2161_v22 }
0x1c02   :  { %v4131_v36 = vpop.eup %4130 }
0x1c03   :  { %v2163_v5 = vmul.f32 %v4131_v36, %v4129_v26 }
0x1c05   :  { %2165 = vrot.lane.b32.xlu1 %v2163_v5, %s4268_s22  ;;  %v2363_v5 = vld [vmem:[#allocation10 + $0x1e0] sm:$0xff] }
0x1c77   :  { %v2166_v54 = vpop.permute.xlu1 %2165 }
0x1c78   :  { %2168 = vst.msk [vmem:[#allocation4 + $0x30] sm:$0xff] %vm420_vm4, %v2166_v54  ;;  %3639 = vmatmul.mubr.msk.f32.vlgmr.msra.gmra.mxu1 %vm313_vm1, %v2166_v54 }
0x1c79   :  { %2169 = vst.msk [vmem:[#allocation4 + $0x8] sm:$0xff] %vm422_vm5, %v2166_v54  ;;  %2610 = vmatprep.mubr.f32.mxu1 %v4272_v1  ;;  %v2356_v54 = vld [vmem:[#allocation10 + $0x1a8] sm:$0xff] }
0x1d38   :  { %v2244_v29 = vpop.f32.mrf.mxu1 }
0x1d39   :  { %v2249_v6 = vadd.f32 %v2244_v29, %v4961_v60  ;;  %v2362_v60 = vld [vmem:[#allocation10 + $0x1d8] sm:$0xff]  ;;  %v2288_v29 = vld [vmem:[#allocation4 + $0x8] sm:$0xff] }
0x1d3a   :  { %v2246_v27 = vpop.f32.mrf.mxu1  ;;  %2562 = vmatprep.subr.mxu1 %v2362_v60  ;;  %v2290_v60 = vld [vmem:[#allocation4 + $0x18] sm:$0xff] }
0x1d3b   :  { %v3640_v24 = vmul.f32 -1.442695, %v2249_v6  ;;  %v2250_v32 = vadd.f32 %v2246_v27, %v4965_v47  ;;  %v2351_v47 = vld [vmem:[#allocation10 + $0x180] sm:$0xff]  ;;  %2563 = vmatpush1.msra.mxu1 %v2361_v39  ;;  %v5130_v27 = vmax.f32 %v2288_v29, 0.0  ;;  %v2349_v39 = vld [vmem:[#allocation10 + $0x170] sm:$0xff]  ;;  %v2960_v29 = vld [vmem:[#allocation11 + $0x58] sm:$0xff] }
0x1d3c   :  { %2564 = vmatprep.subr.mxu1 %v2354_v25  ;;  %2452 = vmatpush1.msra.mxu0 %v2351_v47  ;;  %v2355_v6 = vld [vmem:[#allocation10 + $0x1a0] sm:$0xff]  ;;  %v5146_v47 = vmax.f32 %v2290_v60, 0.0  ;;  %v2332_v25 = vld [vmem:[#allocation10 + $0xe8] sm:$0xff] }
0x1d3d   :  { %4132 = vpow2.f32 %v3640_v24  ;;  %2565 = vmatpush1.msra.mxu1 %v2353_v4  ;;  %2453 = vmatprep.subr.mxu0 %v2344_v38  ;;  %v3641_v41 = vmul.f32 -1.442695, %v2250_v32  ;;  %v2365_v24 = vld [vmem:[#allocation10 + $0x1f0] sm:$0xff]  ;;  %v2342_v38 = vld [vmem:[#allocation10 + $0x138] sm:$0xff]  ;;  %v2957_v60 = vld [vmem:[#allocation11 + $0x40] sm:$0xff] }
0x1d3e   :  { %4134 = vtanh.f32 %v2250_v32  ;;  %2566 = vmatprep.subr.mxu1 %v2346_v53  ;;  %2454 = vmatpush1.msra.mxu0 %v2343_v52  ;;  %v2348_v32 = vld [vmem:[#allocation10 + $0x168] sm:$0xff]  ;;  %v2291_v4 = vld [vmem:[#allocation4 + $0x20] sm:$0xff]  ;;  %v2341_v53 = vld [vmem:[#allocation10 + $0x130] sm:$0xff] }
0x1d3f   :  { %2567 = vmatpush1.msra.mxu1 %v2345_v28  ;;  %v2331_v52 = vld [vmem:[#allocation10 + $0xe0] sm:$0xff]  ;;  %v2324_v28 = vld [vmem:[#allocation10 + $0xa8] sm:$0xff] }
0x1d40   :  { %2568 = vmatprep.subr.mxu1 %v2338_v61  ;;  %v2315_v61 = vld [vmem:[#allocation10 + $0x60] sm:$0xff] }
0x1d41   :  { %2569 = vmatpush1.msra.mxu1 %v2337_v63 }
0x1d42   :  { %2570 = vmatprep.subr.mxu1 %v2330_v3  ;;  %v2318_v3 = vld [vmem:[#allocation10 + $0x78] sm:$0xff] }
0x1d43   :  { %2571 = vmatpush1.msra.mxu1 %v2329_v40  ;;  %v2307_v40 = vld [vmem:[#allocation10 + $0x20] sm:$0xff] }
0x1d44   :  { %2572 = vmatprep.subr.mxu1 %v2322_v46 }
0x1d45   :  { %2573 = vmatpush1.msra.mxu1 %v2321_v10  ;;  %v2309_v10 = vld [vmem:[#allocation10 + $0x30] sm:$0xff] }
0x1d46   :  { %2574 = vmatprep.subr.mxu1 %v2314_v11  ;;  %v3012_v11 = vld [vmem:[#allocation11 + $0x1f8] sm:$0xff] }
0x1d47   :  { %2575 = vmatpush1.msra.mxu1 %v2313_v18  ;;  %v2996_v18 = vld [vmem:[#allocation11 + $0x178] sm:$0xff] }
0x1d48   :  { %2576 = vmatprep.subr.mxu1 %v2306_v51  ;;  %v3011_v51 = vld [vmem:[#allocation11 + $0x1f0] sm:$0xff] }
0x1d49   :  { %2577 = vmatpush1.msra.mxu1 %v2305_v12  ;;  %v2963_v12 = vld [vmem:[#allocation11 + $0x70] sm:$0xff] }
0x1d4a   :  { %v4133_v43 = vpop.eup %4132  ;;  %2788 = vmatprep.subr.mxu1 %v2366_v21  ;;  %v2994_v21 = vld [vmem:[#allocation11 + $0x168] sm:$0xff] }
0x1d4b   :  { %v2254_v45 = vadd.f32 1.0, %v4133_v43  ;;  %v4135_v50 = vpop.eup %4134  ;;  %v2358_v43 = vld [vmem:[#allocation10 + $0x1b8] sm:$0xff] }
0x1d4d   :  { %4136 = vrcp.f32 %v2254_v45  ;;  %v2289_v45 = vld [vmem:[#allocation4 + $0x10] sm:$0xff] }
0x1d4e   :  { %4138 = vpow2.f32 %v3641_v41  ;;  %v2334_v41 = vld [vmem:[#allocation10 + $0xf8] sm:$0xff] }
0x1d5a   :  { %v4137_v0 = vpop.eup %4136 }
0x1d5b   :  { %v2265_v42 = vmul.f32 %v4137_v0, %v4135_v50  ;;  %v4139_v55 = vpop.eup %4138  ;;  %v2264_v56 = vmul.f32 %v4137_v0, %v2161_v22  ;;  %v2347_v50 = vld [vmem:[#allocation10 + $0x160] sm:$0xff]  ;;  %v2357_v0 = vld [vmem:[#allocation10 + $0x1b0] sm:$0xff] }
0x1d5c   :  { %v2261_v35 = vadd.f32 1.0, %v4139_v55  ;;  %v2292_v55 = vld [vmem:[#allocation4 + $0x28] sm:$0xff] }
0x1d5d   :  { %2267 = vrot.lane.b32.xlu0 %v2265_v42, %s4268_s22  ;;  %v5138_v42 = vmax.f32 %v2289_v45, 0.0  ;;  %v2974_v45 = vld [vmem:[#allocation11 + $0xc8] sm:$0xff] }
0x1d5e   :  { %4140 = vrcp.f32 %v2261_v35  ;;  %v2323_v35 = vld [vmem:[#allocation10 + $0xa0] sm:$0xff] }
0x1d61   :  { %1189 = vrot.lane.b32.xlu0 %v4787_v14, %s4268_s22  ;;  %v2336_v14 = vld [vmem:[#allocation10 + $0x108] sm:$0xff] }
0x1d62   :  { %2455 = vmatprep.subr.mxu0 %v2336_v14  ;;  %v5154_v14 = vmax.f32 %v2291_v4, 0.0  ;;  %v2971_v4 = vld [vmem:[#allocation11 + $0xb0] sm:$0xff] }
0x1d63   :  { %2456 = vmatpush1.msra.mxu0 %v2335_v59  ;;  %v2293_v59 = vld [vmem:[#allocation4 + $0x30] sm:$0xff] }
0x1d64   :  { %2457 = vmatprep.subr.mxu0 %v2328_v62  ;;  %v2325_v62 = vld [vmem:[#allocation10 + $0xb0] sm:$0xff]  ;;  %v5170_v63 = vmax.f32 %v2293_v59, 0.0  ;;  %v3000_v59 = vld [vmem:[#allocation11 + $0x198] sm:$0xff] }
0x1d65   :  { %2458 = vmatpush1.msra.mxu0 %v2327_v2  ;;  %v2308_v2 = vld [vmem:[#allocation10 + $0x28] sm:$0xff] }
0x1d66   :  { %2459 = vmatprep.subr.mxu0 %v2320_v8 }
0x1d67   :  { %2460 = vmatpush1.msra.mxu0 %v2319_v49  ;;  %v2317_v49 = vld [vmem:[#allocation10 + $0x70] sm:$0xff] }
0x1d68   :  { %2461 = vmatprep.subr.mxu0 %v2312_v9  ;;  %v2310_v9 = vld [vmem:[#allocation10 + $0x38] sm:$0xff] }
0x1d69   :  { %2462 = vmatpush1.msra.mxu0 %v2311_v30  ;;  %v2980_v30 = vld [vmem:[#allocation11 + $0xf8] sm:$0xff] }
0x1d6a   :  { %2463 = vmatprep.subr.mxu0 %v2304_v48  ;;  %v2964_v48 = vld [vmem:[#allocation11 + $0x78] sm:$0xff] }
0x1d6b   :  { %v4141_v15 = vpop.eup %4140  ;;  %2464 = vmatpush1.msra.mxu0 %v2303_v19  ;;  %v2979_v19 = vld [vmem:[#allocation11 + $0xf0] sm:$0xff] }
0x1d6c   :  { %2675 = vmatprep.subr.mxu0 %v2364_v17  ;;  %v2995_v17 = vld [vmem:[#allocation11 + $0x170] sm:$0xff] }
0x1dcf   :  { %v2268_v7 = vpop.permute.xlu0 %2267 }
0x1dd0   :  { %v2270_v57 = vadd.f32 %v2268_v7, %v2264_v56  ;;  %v2333_v56 = vld [vmem:[#allocation10 + $0xf0] sm:$0xff]  ;;  %v5162_v7 = vmax.f32 %v2292_v55, 0.0  ;;  %v2986_v55 = vld [vmem:[#allocation11 + $0x128] sm:$0xff] }
0x1dd2   :  { %4142 = vtanh.f32 %v2270_v57 }
0x1dd3   :  { %v1190_v58 = vpop.permute.xlu0 %1189 }
0x1dd4   :  { %1192 = vst.msk [vmem:[%s5615_s16] sm:$0xff] %vm313_vm1, %v1190_v58  ;;  %v2326_v58 = vld [vmem:[#allocation10 + $0xb8] sm:$0xff] }
0x1ddf   :  { %v4143_v16 = vpop.eup %4142 }
0x1de0   :  { %v2272_v23 = vmul.f32 %v4143_v16, %v4141_v15  ;;  %v2978_v15 = vld [vmem:[#allocation11 + $0xe8] sm:$0xff] }
0x1de1   :  { %v3010_v16 = vld [vmem:[#allocation11 + $0x1e8] sm:$0xff] }
0x1de2   :  { %2274 = vrot.lane.b32.xlu1 %v2272_v23, %s4268_s22  ;;  %v2962_v23 = vld [vmem:[#allocation11 + $0x68] sm:$0xff] }
0x1de6   :  { %2282 = vrot.lane.b32.xlu1 %v2270_v57, %s4268_s22  ;;  %v2316_v57 = vld [vmem:[#allocation10 + $0x68] sm:$0xff] }
0x1e54   :  { %v2275_v31 = vpop.permute.xlu1 %2274 }
0x1e55   :  { %2277 = vst.msk [vmem:[#allocation4 + $0x38] sm:$0xff] %vm420_vm4, %v2275_v31 }
0x1e56   :  { %2278 = vst.msk [vmem:[#allocation4] sm:$0xff] %vm422_vm5, %v2275_v31 }
0x1e57   :  { %3642 = vst.msk [vmem:[%s5614_s15 + $0x8] sm:$0xff] %vm313_vm1, %v2275_v31  ;;  %v2977_v31 = vld [vmem:[#allocation11 + $0xe0] sm:$0xff] }
0x1e58   :  { %v2283_v22 = vpop.permute.xlu1 %2282 }
0x1e59   :  { %3643 = vst.msk [vmem:[%s5615_s16 + $0x8] sm:$0xff] %vm313_vm1, %v2283_v22  ;;  %v3009_v22 = vld [vmem:[#allocation11 + $0x1e0] sm:$0xff] }
0x1e5c   :  { %v2294_v8 = vld [vmem:[#allocation4 + $0x38] sm:$0xff] }
0x1e5d   :  { %v2287_v26 = vld [vmem:[#allocation4] sm:$0xff]  ;;  %v5178_v46 = vmax.f32 %v2294_v8, 0.0  ;;  %v2983_v8 = vld [vmem:[#allocation11 + $0x110] sm:$0xff] }
0x1e5e   :  { %v5122_v36 = vmax.f32 %v2287_v26, 0.0  ;;  %v2961_v26 = vld [vmem:[#allocation11 + $0x60] sm:$0xff] }
0x1e60   :  { %3644 = vmatmul.mubr.msk.f32.vlgmr.msra.gmra.mxu0 %vm313_vm1, %v5122_v36  ;;  %3652 = vmatmul.mubr.msk.f32.vlgmr.msra.gmra.mxu1 %vm313_vm1, %v5122_v36 }
0x1e61   :  { %2676 = vmatpush1.msra.mxu0 %v2363_v5  ;;  %2503 = vmatprep.mubr.f32.mxu0 %v4272_v1  ;;  %v2976_v5 = vld [vmem:[#allocation11 + $0xd8] sm:$0xff] }
0x1e62   :  { %2616 = vmatprep.mubr.f32.mxu1 %v4272_v1  ;;  %2677 = vmatprep.subr.mxu0 %v2356_v54  ;;  %v3008_v54 = vld [vmem:[#allocation11 + $0x1d8] sm:$0xff] }
0x1e63   :  { %2678 = vmatpush1.msra.mxu0 %v2355_v6  ;;  %2789 = vmatpush1.msra.mxu1 %v2365_v24  ;;  %v2992_v6 = vld [vmem:[#allocation11 + $0x158] sm:$0xff]  ;;  %v2975_v24 = vld [vmem:[#allocation11 + $0xd0] sm:$0xff] }
0x1e64   :  { %3645 = vmatmul.mubr.msk.f32.gmra.mxu0 %vm313_vm1, %v5130_v27  ;;  %3653 = vmatmul.mubr.msk.f32.gmra.mxu1 %vm313_vm1, %v5130_v27 }
0x1e65   :  { %2509 = vmatprep.mubr.f32.mxu0 %v4272_v1  ;;  %2622 = vmatprep.mubr.f32.mxu1 %v4272_v1 }
0x1e66   :  { %2679 = vmatprep.subr.mxu0 %v2348_v32  ;;  %2790 = vmatprep.subr.mxu1 %v2358_v43  ;;  %v2959_v32 = vld [vmem:[#allocation11 + $0x50] sm:$0xff] }
0x1e67   :  { %2680 = vmatpush1.msra.mxu0 %v2347_v50  ;;  %2791 = vmatpush1.msra.mxu1 %v2357_v0  ;;  %v2991_v43 = vld [vmem:[#allocation11 + $0x150] sm:$0xff]  ;;  %v3006_v50 = vld [vmem:[#allocation11 + $0x1c8] sm:$0xff] }
0x1e68   :  { %3646 = vmatmul.mubr.msk.f32.gmra.mxu0 %vm313_vm1, %v5138_v42  ;;  %3654 = vmatmul.mubr.msk.f32.gmra.mxu1 %vm313_vm1, %v5138_v42  ;;  %v2958_v0 = vld [vmem:[#allocation11 + $0x48] sm:$0xff] }
0x1e69   :  { %2515 = vmatprep.mubr.f32.mxu0 %v4272_v1  ;;  %2628 = vmatprep.mubr.f32.mxu1 %v4272_v1 }
0x1e6a   :  { %2681 = vmatprep.subr.mxu0 %v2340_v13  ;;  %2792 = vmatprep.subr.mxu1 %v2350_v20  ;;  %v2973_v13 = vld [vmem:[#allocation11 + $0xc0] sm:$0xff] }
0x1e6b   :  { %2682 = vmatpush1.msra.mxu0 %v2339_v44  ;;  %2793 = vmatpush1.msra.mxu1 %v2349_v39  ;;  %v3005_v20 = vld [vmem:[#allocation11 + $0x1c0] sm:$0xff]  ;;  %v2972_v39 = vld [vmem:[#allocation11 + $0xb8] sm:$0xff] }
0x1e6c   :  { %3647 = vmatmul.mubr.msk.f32.gmra.mxu0 %vm313_vm1, %v5146_v47  ;;  %3655 = vmatmul.mubr.msk.f32.gmra.mxu1 %vm313_vm1, %v5146_v47  ;;  %v2989_v44 = vld [vmem:[#allocation11 + $0x140] sm:$0xff] }
0x1e6d   :  { %2521 = vmatprep.mubr.f32.mxu0 %v4272_v1  ;;  %2634 = vmatprep.mubr.f32.mxu1 %v4272_v1 }
0x1e6e   :  { %2683 = vmatprep.subr.mxu0 %v2332_v25  ;;  %2794 = vmatprep.subr.mxu1 %v2342_v38  ;;  %v2956_v25 = vld [vmem:[#allocation11 + $0x38] sm:$0xff] }
0x1e6f   :  { %2684 = vmatpush1.msra.mxu0 %v2331_v52  ;;  %2795 = vmatpush1.msra.mxu1 %v2341_v53  ;;  %v2988_v38 = vld [vmem:[#allocation11 + $0x138] sm:$0xff]  ;;  %v2955_v52 = vld [vmem:[#allocation11 + $0x30] sm:$0xff] }
0x1e70   :  { %3648 = vmatmul.mubr.msk.f32.gmra.mxu0 %vm313_vm1, %v5154_v14  ;;  %3656 = vmatmul.mubr.msk.f32.gmra.mxu1 %vm313_vm1, %v5154_v14  ;;  %v2987_v53 = vld [vmem:[#allocation11 + $0x130] sm:$0xff] }
0x1e71   :  { %2527 = vmatprep.mubr.f32.mxu0 %v4272_v1  ;;  %2640 = vmatprep.mubr.f32.mxu1 %v4272_v1 }
0x1e72   :  { %2685 = vmatprep.subr.mxu0 %v2324_v28  ;;  %2796 = vmatprep.subr.mxu1 %v2334_v41  ;;  %v3002_v28 = vld [vmem:[#allocation11 + $0x1a8] sm:$0xff] }
0x1e73   :  { %2686 = vmatpush1.msra.mxu0 %v2323_v35  ;;  %2797 = vmatpush1.msra.mxu1 %v2333_v56  ;;  %v2954_v41 = vld [vmem:[#allocation11 + $0x28] sm:$0xff]  ;;  %v2969_v35 = vld [vmem:[#allocation11 + $0xa0] sm:$0xff] }
0x1e74   :  { %3649 = vmatmul.mubr.msk.f32.gmra.mxu0 %vm313_vm1, %v5162_v7  ;;  %3657 = vmatmul.mubr.msk.f32.gmra.mxu1 %vm313_vm1, %v5162_v7  ;;  %v3001_v56 = vld [vmem:[#allocation11 + $0x1a0] sm:$0xff] }
0x1e75   :  { %2533 = vmatprep.mubr.f32.mxu0 %v4272_v1  ;;  %2646 = vmatprep.mubr.f32.mxu1 %v4272_v1 }
0x1e76   :  { %2687 = vmatprep.subr.mxu0 %v2316_v57  ;;  %2798 = vmatprep.subr.mxu1 %v2326_v58  ;;  %v2985_v57 = vld [vmem:[#allocation11 + $0x120] sm:$0xff]  ;;  %v2968_v58 = vld [vmem:[#allocation11 + $0x98] sm:$0xff] }
0x1e77   :  { %2688 = vmatpush1.msra.mxu0 %v2315_v61  ;;  %2799 = vmatpush1.msra.mxu1 %v2325_v62  ;;  %v2952_v61 = vld [vmem:[#allocation11 + $0x18] sm:$0xff] }
0x1e78   :  { %3650 = vmatmul.mubr.msk.f32.gmra.mxu0 %vm313_vm1, %v5170_v63  ;;  %3658 = vmatmul.mubr.msk.f32.gmra.mxu1 %vm313_vm1, %v5170_v63  ;;  %v2984_v62 = vld [vmem:[#allocation11 + $0x118] sm:$0xff] }
0x1e79   :  { %2539 = vmatprep.mubr.f32.mxu0 %v4272_v1  ;;  %2652 = vmatprep.mubr.f32.mxu1 %v4272_v1 }
0x1e7a   :  { %2689 = vmatprep.subr.mxu0 %v2308_v2  ;;  %2800 = vmatprep.subr.mxu1 %v2318_v3  ;;  %v2999_v2 = vld [vmem:[#allocation11 + $0x190] sm:$0xff] }
0x1e7b   :  { %2690 = vmatpush1.msra.mxu0 %v2307_v40  ;;  %2801 = vmatpush1.msra.mxu1 %v2317_v49  ;;  %v2951_v3 = vld [vmem:[#allocation11 + $0x10] sm:$0xff]  ;;  %v2966_v40 = vld [vmem:[#allocation11 + $0x88] sm:$0xff] }
0x1e7c   :  { %3651 = vmatmul.mubr.msk.f32.gmra.mxu0 %vm313_vm1, %v5178_v46  ;;  %3659 = vmatmul.mubr.msk.f32.gmra.mxu1 %vm313_vm1, %v5178_v46  ;;  %v2998_v49 = vld [vmem:[#allocation11 + $0x188] sm:$0xff] }
0x1e7d   :  { %2802 = vmatprep.subr.mxu1 %v2310_v9  ;;  %2723 = vmatprep.mubr.f32.mxu0 %v4272_v1  ;;  %v2982_v9 = vld [vmem:[#allocation11 + $0x108] sm:$0xff] }
0x1e7e   :  { %2803 = vmatpush1.msra.mxu1 %v2309_v10  ;;  %2836 = vmatprep.mubr.f32.mxu1 %v4272_v1  ;;  %v2965_v10 = vld [vmem:[#allocation11 + $0x80] sm:$0xff] }
0x1e7f   :  { %3685 = vmatprep.subr.mxu0 %v2980_v30  ;;  %3741 = vmatprep.subr.mxu1 %v3012_v11  ;;  %v2997_v30 = vld [vmem:[#allocation11 + $0x180] sm:$0xff] }
0x1e80   :  { %3660 = vmatmul.mubr.msk.f32.vlgmr.msra.gmra.mxu0 %vm313_vm1, %v5122_v36  ;;  %3668 = vmatmul.mubr.msk.f32.vlgmr.msra.gmra.mxu1 %vm313_vm1, %v5122_v36  ;;  %v2993_v36 = vld [vmem:[#allocation11 + $0x160] sm:$0xff] }
0x1e81   :  { %2729 = vmatprep.mubr.f32.mxu0 %v4272_v1  ;;  %2842 = vmatprep.mubr.f32.mxu1 %v4272_v1  ;;  %v2949_v11 = vld [vmem:[#allocation11] sm:$0xff] }
0x1e82   :  { %3686 = vmatpush3.msra.mxu0 %v2964_v48  ;;  %3742 = vmatpush3.msra.mxu1 %v2996_v18  ;;  %v2981_v48 = vld [vmem:[#allocation11 + $0x100] sm:$0xff]  ;;  %v3044_v18 = vld [vmem:[#allocation11 + $0x2f8] sm:$0xff] }
0x1e83   :  { %3687 = vmatprep.subr.mxu0 %v2979_v19  ;;  %3743 = vmatprep.subr.mxu1 %v3011_v51  ;;  %v5232_v19 = vld [vmem:[#allocation11 + $0x3f8] sm:$0xff]  ;;  %v2379_v51 = vsub.s32 2, %v4567_v33 }
0x1e84   :  { %3661 = vmatmul.mubr.msk.f32.gmra.mxu0 %vm313_vm1, %v5130_v27  ;;  %3669 = vmatmul.mubr.msk.f32.gmra.mxu1 %vm313_vm1, %v5130_v27  ;;  %v3007_v27 = vld [vmem:[#allocation11 + $0x1d0] sm:$0xff] }
0x1e85   :  { %2735 = vmatprep.mubr.f32.mxu0 %v4272_v1  ;;  %2848 = vmatprep.mubr.f32.mxu1 %v4272_v1 }
0x1e86   :  { %3688 = vmatpush3.msra.mxu0 %v2963_v12  ;;  %3744 = vmatpush3.msra.mxu1 %v2995_v17  ;;  %v5239_v12 = vld [vmem:[%s5610_s11] sm:$0xff]  ;;  %v2383_v17 = vsub.s32 3, %v4567_v33 }
0x1e87   :  { %3689 = vmatprep.subr.mxu0 %v2978_v15  ;;  %3745 = vmatprep.subr.mxu1 %v3010_v16  ;;  %v5244_v15 = vrot.slane %v5239_v12, %v4570_v34  ;;  %v5247_v16 = vrot.slane %v5239_v12, %v2379_v51 }
0x1e88   :  { %3662 = vmatmul.mubr.msk.f32.gmra.mxu0 %vm313_vm1, %v5138_v42  ;;  %3670 = vmatmul.mubr.msk.f32.gmra.mxu1 %vm313_vm1, %v5138_v42  ;;  %v2990_v42 = vld [vmem:[#allocation11 + $0x148] sm:$0xff] }
0x1e89   :  { %2741 = vmatprep.mubr.f32.mxu0 %v4272_v1  ;;  %2854 = vmatprep.mubr.f32.mxu1 %v4272_v1 }
0x1e8a   :  { %3690 = vmatpush3.msra.mxu0 %v2962_v23  ;;  %3746 = vmatpush3.msra.mxu1 %v2994_v21  ;;  %v5251_v23 = vrot.slane %v5239_v12, %v4576_v37  ;;  %v5254_v21 = vrot.slane %v5239_v12, %v2383_v17  ;;  %v5279_v17 = vld [vmem:[#allocation11 + $0x3e8] sm:$0xff] }
0x1e8b   :  { %3691 = vmatprep.subr.mxu0 %v2977_v31  ;;  %3747 = vmatprep.subr.mxu1 %v3009_v22 }
0x1e8c   :  { %3663 = vmatmul.mubr.msk.f32.gmra.mxu0 %vm313_vm1, %v5146_v47  ;;  %3671 = vmatmul.mubr.msk.f32.gmra.mxu1 %vm313_vm1, %v5146_v47  ;;  %v3004_v47 = vld [vmem:[#allocation11 + $0x1b8] sm:$0xff] }
0x1e8d   :  { %2747 = vmatprep.mubr.f32.mxu0 %v4272_v1  ;;  %2860 = vmatprep.mubr.f32.mxu1 %v4272_v1 }
0x1e8e   :  { %3692 = vmatpush3.msra.mxu0 %v2961_v26  ;;  %3748 = vmatpush3.msra.mxu1 %v2993_v36 }
0x1e8f   :  { %3693 = vmatprep.subr.mxu0 %v2976_v5  ;;  %3749 = vmatprep.subr.mxu1 %v3008_v54 }
0x1e90   :  { %3664 = vmatmul.mubr.msk.f32.gmra.mxu0 %vm313_vm1, %v5154_v14  ;;  %3672 = vmatmul.mubr.msk.f32.gmra.mxu1 %vm313_vm1, %v5154_v14  ;;  %v2970_v14 = vld [vmem:[#allocation11 + $0xa8] sm:$0xff] }
0x1e91   :  { %2753 = vmatprep.mubr.f32.mxu0 %v4272_v1  ;;  %2866 = vmatprep.mubr.f32.mxu1 %v4272_v1 }
0x1e92   :  { %3694 = vmatpush3.msra.mxu0 %v2960_v29  ;;  %3750 = vmatpush3.msra.mxu1 %v2992_v6 }
0x1e93   :  { %3695 = vmatprep.subr.mxu0 %v2975_v24  ;;  %3751 = vmatprep.subr.mxu1 %v3007_v27 }
0x1e94   :  { %3665 = vmatmul.mubr.msk.f32.gmra.mxu0 %vm313_vm1, %v5162_v7  ;;  %3673 = vmatmul.mubr.msk.f32.gmra.mxu1 %vm313_vm1, %v5162_v7  ;;  %v2953_v7 = vld [vmem:[#allocation11 + $0x20] sm:$0xff] }
0x1e95   :  { %2759 = vmatprep.mubr.f32.mxu0 %v4272_v1  ;;  %2872 = vmatprep.mubr.f32.mxu1 %v4272_v1 }
0x1e96   :  { %3696 = vmatpush3.msra.mxu0 %v2959_v32  ;;  %3752 = vmatpush3.msra.mxu1 %v2991_v43 }
0x1e97   :  { %3697 = vmatprep.subr.mxu0 %v2974_v45  ;;  %3753 = vmatprep.subr.mxu1 %v3006_v50 }
0x1e98   :  { %3666 = vmatmul.mubr.msk.f32.gmra.mxu0 %vm313_vm1, %v5170_v63  ;;  %3674 = vmatmul.mubr.msk.f32.gmra.mxu1 %vm313_vm1, %v5170_v63  ;;  %v2967_v63 = vld [vmem:[#allocation11 + $0x90] sm:$0xff] }
0x1e99   :  { %2765 = vmatprep.mubr.f32.mxu0 %v4272_v1  ;;  %2878 = vmatprep.mubr.f32.mxu1 %v4272_v1  ;;  %v3003_v1 = vld [vmem:[#allocation11 + $0x1b0] sm:$0xff] }
0x1e9a   :  { %3698 = vmatpush3.msra.mxu0 %v2958_v0  ;;  %3754 = vmatpush3.msra.mxu1 %v2990_v42  ;;  %v3028_v42 = vld [vmem:[#allocation11 + $0x278] sm:$0xff] }
0x1e9b   :  { %3699 = vmatprep.subr.mxu0 %v2973_v13  ;;  %3755 = vmatprep.subr.mxu1 %v3005_v20  ;;  %v5261_v13 = vld [vmem:[#allocation11 + $0x378] sm:$0xff] }
0x1e9c   :  { %3667 = vmatmul.mubr.msk.f32.gmra.mxu0 %vm313_vm1, %v5178_v46  ;;  %3675 = vmatmul.mubr.msk.f32.gmra.mxu1 %vm313_vm1, %v5178_v46  ;;  %v2950_v46 = vld [vmem:[#allocation11 + $0x8] sm:$0xff] }
0x1e9d   :  { %3700 = vmatpush3.msra.mxu0 %v2957_v60  ;;  %3756 = vmatpush3.msra.mxu1 %v2989_v44 }
0x1e9e   :  { %3701 = vmatprep.subr.mxu0 %v2972_v39  ;;  %3757 = vmatprep.subr.mxu1 %v3004_v47  ;;  %v3043_v39 = vld [vmem:[#allocation11 + $0x2f0] sm:$0xff] }
0x1e9f   :  { %3702 = vmatpush3.msra.mxu0 %v2956_v25  ;;  %3758 = vmatpush3.msra.mxu1 %v2988_v38  ;;  %v5266_v47 = vld [vmem:[#allocation11 + $0x3f0] sm:$0xff] }
0x1ea0   :  { %3703 = vmatprep.subr.mxu0 %v2971_v4  ;;  %3759 = vmatprep.subr.mxu1 %v3003_v1  ;;  %v3027_v4 = vld [vmem:[#allocation11 + $0x270] sm:$0xff] }
0x1ea1   :  { %3704 = vmatpush3.msra.mxu0 %v2955_v52  ;;  %3760 = vmatpush3.msra.mxu1 %v2987_v53  ;;  %v3042_v53 = vld [vmem:[#allocation11 + $0x2e8] sm:$0xff] }
0x1ea2   :  { %3705 = vmatprep.subr.mxu0 %v2970_v14  ;;  %3761 = vmatprep.subr.mxu1 %v3002_v28 }
0x1ea3   :  { %3706 = vmatpush3.msra.mxu0 %v2954_v41  ;;  %3762 = vmatpush3.msra.mxu1 %v2986_v55 }
0x1ea4   :  { %3707 = vmatprep.subr.mxu0 %v2969_v35  ;;  %3763 = vmatprep.subr.mxu1 %v3001_v56 }
0x1ea5   :  { %3708 = vmatpush3.msra.mxu0 %v2953_v7  ;;  %3764 = vmatpush3.msra.mxu1 %v2985_v57  ;;  %v3026_v57 = vld [vmem:[#allocation11 + $0x268] sm:$0xff] }
0x1ea6   :  { %3709 = vmatprep.subr.mxu0 %v2968_v58  ;;  %3765 = vmatprep.subr.mxu1 %v3000_v59  ;;  %v5273_v58 = vld [vmem:[#allocation11 + $0x370] sm:$0xff] }
0x1ea7   :  { %3710 = vmatpush3.msra.mxu0 %v2952_v61  ;;  %3766 = vmatpush3.msra.mxu1 %v2984_v62 }
0x1ea8   :  { %3711 = vmatprep.subr.mxu0 %v2967_v63  ;;  %3767 = vmatprep.subr.mxu1 %v2999_v2  ;;  %v3041_v63 = vld [vmem:[#allocation11 + $0x2e0] sm:$0xff] }
0x1ea9   :  { %3712 = vmatpush3.msra.mxu0 %v2951_v3  ;;  %3768 = vmatpush3.msra.mxu1 %v2983_v8  ;;  %v3025_v8 = vld [vmem:[#allocation11 + $0x260] sm:$0xff] }
0x1eaa   :  { %3713 = vmatprep.subr.mxu0 %v2966_v40  ;;  %3769 = vmatprep.subr.mxu1 %v2998_v49 }
0x1eab   :  { %3714 = vmatpush3.msra.mxu0 %v2950_v46  ;;  %3770 = vmatpush3.msra.mxu1 %v2982_v9  ;;  %v3040_v46 = vld [vmem:[#allocation11 + $0x2d8] sm:$0xff] }
0x1eac   :  { %3715 = vmatprep.subr.mxu0 %v2965_v10  ;;  %3771 = vmatprep.subr.mxu1 %v2997_v30 }
0x1ead   :  { %3716 = vmatpush3.msra.mxu0 %v2949_v11  ;;  %3772 = vmatpush3.msra.mxu1 %v2981_v48  ;;  %v3024_v11 = vld [vmem:[#allocation11 + $0x258] sm:$0xff] }
0x1eae   :  { %3797 = vmatprep.subr.mxu0 %v3044_v18  ;;  %3909 = vmatprep.subr.mxu1 %v5232_v19 }
0x1f20   :  { %v2499_v31 = vpop.f32.mrf.mxu0  ;;  %v2612_v22 = vpop.f32.mrf.mxu1 }
0x1f21   :  { %v2500_v26 = vadd.f32 %v2499_v31, %v5244_v15  ;;  %v2613_v36 = vadd.f32 %v2612_v22, %v5247_v16  ;;  %v3039_v31 = vld [vmem:[#allocation11 + $0x2d0] sm:$0xff] }
0x1f22   :  { %v2501_v5 = vpop.f32.mrf.mxu0  ;;  %v2614_v54 = vpop.f32.mrf.mxu1 }
0x1f23   :  { %v2502_v34 = vadd.f32 %v2501_v5, %v5251_v23  ;;  %v2615_v29 = vadd.f32 %v2614_v54, %v5254_v21  ;;  %v2885_v32 = vmax.f32 %v2500_v26, 0.0  ;;  %v2887_v43 = vmax.f32 %v2613_v36, 0.0  ;;  %v5282_v36 = vld [vmem:[#allocation11 + $0x368] sm:$0xff]  ;;  %v3023_v5 = vld [vmem:[#allocation11 + $0x250] sm:$0xff] }
0x1f24   :  { %v2505_v6 = vpop.f32.mrf.mxu0  ;;  %v2618_v24 = vpop.f32.mrf.mxu1 }
0x1f25   :  { %v2886_v27 = vmax.f32 %v2502_v34, 0.0  ;;  %v2888_v37 = vmax.f32 %v2615_v29, 0.0  ;;  %v2506_v45 = vadd.f32 %v2505_v6, %v5244_v15  ;;  %v2619_v20 = vadd.f32 %v2618_v24, %v5247_v16  ;;  %v5285_v24 = vld [vmem:[#allocation11 + $0x3e0] sm:$0xff] }
0x1f26   :  { %v2507_v50 = vpop.f32.mrf.mxu0  ;;  %v2620_v0 = vpop.f32.mrf.mxu1 }
0x1f27   :  { %v2508_v60 = vadd.f32 %v2507_v50, %v5251_v23  ;;  %v2621_v44 = vadd.f32 %v2620_v0, %v5254_v21  ;;  %3148 = vmatprep.mubr.f32.mxu0 %v2886_v27  ;;  %3253 = vmatprep.mubr.f32.mxu1 %v2888_v37  ;;  %v2893_v14 = vmax.f32 %v2506_v45, 0.0  ;;  %v2895_v55 = vmax.f32 %v2619_v20, 0.0  ;;  %v3038_v37 = vld [vmem:[#allocation11 + $0x2c8] sm:$0xff] }
0x1f28   :  { %v2511_v25 = vpop.f32.mrf.mxu0  ;;  %v2624_v38 = vpop.f32.mrf.mxu1  ;;  %3149 = vmatmul.mubr.f32.vlgmr.msra.gmra.mxu0 %v2885_v32  ;;  %3254 = vmatmul.mubr.f32.vlgmr.msra.gmra.mxu1 %v2887_v43  ;;  %v5291_v43 = vld [vmem:[#allocation11 + $0x360] sm:$0xff] }
0x1f29   :  { %v2894_v1 = vmax.f32 %v2508_v60, 0.0  ;;  %v2896_v52 = vmax.f32 %v2621_v44, 0.0  ;;  %3798 = vmatpush3.msra.mxu0 %v3028_v42  ;;  %3925 = vmatpush3.msra.mxu1 %v5261_v13  ;;  %v2512_v35 = vadd.f32 %v2511_v25, %v5244_v15  ;;  %v2625_v59 = vadd.f32 %v2624_v38, %v5247_v16  ;;  %v3022_v42 = vld [vmem:[#allocation11 + $0x248] sm:$0xff]  ;;  %v5294_v60 = vld [vmem:[#allocation11 + $0x3d8] sm:$0xff]  ;;  %v3037_v44 = vld [vmem:[#allocation11 + $0x2c0] sm:$0xff] }
0x1f2a   :  { %3799 = vmatprep.subr.mxu0 %v3043_v39  ;;  %v2513_v28 = vpop.f32.mrf.mxu0  ;;  %v2626_v41 = vpop.f32.mrf.mxu1  ;;  %3910 = vmatprep.subr.mxu1 %v5266_v47 }
0x1f2b   :  { %v2514_v56 = vadd.f32 %v2513_v28, %v5251_v23  ;;  %v2627_v7 = vadd.f32 %v2626_v41, %v5254_v21  ;;  %3800 = vmatpush3.msra.mxu0 %v3027_v4  ;;  %3153 = vmatprep.mubr.f32.mxu0 %v2894_v1  ;;  %v2901_v9 = vmax.f32 %v2512_v35, 0.0  ;;  %v2903_v48 = vmax.f32 %v2625_v59, 0.0  ;;  %v5298_v1 = vld [vmem:[#allocation11 + $0x358] sm:$0xff]  ;;  %v5301_v28 = vld [vmem:[#allocation11 + $0x3d0] sm:$0xff] }
0x1f2c   :  { %3258 = vmatprep.mubr.f32.mxu1 %v2896_v52  ;;  %3801 = vmatprep.subr.mxu0 %v3042_v53  ;;  %v2517_v61 = vpop.f32.mrf.mxu0  ;;  %v2630_v62 = vpop.f32.mrf.mxu1  ;;  %v3021_v52 = vld [vmem:[#allocation11 + $0x240] sm:$0xff] }
0x1f2d   :  { %v2902_v2 = vmax.f32 %v2514_v56, 0.0  ;;  %v2904_v3 = vmax.f32 %v2627_v7, 0.0  ;;  %3154 = vmatmul.mubr.f32.gmra.mxu0 %v2893_v14  ;;  %3259 = vmatmul.mubr.f32.gmra.mxu1 %v2895_v55  ;;  %v2518_v22 = vadd.f32 %v2517_v61, %v5244_v15  ;;  %v2631_v54 = vadd.f32 %v2630_v62, %v5247_v16  ;;  %v3036_v56 = vld [vmem:[#allocation11 + $0x2b8] sm:$0xff] }
0x1f2e   :  { %3802 = vmatpush3.msra.mxu0 %v3026_v57  ;;  %v2519_v40 = vpop.f32.mrf.mxu0  ;;  %v2632_v49 = vpop.f32.mrf.mxu1  ;;  %3926 = vmatpush3.msra.mxu1 %v5273_v58  ;;  %v5309_v57 = vld [vmem:[#allocation11 + $0x350] sm:$0xff] }
0x1f2f   :  { %3803 = vmatprep.subr.mxu0 %v3041_v63  ;;  %v2520_v10 = vadd.f32 %v2519_v40, %v5251_v23  ;;  %v2633_v30 = vadd.f32 %v2632_v49, %v5254_v21  ;;  %3158 = vmatprep.mubr.f32.mxu0 %v2902_v2  ;;  %v2909_v0 = vmax.f32 %v2518_v22, 0.0  ;;  %v2911_v20 = vmax.f32 %v2631_v54, 0.0  ;;  %v3020_v63 = vld [vmem:[#allocation11 + $0x238] sm:$0xff]  ;;  %v5329_v54 = vld [vmem:[#allocation11 + $0x340] sm:$0xff] }
0x1f30   :  { %3804 = vmatpush3.msra.mxu0 %v3025_v8  ;;  %3263 = vmatprep.mubr.f32.mxu1 %v2904_v3  ;;  %v2523_v18 = vpop.f32.mrf.mxu0  ;;  %v2636_v51 = vpop.f32.mrf.mxu1  ;;  %v5312_v3 = vld [vmem:[#allocation11 + $0x3c8] sm:$0xff]  ;;  %v3035_v8 = vld [vmem:[#allocation11 + $0x2b0] sm:$0xff] }
0x1f31   :  { %v2910_v26 = vmax.f32 %v2520_v10, 0.0  ;;  %3805 = vmatprep.subr.mxu0 %v3040_v46  ;;  %3159 = vmatmul.mubr.f32.gmra.mxu0 %v2901_v9  ;;  %v2912_v34 = vmax.f32 %v2633_v30, 0.0  ;;  %v2524_v38 = vadd.f32 %v2523_v18, %v5244_v15  ;;  %v2637_v53 = vadd.f32 %v2636_v51, %v5247_v16  ;;  %v5320_v10 = vld [vmem:[#allocation11 + $0x348] sm:$0xff]  ;;  %v3019_v30 = vld [vmem:[#allocation11 + $0x230] sm:$0xff]  ;;  %v5323_v18 = vld [vmem:[#allocation11 + $0x3c0] sm:$0xff] }
0x1f32   :  { %3264 = vmatmul.mubr.f32.gmra.mxu1 %v2903_v48  ;;  %3806 = vmatpush3.msra.mxu0 %v3024_v11  ;;  %v2525_v29 = vpop.f32.mrf.mxu0  ;;  %v2638_v6 = vpop.f32.mrf.mxu1 }
0x1f33   :  { %3911 = vmatprep.subr.mxu1 %v5279_v17  ;;  %3807 = vmatprep.subr.mxu0 %v3039_v31  ;;  %v2526_v27 = vadd.f32 %v2525_v29, %v5251_v23  ;;  %v2639_v32 = vadd.f32 %v2638_v6, %v5254_v21  ;;  %v2917_v62 = vmax.f32 %v2524_v38, 0.0  ;;  %v2919_v2 = vmax.f32 %v2637_v53, 0.0 }
0x1f34   :  { %3927 = vmatpush3.msra.mxu1 %v5282_v36  ;;  %3808 = vmatpush3.msra.mxu0 %v3023_v5  ;;  %v2529_v45 = vpop.f32.mrf.mxu0  ;;  %v2642_v50 = vpop.f32.mrf.mxu1 }
0x1f35   :  { %3912 = vmatprep.subr.mxu1 %v5285_v24  ;;  %3163 = vmatprep.mubr.f32.mxu0 %v2910_v26  ;;  %v2918_v4 = vmax.f32 %v2526_v27, 0.0  ;;  %v2920_v14 = vmax.f32 %v2639_v32, 0.0  ;;  %v2530_v46 = vadd.f32 %v2529_v45, %v5244_v15  ;;  %v2643_v11 = vadd.f32 %v2642_v50, %v5247_v16  ;;  %v3034_v26 = vld [vmem:[#allocation11 + $0x2a8] sm:$0xff]  ;;  %v5336_v32 = vld [vmem:[#allocation11 + $0x3b8] sm:$0xff]  ;;  %v3033_v45 = vld [vmem:[#allocation11 + $0x2a0] sm:$0xff] }
0x1f36   :  { %3268 = vmatprep.mubr.f32.mxu1 %v2912_v34  ;;  %3809 = vmatprep.subr.mxu0 %v3038_v37  ;;  %v2531_v39 = vpop.f32.mrf.mxu0  ;;  %v2644_v25 = vpop.f32.mrf.mxu1  ;;  %v3018_v27 = vld [vmem:[#allocation11 + $0x228] sm:$0xff] }
0x1f37   :  { %3928 = vmatpush3.msra.mxu1 %v5291_v43  ;;  %3164 = vmatmul.mubr.f32.gmra.mxu0 %v2909_v0  ;;  %v2532_v35 = vadd.f32 %v2531_v39, %v5251_v23  ;;  %v2645_v7 = vadd.f32 %v2644_v25, %v5254_v21  ;;  %v2925_v6 = vmax.f32 %v2530_v46, 0.0  ;;  %v2927_v37 = vmax.f32 %v2643_v11, 0.0  ;;  %v3017_v39 = vld [vmem:[#allocation11 + $0x220] sm:$0xff] }
0x1f38   :  { %3269 = vmatmul.mubr.f32.gmra.mxu1 %v2911_v20  ;;  %3810 = vmatpush3.msra.mxu0 %v3022_v42  ;;  %v2535_v41 = vpop.f32.mrf.mxu0  ;;  %v5303_v55 = vpop.f32.mrf.mxu1  ;;  %v2391_v25 = vsub.s32 5, %v4567_v33 }
0x1f39   :  { %3913 = vmatprep.subr.mxu1 %v5294_v60  ;;  %3811 = vmatprep.subr.mxu0 %v3037_v44  ;;  %v2926_v9 = vmax.f32 %v2532_v35, 0.0  ;;  %v2928_v48 = vmax.f32 %v2645_v7, 0.0  ;;  %v2536_v42 = vadd.f32 %v2535_v41, %v5244_v15  ;;  %v5342_v44 = vld [vmem:[#allocation11 + $0x338] sm:$0xff]  ;;  %v2649_v38 = vadd.f32 %v5303_v55, %v5247_v16  ;;  %v5357_v55 = vld [vmem:[#allocation11 + $0x330] sm:$0xff] }
0x1f3a   :  { %3929 = vmatpush3.msra.mxu1 %v5298_v1  ;;  %3812 = vmatpush3.msra.mxu0 %v3021_v52  ;;  %v2537_v59 = vpop.f32.mrf.mxu0  ;;  %v2650_v61 = vpop.f32.mrf.mxu1  ;;  %v5347_v52 = vld [vmem:[#allocation11 + $0x3b0] sm:$0xff]  ;;  %v3032_v35 = vld [vmem:[#allocation11 + $0x298] sm:$0xff] }
0x1f3b   :  { %3914 = vmatprep.subr.mxu1 %v5301_v28  ;;  %3168 = vmatprep.mubr.f32.mxu0 %v2918_v4  ;;  %v2538_v22 = vadd.f32 %v2537_v59, %v5251_v23  ;;  %v2651_v5 = vadd.f32 %v2650_v61, %v5254_v21  ;;  %v2933_v61 = vmax.f32 %v2536_v42, 0.0 }
0x1f3c   :  { %3273 = vmatprep.mubr.f32.mxu1 %v2920_v14  ;;  %3813 = vmatprep.subr.mxu0 %v3036_v56  ;;  %v5314_v40 = vpop.f32.mrf.mxu0  ;;  %v5316_v49 = vpop.f32.mrf.mxu1 }
0x1f3d   :  { %3930 = vmatpush3.msra.mxu1 %v5309_v57  ;;  %3169 = vmatmul.mubr.f32.gmra.mxu0 %v2917_v62  ;;  %v2934_v20 = vmax.f32 %v2538_v22, 0.0  ;;  %v2936_v4 = vmax.f32 %v2651_v5, 0.0  ;;  %v2387_v62 = vsub.s32 4, %v4567_v33 }
0x1f3e   :  { %3274 = vmatmul.mubr.f32.gmra.mxu1 %v2919_v2  ;;  %3814 = vmatpush3.msra.mxu0 %v3020_v63  ;;  %v2543_v51 = vpop.f32.mrf.mxu0  ;;  %v2656_v31 = vpop.f32.mrf.mxu1  ;;  %v3016_v63 = vld [vmem:[#allocation11 + $0x218] sm:$0xff]  ;;  %v2935_v2 = vmax.f32 %v2649_v38, 0.0 }
0x1f3f   :  { %3915 = vmatprep.subr.mxu1 %v5312_v3  ;;  %3815 = vmatprep.subr.mxu0 %v3035_v8  ;;  %v2544_v41 = vadd.f32 %v2543_v51, %v5251_v23  ;;  %v2657_v56 = vadd.f32 %v2656_v31, %v5254_v21  ;;  %v5364_v23 = vrot.slane %v5239_v12, %v2391_v25  ;;  %v5366_v21 = vld [vmem:[#allocation11 + $0x3a8] sm:$0xff]  ;;  %v3031_v8 = vld [vmem:[#allocation11 + $0x290] sm:$0xff]  ;;  %v3029_v25 = vld [vmem:[#allocation11 + $0x280] sm:$0xff] }
0x1f40   :  { %3931 = vmatpush3.msra.mxu1 %v5320_v10  ;;  %3816 = vmatpush3.msra.mxu0 %v3019_v30  ;;  %v5331_v34 = vpop.f32.mrf.mxu0  ;;  %v5333_v29 = vpop.f32.mrf.mxu1  ;;  %v2542_v30 = vadd.f32 %v5314_v40, %v5244_v15  ;;  %v3015_v51 = vld [vmem:[#allocation11 + $0x210] sm:$0xff]  ;;  %v2655_v31 = vadd.f32 %v5316_v49, %v5247_v16  ;;  %v3030_v40 = vld [vmem:[#allocation11 + $0x288] sm:$0xff]  ;;  %v2399_v16 = vsub.s32 7, %v4567_v33  ;;  %v5388_v49 = vld [vmem:[#allocation11 + $0x320] sm:$0xff] }
0x1f41   :  { %3916 = vmatprep.subr.mxu1 %v5323_v18  ;;  %3173 = vmatprep.mubr.f32.mxu0 %v2926_v9  ;;  %v2942_v11 = vmax.f32 %v2544_v41, 0.0  ;;  %v2944_v22 = vmax.f32 %v2657_v56, 0.0 }
0x1f42   :  { %3278 = vmatprep.mubr.f32.mxu1 %v2928_v48  ;;  %3817 = vmatprep.subr.mxu0 %v3034_v26  ;;  %v2727_v50 = vpop.f32.mrf.mxu0  ;;  %v5338_v0 = vpop.f32.mrf.mxu1  ;;  %v5375_v48 = vld [vmem:[#allocation11 + $0x328] sm:$0xff]  ;;  %v5379_v26 = vld [vmem:[#allocation11 + $0x3a0] sm:$0xff]  ;;  %v2941_v42 = vmax.f32 %v2542_v30, 0.0 }
0x1f43   :  { %3932 = vmatpush3.msra.mxu1 %v5329_v54  ;;  %3174 = vmatmul.mubr.f32.gmra.mxu0 %v2925_v6  ;;  %v2728_v15 = vadd.f32 %v2727_v50, %v5364_v23  ;;  %v5395_v50 = vld [vmem:[#allocation11 + $0x398] sm:$0xff] }
0x1f44   :  { %3279 = vmatmul.mubr.f32.gmra.mxu1 %v2927_v37  ;;  %3818 = vmatpush3.msra.mxu0 %v3018_v27  ;;  %v5349_v53 = vpop.f32.mrf.mxu0  ;;  %v5351_v14 = vpop.f32.mrf.mxu1  ;;  %v5382_v27 = vrot.slane %v5239_v12, %v2387_v62  ;;  %v3013_v62 = vld [vmem:[#allocation11 + $0x200] sm:$0xff] }
0x1f45   :  { %3917 = vmatprep.subr.mxu1 %v5336_v32  ;;  %3819 = vmatprep.subr.mxu0 %v3033_v45  ;;  %v2890_v56 = vmax.f32 %v2728_v15, 0.0 }
0x1f46   :  { %3933 = vmatpush3.msra.mxu1 %v5342_v44  ;;  %3820 = vmatpush3.msra.mxu0 %v3017_v39  ;;  %v2733_v7 = vpop.f32.mrf.mxu0  ;;  %v5359_v59 = vpop.f32.mrf.mxu1  ;;  %v2943_v39 = vmax.f32 %v2655_v31, 0.0  ;;  %v2726_v41 = vadd.f32 %v5331_v34, %v5382_v27 }
0x1f47   :  { %3918 = vmatprep.subr.mxu1 %v5347_v52  ;;  %3178 = vmatprep.mubr.f32.mxu0 %v2934_v20  ;;  %v3014_v20 = vld [vmem:[#allocation11 + $0x208] sm:$0xff] }
0x1f48   :  { %3283 = vmatprep.mubr.f32.mxu1 %v2936_v4  ;;  %3821 = vmatprep.subr.mxu0 %v3032_v35  ;;  %v5368_v46 = vpop.f32.mrf.mxu0  ;;  %v5370_v9 = vpop.f32.mrf.mxu1  ;;  %v2395_v35 = vsub.s32 6, %v4567_v33  ;;  %v5414_v33 = vld [vmem:[#allocation11 + $0x310] sm:$0xff] }
0x1f49   :  { %3934 = vmatpush3.msra.mxu1 %v5357_v55  ;;  %3179 = vmatmul.mubr.f32.gmra.mxu0 %v2933_v61  ;;  %v5401_v61 = vld [vmem:[#allocation11 + $0x318] sm:$0xff] }
0x1f4a   :  { %3284 = vmatmul.mubr.f32.gmra.mxu1 %v2935_v2  ;;  %3822 = vmatpush3.msra.mxu0 %v3016_v63  ;;  %v2739_v5 = vpop.f32.mrf.mxu0  ;;  %v2852_v6 = vpop.f32.mrf.mxu1  ;;  %v5404_v63 = vrot.slane %v5239_v12, %v2399_v16  ;;  %v2734_v2 = vadd.f32 %v2733_v7, %v5364_v23  ;;  %v5422_v15 = vrot.slane %v5239_v12, %v2395_v35 }
0x1f4b   :  { %3919 = vmatprep.subr.mxu1 %v5366_v21  ;;  %3823 = vmatprep.subr.mxu0 %v3031_v8  ;;  %v5407_v8 = vld [vmem:[#allocation11 + $0x390] sm:$0xff]  ;;  %v2732_v16 = vadd.f32 %v5349_v53, %v5382_v27 }
0x1f4c   :  { %3935 = vmatpush3.msra.mxu1 %v5375_v48  ;;  %3824 = vmatpush3.msra.mxu0 %v3015_v51  ;;  %v5390_v37 = vpop.f32.mrf.mxu0  ;;  %v5392_v45 = vpop.f32.mrf.mxu1  ;;  %v5419_v51 = vld [vmem:[#allocation11 + $0x388] sm:$0xff]  ;;  %v2853_v53 = vadd.f32 %v2852_v6, %v5404_v63 }
0x1f4d   :  { %3920 = vmatprep.subr.mxu1 %v5379_v26  ;;  %3183 = vmatprep.mubr.f32.mxu0 %v2942_v11  ;;  %v2847_v11 = vadd.f32 %v5359_v59, %v5404_v63  ;;  %v2740_v59 = vadd.f32 %v2739_v5, %v5364_v23 }
0x1f4e   :  { %3288 = vmatprep.mubr.f32.mxu1 %v2944_v22  ;;  %3825 = vmatprep.subr.mxu0 %v3030_v40  ;;  %v2745_v38 = vpop.f32.mrf.mxu0  ;;  %v2858_v4 = vpop.f32.mrf.mxu1  ;;  %v2889_v22 = vmax.f32 %v2726_v41, 0.0  ;;  %v5425_v40 = vld [vmem:[#allocation11 + $0x308] sm:$0xff] }
0x1f4f   :  { %3936 = vmatpush3.msra.mxu1 %v5388_v49  ;;  %3184 = vmatmul.mubr.f32.gmra.mxu0 %v2941_v42  ;;  %v2898_v42 = vmax.f32 %v2734_v2, 0.0  ;;  %v2900_v41 = vmax.f32 %v2847_v11, 0.0  ;;  %v2851_v2 = vadd.f32 %v5370_v9, %v5422_v15  ;;  %v2908_v11 = vmax.f32 %v2853_v53, 0.0 }
0x1f50   :  { %3289 = vmatmul.mubr.f32.gmra.mxu1 %v2943_v39  ;;  %3826 = vmatpush3.msra.mxu0 %v3014_v20  ;;  %v5409_v30 = vpop.f32.mrf.mxu0  ;;  %v5411_v34 = vpop.f32.mrf.mxu1  ;;  %v5432_v20 = vld [vmem:[#allocation11 + $0x380] sm:$0xff] }
0x1f51   :  { %3921 = vmatprep.subr.mxu1 %v5395_v50  ;;  %3827 = vmatprep.subr.mxu0 %v3029_v25  ;;  %v2845_v25 = vadd.f32 %v5351_v14, %v5422_v15  ;;  %v2738_v14 = vadd.f32 %v5368_v46, %v5382_v27 }
0x1f52   :  { %3937 = vmatpush3.msra.mxu1 %v5401_v61  ;;  %3828 = vmatpush3.msra.mxu0 %v3013_v62  ;;  %v2751_v7 = vpop.f32.mrf.mxu0  ;;  %v2864_v31 = vpop.f32.mrf.mxu1  ;;  %v2906_v62 = vmax.f32 %v2740_v59, 0.0 }
0x1f53   :  { %3922 = vmatprep.subr.mxu1 %v5407_v8  ;;  %3358 = vmatprep.mubr.f32.mxu0 %v2890_v56  ;;  %v2897_v56 = vmax.f32 %v2732_v16, 0.0  ;;  %v2899_v6 = vmax.f32 %v2845_v25, 0.0  ;;  %v2907_v16 = vmax.f32 %v2851_v2, 0.0 }
0x1f54   :  { %3853 = vmatprep.subr.mxu0 %v5232_v19  ;;  %3938 = vmatpush3.msra.mxu1 %v5414_v33  ;;  %v5434_v39 = vpop.f32.mrf.mxu0  ;;  %v5436_v12 = vpop.f32.mrf.mxu1  ;;  %v5444_v19 = vld [vmem:[#allocation11 + $0x300] sm:$0xff] }
0x1f55   :  { %3359 = vmatmul.mubr.f32.vlgmr.msra.gmra.mxu0 %v2889_v22  ;;  %3923 = vmatprep.subr.mxu1 %v5419_v51 }
0x1f56   :  { %3854 = vmatpush3.msra.mxu0 %v5261_v13  ;;  %3939 = vmatpush3.msra.mxu1 %v5425_v40  ;;  %v2757_v5 = vpop.f32.mrf.mxu0  ;;  %v2870_v35 = vpop.f32.mrf.mxu1  ;;  %v2746_v13 = vadd.f32 %v2745_v38, %v5364_v23  ;;  %v2744_v38 = vadd.f32 %v5390_v37, %v5382_v27 }
0x1f57   :  { %3855 = vmatprep.subr.mxu0 %v5266_v47  ;;  %3924 = vmatprep.subr.mxu1 %v5432_v20  ;;  %v2859_v47 = vadd.f32 %v2858_v4, %v5404_v63  ;;  %v2857_v4 = vadd.f32 %v5392_v45, %v5422_v15 }
0x1f58   :  { %3856 = vmatpush3.msra.mxu0 %v5273_v58  ;;  %3363 = vmatprep.mubr.f32.mxu0 %v2898_v42  ;;  %v2761_v22 = vpop.f32.mrf.mxu0  ;;  %v5457_v46 = vpop.f32.mrf.mxu1  ;;  %v2905_v58 = vmax.f32 %v2738_v14, 0.0  ;;  %v2914_v9 = vmax.f32 %v2746_v13, 0.0 }
0x1f59   :  { %3857 = vmatprep.subr.mxu0 %v5279_v17  ;;  %3940 = vmatpush3.msra.mxu1 %v5444_v19  ;;  %v2752_v17 = vadd.f32 %v2751_v7, %v5364_v23  ;;  %v2916_v42 = vmax.f32 %v2859_v47, 0.0  ;;  %v2750_v7 = vadd.f32 %v5409_v30, %v5382_v27  ;;  %v2915_v25 = vmax.f32 %v2857_v4, 0.0 }
0x1f5a   :  { %3468 = vmatprep.mubr.f32.mxu1 %v2900_v41  ;;  %3364 = vmatmul.mubr.f32.gmra.mxu0 %v2897_v56  ;;  %v2763_v59 = vpop.f32.mrf.mxu0  ;;  %v2876_v37 = vpop.f32.mrf.mxu1  ;;  %v2756_v41 = vadd.f32 %v5434_v39, %v5382_v27  ;;  %v2762_v14 = vadd.f32 %v2761_v22, %v5382_v27  ;;  %v2875_v13 = vadd.f32 %v5457_v46, %v5422_v15 }
0x1f5b   :  { %3858 = vmatpush3.msra.mxu0 %v5282_v36  ;;  %3469 = vmatmul.mubr.f32.vlgmr.msra.gmra.mxu1 %v2899_v6  ;;  %v2865_v36 = vadd.f32 %v2864_v31, %v5404_v63  ;;  %v2922_v45 = vmax.f32 %v2752_v17, 0.0  ;;  %v2863_v31 = vadd.f32 %v5411_v34, %v5422_v15 }
0x1f5c   :  { %3859 = vmatprep.subr.mxu0 %v5285_v24  ;;  %3368 = vmatprep.mubr.f32.mxu0 %v2906_v62  ;;  %v2913_v24 = vmax.f32 %v2744_v38, 0.0  ;;  %v2767_v53 = vpop.f32.mrf.mxu0  ;;  %v2880_v30 = vpop.f32.mrf.mxu1  ;;  %v2939_v2 = vmax.f32 %v2875_v13, 0.0 }
0x1f5d   :  { %3860 = vmatpush3.msra.mxu0 %v5291_v43  ;;  %3473 = vmatprep.mubr.f32.mxu1 %v2908_v11  ;;  %v2758_v43 = vadd.f32 %v2757_v5, %v5364_v23  ;;  %v2923_v5 = vmax.f32 %v2863_v31, 0.0  ;;  %v2881_v11 = vadd.f32 %v2880_v30, %v5422_v15 }
0x1f5e   :  { %3861 = vmatprep.subr.mxu0 %v5294_v60  ;;  %3369 = vmatmul.mubr.f32.gmra.mxu0 %v2905_v58  ;;  %v2924_v60 = vmax.f32 %v2865_v36, 0.0  ;;  %v2769_v56 = vpop.f32.mrf.mxu0  ;;  %v2882_v39 = vpop.f32.mrf.mxu1 }
0x1f5f   :  { %3862 = vmatpush3.msra.mxu0 %v5298_v1  ;;  %3474 = vmatmul.mubr.f32.gmra.mxu1 %v2907_v16  ;;  %v2871_v1 = vadd.f32 %v2870_v35, %v5404_v63  ;;  %v2930_v34 = vmax.f32 %v2758_v43, 0.0  ;;  %v2869_v35 = vadd.f32 %v5436_v12, %v5422_v15 }
0x1f60   :  { %3863 = vmatprep.subr.mxu0 %v5301_v28  ;;  %3373 = vmatprep.mubr.f32.mxu0 %v2914_v9  ;;  %v2921_v28 = vmax.f32 %v2750_v7, 0.0 }
0x1f61   :  { %3864 = vmatpush3.msra.mxu0 %v5309_v57  ;;  %3478 = vmatprep.mubr.f32.mxu1 %v2916_v42  ;;  %v2764_v57 = vadd.f32 %v2763_v59, %v5364_v23  ;;  %v2931_v62 = vmax.f32 %v2869_v35, 0.0 }
0x1f62   :  { %3865 = vmatprep.subr.mxu0 %v5312_v3  ;;  %3374 = vmatmul.mubr.f32.gmra.mxu0 %v2913_v24  ;;  %v2932_v3 = vmax.f32 %v2871_v1, 0.0 }
0x1f63   :  { %3866 = vmatpush3.msra.mxu0 %v5320_v10  ;;  %3479 = vmatmul.mubr.f32.gmra.mxu1 %v2915_v25  ;;  %v2877_v10 = vadd.f32 %v2876_v37, %v5404_v63  ;;  %v2938_v12 = vmax.f32 %v2764_v57, 0.0 }
0x1f64   :  { %3867 = vmatprep.subr.mxu0 %v5323_v18  ;;  %3378 = vmatprep.mubr.f32.mxu0 %v2922_v45  ;;  %v2929_v18 = vmax.f32 %v2756_v41, 0.0 }
0x1f65   :  { %3868 = vmatpush3.msra.mxu0 %v5329_v54  ;;  %3483 = vmatprep.mubr.f32.mxu1 %v2924_v60  ;;  %v2770_v54 = vadd.f32 %v2769_v56, %v5364_v23  ;;  %v2940_v6 = vmax.f32 %v2877_v10, 0.0 }
0x1f66   :  { %3869 = vmatprep.subr.mxu0 %v5336_v32  ;;  %3379 = vmatmul.mubr.f32.gmra.mxu0 %v2921_v28  ;;  %v2883_v32 = vadd.f32 %v2882_v39, %v5404_v63  ;;  %v5541_v28 = vld [vmem:[#allocation5] ss:$0 sm:$0xff] }
0x1f67   :  { %3870 = vmatpush3.msra.mxu0 %v5342_v44  ;;  %3484 = vmatmul.mubr.f32.gmra.mxu1 %v2923_v5  ;;  %v2937_v44 = vmax.f32 %v2762_v14, 0.0  ;;  %v2946_v23 = vmax.f32 %v2770_v54, 0.0 }
0x1f68   :  { %3871 = vmatprep.subr.mxu0 %v5347_v52  ;;  %3383 = vmatprep.mubr.f32.mxu0 %v2930_v34  ;;  %v2768_v52 = vadd.f32 %v2767_v53, %v5382_v27  ;;  %v2947_v27 = vmax.f32 %v2881_v11, 0.0 }
0x1f69   :  { %3872 = vmatpush3.msra.mxu0 %v5357_v55  ;;  %3488 = vmatprep.mubr.f32.mxu1 %v2932_v3  ;;  %v2948_v55 = vmax.f32 %v2883_v32, 0.0 }
0x1f6a   :  { %3873 = vmatprep.subr.mxu0 %v5366_v21  ;;  %3384 = vmatmul.mubr.f32.gmra.mxu0 %v2929_v18  ;;  %v2841_v21 = vadd.f32 %v5338_v0, %v5404_v63 }
0x1f6b   :  { %3874 = vmatpush3.msra.mxu0 %v5375_v48  ;;  %3489 = vmatmul.mubr.f32.gmra.mxu1 %v2931_v62  ;;  %v2839_v48 = vadd.f32 %v5333_v29, %v5422_v15 }
0x1f6c   :  { %3875 = vmatprep.subr.mxu0 %v5379_v26  ;;  %3388 = vmatprep.mubr.f32.mxu0 %v2938_v12  ;;  %v2945_v26 = vmax.f32 %v2768_v52, 0.0 }
0x1f6d   :  { %3876 = vmatpush3.msra.mxu0 %v5388_v49  ;;  %3493 = vmatprep.mubr.f32.mxu1 %v2940_v6  ;;  %v2892_v49 = vmax.f32 %v2841_v21, 0.0  ;;  %v2891_v0 = vmax.f32 %v2839_v48, 0.0 }
0x1f6e   :  { %3877 = vmatprep.subr.mxu0 %v5395_v50  ;;  %3389 = vmatmul.mubr.f32.gmra.mxu0 %v2937_v44 }
0x1f6f   :  { %3878 = vmatpush3.msra.mxu0 %v5401_v61  ;;  %3494 = vmatmul.mubr.f32.gmra.mxu1 %v2939_v2 }
0x1f70   :  { %3879 = vmatprep.subr.mxu0 %v5407_v8  ;;  %3393 = vmatprep.mubr.f32.mxu0 %v2946_v23 }
0x1f71   :  { %3880 = vmatpush3.msra.mxu0 %v5414_v33  ;;  %3498 = vmatprep.mubr.f32.mxu1 %v2948_v55 }
0x1f72   :  { %3881 = vmatprep.subr.mxu0 %v5419_v51  ;;  %3394 = vmatmul.mubr.f32.gmra.mxu0 %v2945_v26 }
0x1f73   :  { %3882 = vmatpush3.msra.mxu0 %v5425_v40  ;;  %3499 = vmatmul.mubr.f32.gmra.mxu1 %v2947_v27 }
0x1f74   :  { %3883 = vmatprep.subr.mxu0 %v5432_v20  ;;  %3463 = vmatprep.mubr.f32.mxu0 %v2892_v49 }
0x1f75   :  { %3884 = vmatpush3.msra.mxu0 %v5444_v19 }
0x1f76   :  { %3464 = vmatmul.mubr.f32.vlgmr.msra.gmra.mxu0 %v2891_v0 }
0x1fe8   :  { %v5515_v29 = vpop.f32.mrf.mxu0  ;;  %v5517_v50 = vpop.f32.mrf.mxu1 }
0x1fea   :  { %v5519_v61 = vpop.f32.mrf.mxu0  ;;  %v5521_v63 = vpop.f32.mrf.mxu1 }
0x1fed   :  { %v3720_v8 = vpop.f32.mrf.mxu0  ;;  %v3776_v33 = vpop.f32.mrf.mxu1 }
0x1fef   :  { %v3721_v51 = vpop.f32.mrf.mxu0  ;;  %v3777_v15 = vpop.f32.mrf.mxu1 }
0x1ff0   :  { %v3722_v60 = vadd.f32 %v3721_v51, %v3720_v8  ;;  %v3778_v35 = vadd.f32 %v3777_v15, %v3776_v33 }
0x1ff1   :  { %v3723_v40 = vpop.f32.mrf.mxu0 }
0x1ff2   :  { %v3779_v47 = vpop.f32.mrf.mxu1  ;;  %v3156_v41 = vadd.f32 %v3722_v60, %v5541_v28 }
0x1ff3   :  { %v3724_v22 = vpop.f32.mrf.mxu0 }
0x1ff4   :  { %v3780_v20 = vpop.f32.mrf.mxu1  ;;  %v3725_v34 = vadd.f32 %v3724_v22, %v3723_v40  ;;  %v3261_v56 = vadd.f32 %v3778_v35, %v3156_v41 }
0x1ff5   :  { %v3781_v62 = vadd.f32 %v3780_v20, %v3779_v47 }
0x1ff6   :  { %v3161_v39 = vadd.f32 %v3725_v34, %v5541_v28 }
0x1ff7   :  { %v3726_v46 = vpop.f32.mrf.mxu0 }
0x1ff8   :  { %v3782_v58 = vpop.f32.mrf.mxu1  ;;  %v3266_v23 = vadd.f32 %v3781_v62, %v3161_v39 }
0x1ff9   :  { %v3727_v19 = vpop.f32.mrf.mxu0 }
0x1ffa   :  { %v3783_v38 = vpop.f32.mrf.mxu1  ;;  %v3728_v18 = vadd.f32 %v3727_v19, %v3726_v46 }
0x1ffb   :  { %v3784_v26 = vadd.f32 %v3783_v38, %v3782_v58 }
0x1ffc   :  { %v3166_v2 = vadd.f32 %v3728_v18, %v5541_v28 }
0x1ffd   :  { %v3729_v9 = vpop.f32.mrf.mxu0 }
0x1ffe   :  { %v3785_v17 = vpop.f32.mrf.mxu1  ;;  %v3271_v40 = vadd.f32 %v3784_v26, %v3166_v2 }
0x1fff   :  { %v3730_v16 = vpop.f32.mrf.mxu0 }
0x2000   :  { %v3786_v4 = vpop.f32.mrf.mxu1  ;;  %v3731_v44 = vadd.f32 %v3730_v16, %v3729_v9 }
0x2001   :  { %v3787_v46 = vadd.f32 %v3786_v4, %v3785_v17 }
0x2002   :  { %v3171_v33 = vadd.f32 %v3731_v44, %v5541_v28 }
0x2003   :  { %v3732_v42 = vpop.f32.mrf.mxu0 }
0x2004   :  { %v5523_v36 = vpop.f32.mrf.mxu1  ;;  %v3276_v58 = vadd.f32 %v3787_v46, %v3171_v33 }
0x2005   :  { %v3733_v59 = vpop.f32.mrf.mxu0 }
0x2006   :  { %v5525_v37 = vpop.f32.mrf.mxu1  ;;  %v3734_v51 = vadd.f32 %v3733_v59, %v3732_v42 }
0x2008   :  { %v3176_v38 = vadd.f32 %v3734_v51, %v5541_v28 }
0x2009   :  { %v3735_v24 = vpop.f32.mrf.mxu0 }
0x200a   :  { %v5527_v45 = vpop.f32.mrf.mxu1 }
0x200b   :  { %v3736_v7 = vpop.f32.mrf.mxu0 }
0x200c   :  { %v5531_v25 = vpop.f32.mrf.mxu1 }
0x200f   :  { %v5529_v43 = vpop.f32.mrf.mxu0 }
0x2010   :  { %v5535_v1 = vpop.f32.mrf.mxu1 }
0x2011   :  { %v5533_v31 = vpop.f32.mrf.mxu0 }
0x2012   :  { %v5544_v57 = vpop.f32.mrf.mxu1 }
0x2015   :  { %v5537_v53 = vpop.f32.mrf.mxu0 }
0x2017   :  { %v5539_v30 = vpop.f32.mrf.mxu0 }
0x2018   :  { %v3831_v51 = vadd.f32 %v5539_v30, %v5537_v53 }
0x201a   :  { %v3832_v5 = vpop.f32.mrf.mxu0 }
0x201b   :  { %v3888_v3 = vpop.f32.mrf.mxu1 }
0x201c   :  { %v3833_v10 = vpop.f32.mrf.mxu0 }
0x201d   :  { %v3834_v14 = vadd.f32 %v3833_v10, %v3832_v5  ;;  %v3889_v12 = vpop.f32.mrf.mxu1  ;;  %v3737_v5 = vadd.f32 %v3736_v7, %v3735_v24 }
0x201e   :  { %v3835_v54 = vpop.f32.mrf.mxu0  ;;  %v3890_v6 = vadd.f32 %v3889_v12, %v3888_v3  ;;  %v3790_v3 = vadd.f32 %v5525_v37, %v5523_v36  ;;  %v3793_v37 = vadd.f32 %v5531_v25, %v5527_v45 }
0x201f   :  { %v3366_v13 = vadd.f32 %v3834_v14, %v3261_v56  ;;  %v3891_v32 = vpop.f32.mrf.mxu1  ;;  %v3740_v14 = vadd.f32 %v5533_v31, %v5529_v43 }
0x2020   :  { %v3836_v52 = vpop.f32.mrf.mxu0  ;;  %v3281_v18 = vadd.f32 %v3790_v3, %v3176_v38 }
0x2021   :  { %v3471_v11 = vadd.f32 %v3890_v6, %v3366_v13  ;;  %v3837_v55 = vadd.f32 %v3836_v52, %v3835_v54  ;;  %v3892_v21 = vpop.f32.mrf.mxu1  ;;  %v3181_v54 = vadd.f32 %v3737_v5, %v5541_v28  ;;  %v3719_v13 = vadd.f32 %v5519_v61, %v5515_v29 }
0x2022   :  { %v3838_v48 = vpop.f32.mrf.mxu0  ;;  %v3893_v0 = vadd.f32 %v3892_v21, %v3891_v32  ;;  %v3186_v43 = vadd.f32 %v3740_v14, %v5541_v28  ;;  %v3796_v29 = vadd.f32 %v5544_v57, %v5535_v1 }
0x2023   :  { %v3678_v27 = vmul.f32 -1.442695, %v3471_v11  ;;  %v3371_v49 = vadd.f32 %v3837_v55, %v3266_v23  ;;  %v3894_v8 = vpop.f32.mrf.mxu1  ;;  %v3286_v23 = vadd.f32 %v3793_v37, %v3181_v54 }
0x2024   :  { %v3839_v15 = vpop.f32.mrf.mxu0 }
0x2025   :  { %4144 = vpow2.f32 %v3678_v27  ;;  %v3476_v47 = vadd.f32 %v3893_v0, %v3371_v49  ;;  %v3840_v22 = vadd.f32 %v3839_v15, %v3838_v48  ;;  %v3895_v20 = vpop.f32.mrf.mxu1  ;;  %v3151_v48 = vadd.f32 %v3719_v13, %v5541_v28 }
0x2026   :  { %v3841_v19 = vpop.f32.mrf.mxu0  ;;  %v3896_v60 = vadd.f32 %v3895_v20, %v3894_v8  ;;  %v3775_v0 = vadd.f32 %v5521_v63, %v5517_v50  ;;  %v3291_v8 = vadd.f32 %v3796_v29, %v3186_v43 }
0x2027   :  { %v3679_v9 = vmul.f32 -1.442695, %v3476_v47  ;;  %v3376_v16 = vadd.f32 %v3840_v22, %v3271_v40  ;;  %v3897_v41 = vpop.f32.mrf.mxu1 }
0x2028   :  { %v3842_v34 = vpop.f32.mrf.mxu0  ;;  %v3256_v1 = vadd.f32 %v3775_v0, %v3151_v48 }
0x2029   :  { %4146 = vpow2.f32 %v3679_v9  ;;  %v3481_v35 = vadd.f32 %v3896_v60, %v3376_v16  ;;  %v3843_v42 = vadd.f32 %v3842_v34, %v3841_v19  ;;  %v3898_v59 = vpop.f32.mrf.mxu1 }
0x202a   :  { %v3844_v10 = vpop.f32.mrf.mxu0  ;;  %v3899_v4 = vadd.f32 %v3898_v59, %v3897_v41  ;;  %v3361_v16 = vadd.f32 %v3831_v51, %v3256_v1 }
0x202b   :  { %v3680_v56 = vmul.f32 -1.442695, %v3481_v35  ;;  %v3381_v17 = vadd.f32 %v3843_v42, %v3276_v58  ;;  %v3900_v39 = vpop.f32.mrf.mxu1 }
0x202c   :  { %v3845_v12 = vpop.f32.mrf.mxu0 }
0x202d   :  { %4148 = vpow2.f32 %v3680_v56  ;;  %v3486_v24 = vadd.f32 %v3899_v4, %v3381_v17  ;;  %v3846_v7 = vadd.f32 %v3845_v12, %v3844_v10  ;;  %v3901_v62 = vpop.f32.mrf.mxu1 }
0x202e   :  { %v3847_v36 = vpop.f32.mrf.mxu0  ;;  %v3902_v44 = vadd.f32 %v3901_v62, %v3900_v39 }
0x202f   :  { %v3681_v6 = vmul.f32 -1.442695, %v3486_v24  ;;  %v3386_v32 = vadd.f32 %v3846_v7, %v3281_v18  ;;  %v3903_v52 = vpop.f32.mrf.mxu1 }
0x2030   :  { %v3848_v31 = vpop.f32.mrf.mxu0 }
0x2031   :  { %4150 = vpow2.f32 %v3681_v6  ;;  %v3491_v2 = vadd.f32 %v3902_v44, %v3386_v32  ;;  %v3849_v11 = vadd.f32 %v3848_v31, %v3847_v36  ;;  %v3904_v55 = vpop.f32.mrf.mxu1 }
0x2032   :  { %v4145_v21 = vpop.eup %4144  ;;  %v3850_v61 = vpop.f32.mrf.mxu0  ;;  %v3905_v27 = vadd.f32 %v3904_v55, %v3903_v52 }
0x2033   :  { %v3529_v45 = vadd.f32 1.0, %v4145_v21  ;;  %v3682_v25 = vmul.f32 -1.442695, %v3491_v2  ;;  %v3391_v26 = vadd.f32 %v3849_v11, %v3286_v23  ;;  %v3906_v49 = vpop.f32.mrf.mxu1 }
0x2034   :  { %v3851_v33 = vpop.f32.mrf.mxu0 }
0x2035   :  { %4152 = vrcp.f32 %v3529_v45  ;;  %v3496_v15 = vadd.f32 %v3905_v27, %v3391_v26  ;;  %v3852_v28 = vadd.f32 %v3851_v33, %v3850_v61  ;;  %v3907_v40 = vpop.f32.mrf.mxu1 }
0x2036   :  { %v4147_v47 = vpop.eup %4146  ;;  %4154 = vpow2.f32 %v3682_v25  ;;  %v3885_v57 = vpop.f32.mrf.mxu0  ;;  %v3908_v19 = vadd.f32 %v3907_v40, %v3906_v49 }
0x2037   :  { %v3530_v22 = vadd.f32 1.0, %v4147_v47  ;;  %v3683_v20 = vmul.f32 -1.442695, %v3496_v15  ;;  %v3396_v46 = vadd.f32 %v3852_v28, %v3291_v8 }
0x2038   :  { %v3886_v9 = vpop.f32.mrf.mxu0 }
0x2039   :  { %4156 = vrcp.f32 %v3530_v22  ;;  %v3501_v50 = vadd.f32 %v3908_v19, %v3396_v46  ;;  %v3887_v63 = vadd.f32 %v3886_v9, %v3885_v57 }
0x203a   :  { %v4149_v60 = vpop.eup %4148  ;;  %4158 = vpow2.f32 %v3683_v20 }
0x203b   :  { %v3531_v53 = vadd.f32 1.0, %v4149_v60  ;;  %v3684_v30 = vmul.f32 -1.442695, %v3501_v50  ;;  %v3466_v41 = vadd.f32 %v3887_v63, %v3361_v16 }
0x203d   :  { %4160 = vrcp.f32 %v3531_v53  ;;  %v3677_v58 = vmul.f32 -1.442695, %v3466_v41 }
0x203e   :  { %v4151_v38 = vpop.eup %4150  ;;  %4162 = vpow2.f32 %v3684_v30 }
0x203f   :  { %v3532_v34 = vadd.f32 1.0, %v4151_v38  ;;  %4164 = vpow2.f32 %v3677_v58 }
0x2041   :  { %4166 = vrcp.f32 %v3532_v34 }
0x2042   :  { %v4153_v5 = vpop.eup %4152 }
0x2043   :  { %v4155_v35 = vpop.eup %4154  ;;  %3554 = vst.msk [vmem:[%s5613_s14 + $0x8] sm:$0xff] %vm3552_vm6, %v4153_v5 }
0x2044   :  { %v3533_v42 = vadd.f32 1.0, %v4155_v35 }
0x2046   :  { %v4157_v59 = vpop.eup %4156  ;;  %4168 = vrcp.f32 %v3533_v42 }
0x2047   :  { %v4159_v3 = vpop.eup %4158  ;;  %3555 = vst.msk [vmem:[%s5613_s14 + $0x10] sm:$0xff] %vm3552_vm6, %v4157_v59 }
0x2048   :  { %v3534_v10 = vadd.f32 1.0, %v4159_v3 }
0x204a   :  { %v4161_v56 = vpop.eup %4160  ;;  %4170 = vrcp.f32 %v3534_v10 }
0x204b   :  { %v4163_v17 = vpop.eup %4162  ;;  %3556 = vst.msk [vmem:[%s5613_s14 + $0x18] sm:$0xff] %vm3552_vm6, %v4161_v56 }
0x204c   :  { %v4165_v4 = vpop.eup %4164  ;;  %v3535_v39 = vadd.f32 1.0, %v4163_v17 }
0x204d   :  { %v3528_v18 = vadd.f32 1.0, %v4165_v4 }
0x204e   :  { %v4167_v14 = vpop.eup %4166  ;;  %4172 = vrcp.f32 %v3535_v39 }
0x204f   :  { %3557 = vst.msk [vmem:[%s5613_s14 + $0x20] sm:$0xff] %vm3552_vm6, %v4167_v14  ;;  %4174 = vrcp.f32 %v3528_v18 }
0x2053   :  { %v4169_v12 = vpop.eup %4168 }
0x2054   :  { %3558 = vst.msk [vmem:[%s5613_s14 + $0x28] sm:$0xff] %vm3552_vm6, %v4169_v12 }
0x2057   :  { %v4171_v54 = vpop.eup %4170 }
0x2058   :  { %3559 = vst.msk [vmem:[%s5613_s14 + $0x30] sm:$0xff] %vm3552_vm6, %v4171_v54 }
0x205b   :  { %v4173_v24 = vpop.eup %4172 }
0x205c   :  { %v4175_v7 = vpop.eup %4174  ;;  %3560 = vst.msk [vmem:[%s5613_s14 + $0x38] sm:$0xff] %vm3552_vm6, %v4173_v24 }
0x205d   :  { %3553 = vst.msk [vmem:[%s5613_s14] sm:$0xff] %vm3552_vm6, %v4175_v7 }
0x205e   :  { %3573 = vsyncpa [#allocation7], 1 }
0x205f   :  { %3574 = vsyncpa [#allocation9], 1 }
0x2060   :  { %3575 = vsyncpa [#allocation12], 1 }

</bundles_post_ra>
